<compile_context>
chip_gen: v6e
topology: v6e:2x2x1
jax: 0.10.0
libtpu: 0.0.40
codegen_flags: <defaults>
</compile_context>

<pallas_src>
import functools
import math

import jax
import jax.numpy as jnp
from jax.experimental import pallas as pl
from jax.experimental.pallas import tpu as pltpu

_LN_EPS = 1e-5  # PyTorch nn.LayerNorm default


# -----------------------------------------------------------------------------
# In-kernel helpers (traced jnp code operating on values / VMEM refs)
# -----------------------------------------------------------------------------
def _layernorm(h, g, b, eps):
    mu = jnp.mean(h, axis=-1, keepdims=True)
    diff = h - mu
    var = jnp.mean(diff * diff, axis=-1, keepdims=True)
    return diff * jax.lax.rsqrt(var + eps) * g + b


def _elu(t):
    # PyTorch F.elu(alpha=1); exp argument clamped so the discarded branch is finite.
    # TODO(synk): expm1 would be marginally more precise for t -> 0-.
    return jnp.where(t > 0, t, jnp.exp(jnp.minimum(t, 0.0)) - 1.0)


def _mha_ln(xq, xkv, wq_ref, wk_ref, wv_ref, wo_ref, g_ref, b_ref, n_heads, eps):
    """LayerNorm(xq + MultiHeadAttention(xq, xkv)).

    Per-head weights are (H, D, A) / (H, D, Dv) / (H, Dv, D) slabs so each head
    reads a contiguous tile (no sub-128-lane column slices), and the output
    projection is accumulated per head (no lane-concat).  The 1/sqrt(dim_attn)
    softmax scale is already folded into wq at init.
    """
    acc = None
    for h in range(n_heads):                              # static unroll (H small)
        qh = jnp.dot(xq, wq_ref[h], preferred_element_type=jnp.float32)   # (Sq, A)
        kh = jnp.dot(xkv, wk_ref[h], preferred_element_type=jnp.float32)  # (Sk, A)
        vh = jnp.dot(xkv, wv_ref[h], preferred_element_type=jnp.float32)  # (Sk, Dv)
        s = jax.lax.dot_general(qh, kh, (((1,), (1,)), ((), ())),
                                preferred_element_type=jnp.float32)       # (Sq, Sk)
        m = jnp.max(s, axis=-1, keepdims=True)
        p = jnp.exp(s - m)
        p = p * pl.reciprocal(jnp.sum(p, axis=-1, keepdims=True), approx=True)
        oh = jnp.dot(p, vh, preferred_element_type=jnp.float32)           # (Sq, Dv)
        c = jnp.dot(oh, wo_ref[h], preferred_element_type=jnp.float32)    # (Sq, D)
        acc = c if acc is None else acc + c
    return _layernorm(xq + acc, g_ref[...], b_ref[...], eps)


def _ffn_ln(x, w2_ref, b2_ref, w1_ref, b1_ref, g_ref, b_ref, eps):
    """LayerNorm(x + fc1(elu(fc2(x))))."""
    t = jnp.dot(x, w2_ref[...], preferred_element_type=jnp.float32) + b2_ref[...]
    t = _elu(t)
    t = jnp.dot(t, w1_ref[...], preferred_element_type=jnp.float32) + b1_ref[...]
    return _layernorm(x + t, g_ref[...], b_ref[...], eps)


# -----------------------------------------------------------------------------
# Fused whole-forward kernel
# -----------------------------------------------------------------------------
def _build_fused_kernel(n_enc_layers, n_dec_layers, n_heads, dec_seq_len,
                        eps=_LN_EPS):
    """One kernel body = the full forward pass for one batch element."""

    def kernel(x_ref, *refs):
        o_ref = refs[-1]
        it = iter(refs[:-1])

        def nxt():
            return next(it)

        x = x_ref[0]                                       # (S_enc, input_size)

        # ---- encoder input projection (+ bias + positional encoding, folded) ----
        w_in = nxt(); bpe = nxt()
        e = jnp.dot(x, w_in[...], preferred_element_type=jnp.float32) + bpe[...]

        # ---- encoder stack ----
        for _ in range(n_enc_layers):
            wq, wk, wv, wo, g1, b1 = nxt(), nxt(), nxt(), nxt(), nxt(), nxt()
            e = _mha_ln(e, e, wq, wk, wv, wo, g1, b1, n_heads, eps)
            w2, b2, w1, b1f, g2, b2f = nxt(), nxt(), nxt(), nxt(), nxt(), nxt()
            e = _ffn_ln(e, w2, b2, w1, b1f, g2, b2f, eps)

        # ---- decoder input projection (last dec_seq_len input steps) ----
        w_in = nxt(); b_in = nxt()
        xd = x[x.shape[0] - dec_seq_len:, :]               # static sublane slice
        d = jnp.dot(xd, w_in[...], preferred_element_type=jnp.float32) + b_in[...]

        # ---- decoder stack ----
        for _ in range(n_dec_layers):
            wq, wk, wv, wo, g1, b1 = nxt(), nxt(), nxt(), nxt(), nxt(), nxt()
            d = _mha_ln(d, d, wq, wk, wv, wo, g1, b1, n_heads, eps)   # self-attn
            wq, wk, wv, wo, g2, b2 = nxt(), nxt(), nxt(), nxt(), nxt(), nxt()
            d = _mha_ln(d, e, wq, wk, wv, wo, g2, b2, n_heads, eps)   # cross-attn
            w2, b2f, w1, b1f, g3, b3 = nxt(), nxt(), nxt(), nxt(), nxt(), nxt()
            d = _ffn_ln(d, w2, b2f, w1, b1f, g3, b3, eps)

        # ---- final projection: out = flatten(d) @ out_w + out_b ----
        # out_w pre-reshaped at init to (dec_seq_len, D, Npad) (Npad lane-dense,
        # zero-padded columns), so the flatten becomes a per-time-step MXU
        # accumulation — no in-kernel reshape/relayout.
        ow = nxt(); ob = nxt()
        acc = ob[...]                                      # (1, Npad)
        for s in range(dec_seq_len):
            acc = acc + jnp.dot(d[s:s + 1, :], ow[s],
                                preferred_element_type=jnp.float32)
        o_ref[0] = acc

    return kernel


def _const_block_spec(shape):
    n = len(shape)
    return pl.BlockSpec(shape, lambda b, _n=n: (0,) * _n)


def _flatten_params(params):
    """Canonical parameter order — must match the kernel's consumption order."""
    flat = [params["enc_in_w"], params["enc_in_bpe"]]
    for p in params["encs"]:
        a = p["attn"]
        flat += [a["wq"], a["wk"], a["wv"], a["wo"], p["norm1_g"], p["norm1_b"],
                 p["fc2_w"], p["fc2_b"], p["fc1_w"], p["fc1_b"],
                 p["norm2_g"], p["norm2_b"]]
    flat += [params["dec_in_w"], params["dec_in_b"]]
    for p in params["decs"]:
        a1, a2 = p["attn1"], p["attn2"]
        flat += [a1["wq"], a1["wk"], a1["wv"], a1["wo"], p["norm1_g"], p["norm1_b"],
                 a2["wq"], a2["wk"], a2["wv"], a2["wo"], p["norm2_g"], p["norm2_b"],
                 p["fc2_w"], p["fc2_b"], p["fc1_w"], p["fc1_b"],
                 p["norm3_g"], p["norm3_b"]]
    flat += [params["out_w"], params["out_b"]]
    return flat


def transformer_forward(params, x, *, out_seq_len):
    """Full forward pass in a single pallas_call; grid=(batch,) 'parallel'."""
    B, S_enc, K = x.shape
    n_enc = len(params["encs"])
    n_dec = len(params["decs"])
    some_attn = (params["encs"][0]["attn"] if n_enc
                 else params["decs"][0]["attn1"])
    n_heads = some_attn["wq"].shape[0]
    dec_seq_len = params["out_w"].shape[0]
    n_pad = params["out_b"].shape[-1]

    flat = _flatten_params(params)
    kernel = _build_fused_kernel(n_enc, n_dec, n_heads, dec_seq_len)

    in_specs = [pl.BlockSpec((1, S_enc, K), lambda b: (b, 0, 0))]
    in_specs += [_const_block_spec(p.shape) for p in flat]

    y = pl.pallas_call(
        kernel,
        out_shape=jax.ShapeDtypeStruct((B, 1, n_pad), jnp.float32),
        grid=(B,),
        in_specs=in_specs,
        out_specs=pl.BlockSpec((1, 1, n_pad), lambda b: (b, 0, 0)),
        compiler_params=pltpu.CompilerParams(
            dimension_semantics=("parallel",)),
    )(x, *flat)
    return y[:, 0, :out_seq_len]


# -----------------------------------------------------------------------------
# Deterministic parameter init (PyTorch nn.Linear-style uniform bounds)
# -----------------------------------------------------------------------------
def _init_linear(key, fan_in, fan_out, bias=True):
    k1, k2 = jax.random.split(key)
    bound = 1.0 / math.sqrt(fan_in)
    w = jax.random.uniform(k1, (fan_in, fan_out), jnp.float32, -bound, bound)
    b = jax.random.uniform(k2, (fan_out,), jnp.float32, -bound, bound) if bias else None
    return w, b


def _init_mha(key, dim_val, dim_attn, n_heads):
    keys = jax.random.split(key, 3 * n_heads + 1)
    wq = jnp.stack([_init_linear(keys[3 * h + 0], dim_val, dim_attn, bias=False)[0]
                    for h in range(n_heads)])             # (H, D, A)
    wk = jnp.stack([_init_linear(keys[3 * h + 1], dim_val, dim_attn, bias=False)[0]
                    for h in range(n_heads)])             # (H, D, A)
    wv = jnp.stack([_init_linear(keys[3 * h + 2], dim_val, dim_val, bias=False)[0]
                    for h in range(n_heads)])             # (H, D, Dv)
    # Fold the 1/sqrt(dim_attn) softmax scale into wq once at init.
    wq = wq * (1.0 / math.sqrt(dim_attn))
    # Output fc: PyTorch stacks heads on dim=-1 then flattens -> fc row index
    # d*H + h (interleaved).  Re-arrange once here into per-head (Dv, D) slabs
    # so the kernel can accumulate head contributions without lane shuffles.
    fc, _ = _init_linear(keys[-1], n_heads * dim_val, dim_val, bias=False)
    wo = fc.reshape(dim_val, n_heads, dim_val).transpose(1, 0, 2)   # (H, Dv, D)
    return {"wq": wq, "wk": wk, "wv": wv, "wo": wo}


def _ln_params(dim_val):
    return (jnp.ones((1, dim_val), jnp.float32), jnp.zeros((1, dim_val), jnp.float32))


def _init_encoder_layer(key, dim_val, dim_attn, n_heads):
    k = jax.random.split(key, 3)
    fc1_w, fc1_b = _init_linear(k[1], dim_val, dim_val)
    fc2_w, fc2_b = _init_linear(k[2], dim_val, dim_val)
    g1, b1 = _ln_params(dim_val)
    g2, b2 = _ln_params(dim_val)
    return {
        "attn": _init_mha(k[0], dim_val, dim_attn, n_heads),
        "fc1_w": fc1_w, "fc1_b": fc1_b.reshape(1, dim_val),
        "fc2_w": fc2_w, "fc2_b": fc2_b.reshape(1, dim_val),
        "norm1_g": g1, "norm1_b": b1, "norm2_g": g2, "norm2_b": b2,
    }


def _init_decoder_layer(key, dim_val, dim_attn, n_heads):
    k = jax.random.split(key, 4)
    fc1_w, fc1_b = _init_linear(k[2], dim_val, dim_val)
    fc2_w, fc2_b = _init_linear(k[3], dim_val, dim_val)
    g1, b1 = _ln_params(dim_val)
    g2, b2 = _ln_params(dim_val)
    g3, b3 = _ln_params(dim_val)
    return {
        "attn1": _init_mha(k[0], dim_val, dim_attn, n_heads),
        "attn2": _init_mha(k[1], dim_val, dim_attn, n_heads),
        "fc1_w": fc1_w, "fc1_b": fc1_b.reshape(1, dim_val),
        "fc2_w": fc2_w, "fc2_b": fc2_b.reshape(1, dim_val),
        "norm1_g": g1, "norm1_b": b1, "norm2_g": g2, "norm2_b": b2,
        "norm3_g": g3, "norm3_b": b3,
    }


def _make_positional_encoding(length, d_model):
    pos = jnp.arange(length, dtype=jnp.float32)[:, None]
    div = jnp.exp(jnp.arange(0, d_model, 2, dtype=jnp.float32)
                  * (-math.log(10000.0) / d_model))
    pe = jnp.zeros((length, d_model), jnp.float32)
    pe = pe.at[:, 0::2].set(jnp.sin(pos * div))
    pe = pe.at[:, 1::2].set(jnp.cos(pos * div))
    return pe


def init_transformer_params(key, dim_val, dim_attn, input_size, enc_seq_len,
                            dec_seq_len, out_seq_len, n_decoder_layers,
                            n_encoder_layers, n_heads):
    keys = jax.random.split(key, n_encoder_layers + n_decoder_layers + 3)
    encs = [_init_encoder_layer(keys[i], dim_val, dim_attn, n_heads)
            for i in range(n_encoder_layers)]
    decs = [_init_decoder_layer(keys[n_encoder_layers + i], dim_val, dim_attn, n_heads)
            for i in range(n_decoder_layers)]
    enc_in_w, enc_in_b = _init_linear(keys[-3], input_size, dim_val)
    dec_in_w, dec_in_b = _init_linear(keys[-2], input_size, dim_val)
    out_w, out_b = _init_linear(keys[-1], dec_seq_len * dim_val, out_seq_len)

    # Positional encoding folded with the encoder-input bias -> one (S, D) add.
    enc_in_bpe = _make_positional_encoding(enc_seq_len, dim_val) + enc_in_b[None, :]

    # Lane-dense final projection: pad output features to a multiple of 128
    # once at init (zero columns) and reshape rows to (dec_seq_len, D, Npad)
    # so the kernel never flattens the decoder activation.
    n_pad = ((out_seq_len + 127) // 128) * 128
    out_w = jnp.pad(out_w, ((0, 0), (0, n_pad - out_seq_len)))
    out_b = jnp.pad(out_b, ((0, n_pad - out_seq_len),))
    out_w = out_w.reshape(dec_seq_len, dim_val, n_pad)
    out_b = out_b.reshape(1, n_pad)

    return {
        "encs": encs, "decs": decs,
        "enc_in_w": enc_in_w, "enc_in_bpe": enc_in_bpe,
        "dec_in_w": dec_in_w, "dec_in_b": dec_in_b.reshape(1, dim_val),
        "out_w": out_w, "out_b": out_b,
    }


# -----------------------------------------------------------------------------
# Pure-JAX reference (same parameter representation) for correctness checking
# -----------------------------------------------------------------------------
def _reference_forward(params, x, out_seq_len):
    dec_seq_len = params["out_w"].shape[0]

    def ln(h, g, b):
        mu = h.mean(-1, keepdims=True)
        var = ((h - mu) ** 2).mean(-1, keepdims=True)
        return (h - mu) / jnp.sqrt(var + _LN_EPS) * g + b

    def elu(t):
        return jnp.where(t > 0, t, jnp.exp(jnp.minimum(t, 0.0)) - 1.0)

    def mha(xq, xkv, a):
        out = 0.0
        for h in range(a["wq"].shape[0]):
            q = xq @ a["wq"][h]; k = xkv @ a["wk"][h]; v = xkv @ a["wv"][h]
            p = jax.nn.softmax(q @ k.T, axis=-1)
            out = out + (p @ v) @ a["wo"][h]
        return out

    ys = []
    for bi in range(x.shape[0]):
        xb = x[bi]
        e = xb @ params["enc_in_w"] + params["enc_in_bpe"]
        for p in params["encs"]:
            e = ln(e + mha(e, e, p["attn"]), p["norm1_g"], p["norm1_b"])
            t = elu(e @ p["fc2_w"] + p["fc2_b"]) @ p["fc1_w"] + p["fc1_b"]
            e = ln(e + t, p["norm2_g"], p["norm2_b"])
        d = xb[-dec_seq_len:] @ params["dec_in_w"] + params["dec_in_b"]
        for p in params["decs"]:
            d = ln(d + mha(d, d, p["attn1"]), p["norm1_g"], p["norm1_b"])
            d = ln(d + mha(d, e, p["attn2"]), p["norm2_g"], p["norm2_b"])
            t = elu(d @ p["fc2_w"] + p["fc2_b"]) @ p["fc1_w"] + p["fc1_b"]
            d = ln(d + t, p["norm3_g"], p["norm3_b"])
        y = params["out_b"][0]
        for s in range(dec_seq_len):
            y = y + d[s] @ params["out_w"][s]
        ys.append(y[:out_seq_len])
    return jnp.stack(ys)


# -----------------------------------------------------------------------------
if __name__ == "__main__":
    # Small, self-consistent config
    dim_val = 32
    dim_attn = 16
    input_size = 4
    enc_seq_len = 16
    dec_seq_len = 8
    out_seq_len = 4
    n_encoder_layers = 1
    n_decoder_layers = 1
    n_heads = 2
    batch = 2

    root = jax.random.PRNGKey(0)
    k_param, k_x = jax.random.split(root)

    params = init_transformer_params(
        k_param, dim_val, dim_attn, input_size, enc_seq_len, dec_seq_len,
        out_seq_len, n_decoder_layers, n_encoder_layers, n_heads)

    x = jax.random.normal(k_x, (batch, enc_seq_len, input_size), jnp.float32)

    fwd = jax.jit(functools.partial(transformer_forward, out_seq_len=out_seq_len))
    y = jax.block_until_ready(fwd(params, x))

    assert y.shape == (batch, out_seq_len)
    assert bool(jnp.all(jnp.isfinite(y)))

    y_ref = _reference_forward(params, x, out_seq_len)
    assert bool(jnp.allclose(y, y_ref, rtol=2e-2, atol=2e-2)), \
        "Pallas forward mismatch vs pure-JAX reference"

    print("KERNEL_OK")
</pallas_src>

<mosaic_0001>
module attributes {stable_mosaic.version = 11 : i64} {
  func.func @kernel(%arg0: i32, %arg1: memref<1x16x4xf32, #tpu.memory_space<vmem>>, %arg2: memref<4x32xf32, #tpu.memory_space<vmem>>, %arg3: memref<16x32xf32, #tpu.memory_space<vmem>>, %arg4: memref<2x32x16xf32, #tpu.memory_space<vmem>>, %arg5: memref<2x32x16xf32, #tpu.memory_space<vmem>>, %arg6: memref<2x32x32xf32, #tpu.memory_space<vmem>>, %arg7: memref<2x32x32xf32, #tpu.memory_space<vmem>>, %arg8: memref<1x32xf32, #tpu.memory_space<vmem>>, %arg9: memref<1x32xf32, #tpu.memory_space<vmem>>, %arg10: memref<32x32xf32, #tpu.memory_space<vmem>>, %arg11: memref<1x32xf32, #tpu.memory_space<vmem>>, %arg12: memref<32x32xf32, #tpu.memory_space<vmem>>, %arg13: memref<1x32xf32, #tpu.memory_space<vmem>>, %arg14: memref<1x32xf32, #tpu.memory_space<vmem>>, %arg15: memref<1x32xf32, #tpu.memory_space<vmem>>, %arg16: memref<4x32xf32, #tpu.memory_space<vmem>>, %arg17: memref<1x32xf32, #tpu.memory_space<vmem>>, %arg18: memref<2x32x16xf32, #tpu.memory_space<vmem>>, %arg19: memref<2x32x16xf32, #tpu.memory_space<vmem>>, %arg20: memref<2x32x32xf32, #tpu.memory_space<vmem>>, %arg21: memref<2x32x32xf32, #tpu.memory_space<vmem>>, %arg22: memref<1x32xf32, #tpu.memory_space<vmem>>, %arg23: memref<1x32xf32, #tpu.memory_space<vmem>>, %arg24: memref<2x32x16xf32, #tpu.memory_space<vmem>>, %arg25: memref<2x32x16xf32, #tpu.memory_space<vmem>>, %arg26: memref<2x32x32xf32, #tpu.memory_space<vmem>>, %arg27: memref<2x32x32xf32, #tpu.memory_space<vmem>>, %arg28: memref<1x32xf32, #tpu.memory_space<vmem>>, %arg29: memref<1x32xf32, #tpu.memory_space<vmem>>, %arg30: memref<32x32xf32, #tpu.memory_space<vmem>>, %arg31: memref<1x32xf32, #tpu.memory_space<vmem>>, %arg32: memref<32x32xf32, #tpu.memory_space<vmem>>, %arg33: memref<1x32xf32, #tpu.memory_space<vmem>>, %arg34: memref<1x32xf32, #tpu.memory_space<vmem>>, %arg35: memref<1x32xf32, #tpu.memory_space<vmem>>, %arg36: memref<8x32x128xf32, #tpu.memory_space<vmem>>, %arg37: memref<1x128xf32, #tpu.memory_space<vmem>>, %arg38: memref<1x1x128xf32, #tpu.memory_space<vmem>>) attributes {dimension_semantics = [#tpu.dimension_semantics<parallel>], iteration_bounds = array<i64: 2>, scalar_prefetch = 0 : i64, scratch_operands = 0 : i64, tpu.core_type = #tpu.core_type<tc>, window_params = [{transform_indices = @transform_0, window_bounds = array<i64: 1, 16, 4>}, {pipeline_mode = #tpu.pipeline_mode<synchronous>, transform_indices = @transform_1, window_bounds = array<i64: 4, 32>}, {pipeline_mode = #tpu.pipeline_mode<synchronous>, transform_indices = @transform_2, window_bounds = array<i64: 16, 32>}, {pipeline_mode = #tpu.pipeline_mode<synchronous>, transform_indices = @transform_3, window_bounds = array<i64: 2, 32, 16>}, {pipeline_mode = #tpu.pipeline_mode<synchronous>, transform_indices = @transform_4, window_bounds = array<i64: 2, 32, 16>}, {pipeline_mode = #tpu.pipeline_mode<synchronous>, transform_indices = @transform_5, window_bounds = array<i64: 2, 32, 32>}, {pipeline_mode = #tpu.pipeline_mode<synchronous>, transform_indices = @transform_6, window_bounds = array<i64: 2, 32, 32>}, {pipeline_mode = #tpu.pipeline_mode<synchronous>, transform_indices = @transform_7, window_bounds = array<i64: 1, 32>}, {pipeline_mode = #tpu.pipeline_mode<synchronous>, transform_indices = @transform_8, window_bounds = array<i64: 1, 32>}, {pipeline_mode = #tpu.pipeline_mode<synchronous>, transform_indices = @transform_9, window_bounds = array<i64: 32, 32>}, {pipeline_mode = #tpu.pipeline_mode<synchronous>, transform_indices = @transform_10, window_bounds = array<i64: 1, 32>}, {pipeline_mode = #tpu.pipeline_mode<synchronous>, transform_indices = @transform_11, window_bounds = array<i64: 32, 32>}, {pipeline_mode = #tpu.pipeline_mode<synchronous>, transform_indices = @transform_12, window_bounds = array<i64: 1, 32>}, {pipeline_mode = #tpu.pipeline_mode<synchronous>, transform_indices = @transform_13, window_bounds = array<i64: 1, 32>}, {pipeline_mode = #tpu.pipeline_mode<synchronous>, transform_indices = @transform_14, window_bounds = array<i64: 1, 32>}, {pipeline_mode = #tpu.pipeline_mode<synchronous>, transform_indices = @transform_15, window_bounds = array<i64: 4, 32>}, {pipeline_mode = #tpu.pipeline_mode<synchronous>, transform_indices = @transform_16, window_bounds = array<i64: 1, 32>}, {pipeline_mode = #tpu.pipeline_mode<synchronous>, transform_indices = @transform_17, window_bounds = array<i64: 2, 32, 16>}, {pipeline_mode = #tpu.pipeline_mode<synchronous>, transform_indices = @transform_18, window_bounds = array<i64: 2, 32, 16>}, {pipeline_mode = #tpu.pipeline_mode<synchronous>, transform_indices = @transform_19, window_bounds = array<i64: 2, 32, 32>}, {pipeline_mode = #tpu.pipeline_mode<synchronous>, transform_indices = @transform_20, window_bounds = array<i64: 2, 32, 32>}, {pipeline_mode = #tpu.pipeline_mode<synchronous>, transform_indices = @transform_21, window_bounds = array<i64: 1, 32>}, {pipeline_mode = #tpu.pipeline_mode<synchronous>, transform_indices = @transform_22, window_bounds = array<i64: 1, 32>}, {pipeline_mode = #tpu.pipeline_mode<synchronous>, transform_indices = @transform_23, window_bounds = array<i64: 2, 32, 16>}, {pipeline_mode = #tpu.pipeline_mode<synchronous>, transform_indices = @transform_24, window_bounds = array<i64: 2, 32, 16>}, {pipeline_mode = #tpu.pipeline_mode<synchronous>, transform_indices = @transform_25, window_bounds = array<i64: 2, 32, 32>}, {pipeline_mode = #tpu.pipeline_mode<synchronous>, transform_indices = @transform_26, window_bounds = array<i64: 2, 32, 32>}, {pipeline_mode = #tpu.pipeline_mode<synchronous>, transform_indices = @transform_27, window_bounds = array<i64: 1, 32>}, {pipeline_mode = #tpu.pipeline_mode<synchronous>, transform_indices = @transform_28, window_bounds = array<i64: 1, 32>}, {pipeline_mode = #tpu.pipeline_mode<synchronous>, transform_indices = @transform_29, window_bounds = array<i64: 32, 32>}, {pipeline_mode = #tpu.pipeline_mode<synchronous>, transform_indices = @transform_30, window_bounds = array<i64: 1, 32>}, {pipeline_mode = #tpu.pipeline_mode<synchronous>, transform_indices = @transform_31, window_bounds = array<i64: 32, 32>}, {pipeline_mode = #tpu.pipeline_mode<synchronous>, transform_indices = @transform_32, window_bounds = array<i64: 1, 32>}, {pipeline_mode = #tpu.pipeline_mode<synchronous>, transform_indices = @transform_33, window_bounds = array<i64: 1, 32>}, {pipeline_mode = #tpu.pipeline_mode<synchronous>, transform_indices = @transform_34, window_bounds = array<i64: 1, 32>}, {pipeline_mode = #tpu.pipeline_mode<synchronous>, transform_indices = @transform_35, window_bounds = array<i64: 8, 32, 128>}, {pipeline_mode = #tpu.pipeline_mode<synchronous>, transform_indices = @transform_36, window_bounds = array<i64: 1, 128>}, {transform_indices = @transform_37, window_bounds = array<i64: 1, 1, 128>}]} {
    %c0 = arith.constant 0 : index
    %c0_0 = arith.constant 0 : index
    %c0_1 = arith.constant 0 : index
    %0 = vector.load %arg1[%c0, %c0_0, %c0_1] : memref<1x16x4xf32, #tpu.memory_space<vmem>>, vector<1x16x4xf32>
    %1 = vector.shape_cast %0 : vector<1x16x4xf32> to vector<16x4xf32>
    %c0_2 = arith.constant 0 : index
    %c0_3 = arith.constant 0 : index
    %2 = vector.load %arg2[%c0_2, %c0_3] : memref<4x32xf32, #tpu.memory_space<vmem>>, vector<4x32xf32>
    %cst = arith.constant dense<0.000000e+00> : vector<16x32xf32>
    %3 = tpu.matmul %1, %2, %cst {dimension_numbers = #tpu.dot_dimension_numbers<[1], [0], [0], [1], [0, 0, 1, 1], [], []>} : vector<16x4xf32>, vector<4x32xf32>, vector<16x32xf32> -> vector<16x32xf32>
    %c0_4 = arith.constant 0 : index
    %c0_5 = arith.constant 0 : index
    %4 = vector.load %arg3[%c0_4, %c0_5] : memref<16x32xf32, #tpu.memory_space<vmem>>, vector<16x32xf32>
    %5 = arith.addf %3, %4 : vector<16x32xf32>
    %c0_6 = arith.constant 0 : index
    %c0_7 = arith.constant 0 : index
    %c0_8 = arith.constant 0 : index
    %6 = vector.load %arg4[%c0_6, %c0_7, %c0_8] : memref<2x32x16xf32, #tpu.memory_space<vmem>>, vector<1x32x16xf32>
    %7 = vector.shape_cast %6 : vector<1x32x16xf32> to vector<32x16xf32>
    %cst_9 = arith.constant dense<0.000000e+00> : vector<16x16xf32>
    %8 = tpu.matmul %5, %7, %cst_9 {dimension_numbers = #tpu.dot_dimension_numbers<[1], [0], [0], [1], [0, 0, 1, 1], [], []>} : vector<16x32xf32>, vector<32x16xf32>, vector<16x16xf32> -> vector<16x16xf32>
    %c0_10 = arith.constant 0 : index
    %c0_11 = arith.constant 0 : index
    %c0_12 = arith.constant 0 : index
    %9 = vector.load %arg5[%c0_10, %c0_11, %c0_12] : memref<2x32x16xf32, #tpu.memory_space<vmem>>, vector<1x32x16xf32>
    %10 = vector.shape_cast %9 : vector<1x32x16xf32> to vector<32x16xf32>
    %cst_13 = arith.constant dense<0.000000e+00> : vector<16x16xf32>
    %11 = tpu.matmul %5, %10, %cst_13 {dimension_numbers = #tpu.dot_dimension_numbers<[1], [0], [0], [1], [0, 0, 1, 1], [], []>} : vector<16x32xf32>, vector<32x16xf32>, vector<16x16xf32> -> vector<16x16xf32>
    %c0_14 = arith.constant 0 : index
    %c0_15 = arith.constant 0 : index
    %c0_16 = arith.constant 0 : index
    %12 = vector.load %arg6[%c0_14, %c0_15, %c0_16] : memref<2x32x32xf32, #tpu.memory_space<vmem>>, vector<1x32x32xf32>
    %13 = vector.shape_cast %12 : vector<1x32x32xf32> to vector<32x32xf32>
    %cst_17 = arith.constant dense<0.000000e+00> : vector<16x32xf32>
    %14 = tpu.matmul %5, %13, %cst_17 {dimension_numbers = #tpu.dot_dimension_numbers<[1], [0], [0], [1], [0, 0, 1, 1], [], []>} : vector<16x32xf32>, vector<32x32xf32>, vector<16x32xf32> -> vector<16x32xf32>
    %cst_18 = arith.constant dense<0.000000e+00> : vector<16x16xf32>
    %15 = tpu.matmul %8, %11, %cst_18 {dimension_numbers = #tpu.dot_dimension_numbers<[1], [1], [0], [0], [0, 0, 1, 0], [], []>} : vector<16x16xf32>, vector<16x16xf32>, vector<16x16xf32> -> vector<16x16xf32>
    %cst_19 = arith.constant dense<0xFF800000> : vector<16xf32>
    %16 = vector.multi_reduction <maximumf>, %15, %cst_19 [1] : vector<16x16xf32> to vector<16xf32>
    %17 = vector.shape_cast %16 : vector<16xf32> to vector<16x1xf32>
    %18 = vector.broadcast %17 : vector<16x1xf32> to vector<16x16xf32>
    %19 = arith.subf %15, %18 : vector<16x16xf32>
    %20 = math.exp %19 : vector<16x16xf32>
    %cst_20 = arith.constant dense<0.000000e+00> : vector<16xf32>
    %21 = vector.multi_reduction <add>, %20, %cst_20 [1] : vector<16x16xf32> to vector<16xf32>
    %22 = vector.shape_cast %21 : vector<16xf32> to vector<16x1xf32>
    %23 = tpu.reciprocal %22 {approx = true} : vector<16x1xf32> -> vector<16x1xf32>
    %24 = vector.broadcast %23 : vector<16x1xf32> to vector<16x16xf32>
    %25 = arith.mulf %20, %24 : vector<16x16xf32>
    %cst_21 = arith.constant dense<0.000000e+00> : vector<16x32xf32>
    %26 = tpu.matmul %25, %14, %cst_21 {dimension_numbers = #tpu.dot_dimension_numbers<[1], [0], [0], [1], [0, 0, 1, 1], [], []>} : vector<16x16xf32>, vector<16x32xf32>, vector<16x32xf32> -> vector<16x32xf32>
    %c0_22 = arith.constant 0 : index
    %c0_23 = arith.constant 0 : index
    %c0_24 = arith.constant 0 : index
    %27 = vector.load %arg7[%c0_22, %c0_23, %c0_24] : memref<2x32x32xf32, #tpu.memory_space<vmem>>, vector<1x32x32xf32>
    %28 = vector.shape_cast %27 : vector<1x32x32xf32> to vector<32x32xf32>
    %cst_25 = arith.constant dense<0.000000e+00> : vector<16x32xf32>
    %29 = tpu.matmul %26, %28, %cst_25 {dimension_numbers = #tpu.dot_dimension_numbers<[1], [0], [0], [1], [0, 0, 1, 1], [], []>} : vector<16x32xf32>, vector<32x32xf32>, vector<16x32xf32> -> vector<16x32xf32>
    %c1 = arith.constant 1 : index
    %c0_26 = arith.constant 0 : index
    %c0_27 = arith.constant 0 : index
    %30 = vector.load %arg4[%c1, %c0_26, %c0_27] : memref<2x32x16xf32, #tpu.memory_space<vmem>>, vector<1x32x16xf32>
    %31 = vector.shape_cast %30 : vector<1x32x16xf32> to vector<32x16xf32>
    %cst_28 = arith.constant dense<0.000000e+00> : vector<16x16xf32>
    %32 = tpu.matmul %5, %31, %cst_28 {dimension_numbers = #tpu.dot_dimension_numbers<[1], [0], [0], [1], [0, 0, 1, 1], [], []>} : vector<16x32xf32>, vector<32x16xf32>, vector<16x16xf32> -> vector<16x16xf32>
    %c1_29 = arith.constant 1 : index
    %c0_30 = arith.constant 0 : index
    %c0_31 = arith.constant 0 : index
    %33 = vector.load %arg5[%c1_29, %c0_30, %c0_31] : memref<2x32x16xf32, #tpu.memory_space<vmem>>, vector<1x32x16xf32>
    %34 = vector.shape_cast %33 : vector<1x32x16xf32> to vector<32x16xf32>
    %cst_32 = arith.constant dense<0.000000e+00> : vector<16x16xf32>
    %35 = tpu.matmul %5, %34, %cst_32 {dimension_numbers = #tpu.dot_dimension_numbers<[1], [0], [0], [1], [0, 0, 1, 1], [], []>} : vector<16x32xf32>, vector<32x16xf32>, vector<16x16xf32> -> vector<16x16xf32>
    %c1_33 = arith.constant 1 : index
    %c0_34 = arith.constant 0 : index
    %c0_35 = arith.constant 0 : index
    %36 = vector.load %arg6[%c1_33, %c0_34, %c0_35] : memref<2x32x32xf32, #tpu.memory_space<vmem>>, vector<1x32x32xf32>
    %37 = vector.shape_cast %36 : vector<1x32x32xf32> to vector<32x32xf32>
    %cst_36 = arith.constant dense<0.000000e+00> : vector<16x32xf32>
    %38 = tpu.matmul %5, %37, %cst_36 {dimension_numbers = #tpu.dot_dimension_numbers<[1], [0], [0], [1], [0, 0, 1, 1], [], []>} : vector<16x32xf32>, vector<32x32xf32>, vector<16x32xf32> -> vector<16x32xf32>
    %cst_37 = arith.constant dense<0.000000e+00> : vector<16x16xf32>
    %39 = tpu.matmul %32, %35, %cst_37 {dimension_numbers = #tpu.dot_dimension_numbers<[1], [1], [0], [0], [0, 0, 1, 0], [], []>} : vector<16x16xf32>, vector<16x16xf32>, vector<16x16xf32> -> vector<16x16xf32>
    %cst_38 = arith.constant dense<0xFF800000> : vector<16xf32>
    %40 = vector.multi_reduction <maximumf>, %39, %cst_38 [1] : vector<16x16xf32> to vector<16xf32>
    %41 = vector.shape_cast %40 : vector<16xf32> to vector<16x1xf32>
    %42 = vector.broadcast %41 : vector<16x1xf32> to vector<16x16xf32>
    %43 = arith.subf %39, %42 : vector<16x16xf32>
    %44 = math.exp %43 : vector<16x16xf32>
    %cst_39 = arith.constant dense<0.000000e+00> : vector<16xf32>
    %45 = vector.multi_reduction <add>, %44, %cst_39 [1] : vector<16x16xf32> to vector<16xf32>
    %46 = vector.shape_cast %45 : vector<16xf32> to vector<16x1xf32>
    %47 = tpu.reciprocal %46 {approx = true} : vector<16x1xf32> -> vector<16x1xf32>
    %48 = vector.broadcast %47 : vector<16x1xf32> to vector<16x16xf32>
    %49 = arith.mulf %44, %48 : vector<16x16xf32>
    %cst_40 = arith.constant dense<0.000000e+00> : vector<16x32xf32>
    %50 = tpu.matmul %49, %38, %cst_40 {dimension_numbers = #tpu.dot_dimension_numbers<[1], [0], [0], [1], [0, 0, 1, 1], [], []>} : vector<16x16xf32>, vector<16x32xf32>, vector<16x32xf32> -> vector<16x32xf32>
    %c1_41 = arith.constant 1 : index
    %c0_42 = arith.constant 0 : index
    %c0_43 = arith.constant 0 : index
    %51 = vector.load %arg7[%c1_41, %c0_42, %c0_43] : memref<2x32x32xf32, #tpu.memory_space<vmem>>, vector<1x32x32xf32>
    %52 = vector.shape_cast %51 : vector<1x32x32xf32> to vector<32x32xf32>
    %cst_44 = arith.constant dense<0.000000e+00> : vector<16x32xf32>
    %53 = tpu.matmul %50, %52, %cst_44 {dimension_numbers = #tpu.dot_dimension_numbers<[1], [0], [0], [1], [0, 0, 1, 1], [], []>} : vector<16x32xf32>, vector<32x32xf32>, vector<16x32xf32> -> vector<16x32xf32>
    %54 = arith.addf %29, %53 : vector<16x32xf32>
    %55 = arith.addf %5, %54 : vector<16x32xf32>
    %c0_45 = arith.constant 0 : index
    %c0_46 = arith.constant 0 : index
    %56 = vector.load %arg8[%c0_45, %c0_46] : memref<1x32xf32, #tpu.memory_space<vmem>>, vector<1x32xf32>
    %c0_47 = arith.constant 0 : index
    %c0_48 = arith.constant 0 : index
    %57 = vector.load %arg9[%c0_47, %c0_48] : memref<1x32xf32, #tpu.memory_space<vmem>>, vector<1x32xf32>
    %cst_49 = arith.constant dense<0.000000e+00> : vector<16xf32>
    %58 = vector.multi_reduction <add>, %55, %cst_49 [1] : vector<16x32xf32> to vector<16xf32>
    %59 = vector.shape_cast %58 : vector<16xf32> to vector<16x1xf32>
    %cst_50 = arith.constant 3.200000e+01 : f32
    %60 = vector.broadcast %cst_50 : f32 to vector<16x1xf32>
    %61 = arith.divf %59, %60 : vector<16x1xf32>
    %62 = vector.broadcast %61 : vector<16x1xf32> to vector<16x32xf32>
    %63 = arith.subf %55, %62 : vector<16x32xf32>
    %64 = arith.mulf %63, %63 : vector<16x32xf32>
    %cst_51 = arith.constant dense<0.000000e+00> : vector<16xf32>
    %65 = vector.multi_reduction <add>, %64, %cst_51 [1] : vector<16x32xf32> to vector<16xf32>
    %66 = vector.shape_cast %65 : vector<16xf32> to vector<16x1xf32>
    %cst_52 = arith.constant 3.200000e+01 : f32
    %67 = vector.broadcast %cst_52 : f32 to vector<16x1xf32>
    %68 = arith.divf %66, %67 : vector<16x1xf32>
    %cst_53 = arith.constant 9.99999974E-6 : f32
    %69 = vector.broadcast %cst_53 : f32 to vector<16x1xf32>
    %70 = arith.addf %68, %69 : vector<16x1xf32>
    %71 = math.rsqrt %70 : vector<16x1xf32>
    %72 = vector.broadcast %71 : vector<16x1xf32> to vector<16x32xf32>
    %73 = arith.mulf %63, %72 : vector<16x32xf32>
    %74 = vector.broadcast %56 : vector<1x32xf32> to vector<16x32xf32>
    %75 = arith.mulf %73, %74 : vector<16x32xf32>
    %76 = vector.broadcast %57 : vector<1x32xf32> to vector<16x32xf32>
    %77 = arith.addf %75, %76 : vector<16x32xf32>
    %c0_54 = arith.constant 0 : index
    %c0_55 = arith.constant 0 : index
    %78 = vector.load %arg10[%c0_54, %c0_55] : memref<32x32xf32, #tpu.memory_space<vmem>>, vector<32x32xf32>
    %cst_56 = arith.constant dense<0.000000e+00> : vector<16x32xf32>
    %79 = tpu.matmul %77, %78, %cst_56 {dimension_numbers = #tpu.dot_dimension_numbers<[1], [0], [0], [1], [0, 0, 1, 1], [], []>} : vector<16x32xf32>, vector<32x32xf32>, vector<16x32xf32> -> vector<16x32xf32>
    %c0_57 = arith.constant 0 : index
    %c0_58 = arith.constant 0 : index
    %80 = vector.load %arg11[%c0_57, %c0_58] : memref<1x32xf32, #tpu.memory_space<vmem>>, vector<1x32xf32>
    %81 = vector.broadcast %80 : vector<1x32xf32> to vector<16x32xf32>
    %82 = arith.addf %79, %81 : vector<16x32xf32>
    %cst_59 = arith.constant 0.000000e+00 : f32
    %83 = vector.broadcast %cst_59 : f32 to vector<16x32xf32>
    %84 = arith.cmpf ogt, %82, %83 : vector<16x32xf32>
    %cst_60 = arith.constant 0.000000e+00 : f32
    %85 = vector.broadcast %cst_60 : f32 to vector<16x32xf32>
    %86 = arith.minimumf %82, %85 : vector<16x32xf32>
    %87 = math.exp %86 : vector<16x32xf32>
    %cst_61 = arith.constant 1.000000e+00 : f32
    %88 = vector.broadcast %cst_61 : f32 to vector<16x32xf32>
    %89 = arith.subf %87, %88 : vector<16x32xf32>
    %90 = arith.select %84, %82, %89 : vector<16x32xi1>, vector<16x32xf32>
    %c0_62 = arith.constant 0 : index
    %c0_63 = arith.constant 0 : index
    %91 = vector.load %arg12[%c0_62, %c0_63] : memref<32x32xf32, #tpu.memory_space<vmem>>, vector<32x32xf32>
    %cst_64 = arith.constant dense<0.000000e+00> : vector<16x32xf32>
    %92 = tpu.matmul %90, %91, %cst_64 {dimension_numbers = #tpu.dot_dimension_numbers<[1], [0], [0], [1], [0, 0, 1, 1], [], []>} : vector<16x32xf32>, vector<32x32xf32>, vector<16x32xf32> -> vector<16x32xf32>
    %c0_65 = arith.constant 0 : index
    %c0_66 = arith.constant 0 : index
    %93 = vector.load %arg13[%c0_65, %c0_66] : memref<1x32xf32, #tpu.memory_space<vmem>>, vector<1x32xf32>
    %94 = vector.broadcast %93 : vector<1x32xf32> to vector<16x32xf32>
    %95 = arith.addf %92, %94 : vector<16x32xf32>
    %96 = arith.addf %77, %95 : vector<16x32xf32>
    %c0_67 = arith.constant 0 : index
    %c0_68 = arith.constant 0 : index
    %97 = vector.load %arg14[%c0_67, %c0_68] : memref<1x32xf32, #tpu.memory_space<vmem>>, vector<1x32xf32>
    %c0_69 = arith.constant 0 : index
    %c0_70 = arith.constant 0 : index
    %98 = vector.load %arg15[%c0_69, %c0_70] : memref<1x32xf32, #tpu.memory_space<vmem>>, vector<1x32xf32>
    %cst_71 = arith.constant dense<0.000000e+00> : vector<16xf32>
    %99 = vector.multi_reduction <add>, %96, %cst_71 [1] : vector<16x32xf32> to vector<16xf32>
    %100 = vector.shape_cast %99 : vector<16xf32> to vector<16x1xf32>
    %cst_72 = arith.constant 3.200000e+01 : f32
    %101 = vector.broadcast %cst_72 : f32 to vector<16x1xf32>
    %102 = arith.divf %100, %101 : vector<16x1xf32>
    %103 = vector.broadcast %102 : vector<16x1xf32> to vector<16x32xf32>
    %104 = arith.subf %96, %103 : vector<16x32xf32>
    %105 = arith.mulf %104, %104 : vector<16x32xf32>
    %cst_73 = arith.constant dense<0.000000e+00> : vector<16xf32>
    %106 = vector.multi_reduction <add>, %105, %cst_73 [1] : vector<16x32xf32> to vector<16xf32>
    %107 = vector.shape_cast %106 : vector<16xf32> to vector<16x1xf32>
    %cst_74 = arith.constant 3.200000e+01 : f32
    %108 = vector.broadcast %cst_74 : f32 to vector<16x1xf32>
    %109 = arith.divf %107, %108 : vector<16x1xf32>
    %cst_75 = arith.constant 9.99999974E-6 : f32
    %110 = vector.broadcast %cst_75 : f32 to vector<16x1xf32>
    %111 = arith.addf %109, %110 : vector<16x1xf32>
    %112 = math.rsqrt %111 : vector<16x1xf32>
    %113 = vector.broadcast %112 : vector<16x1xf32> to vector<16x32xf32>
    %114 = arith.mulf %104, %113 : vector<16x32xf32>
    %115 = vector.broadcast %97 : vector<1x32xf32> to vector<16x32xf32>
    %116 = arith.mulf %114, %115 : vector<16x32xf32>
    %117 = vector.broadcast %98 : vector<1x32xf32> to vector<16x32xf32>
    %118 = arith.addf %116, %117 : vector<16x32xf32>
    %119 = vector.extract_strided_slice %1 {offsets = [8, 0], sizes = [8, 4], strides = [1, 1]} : vector<16x4xf32> to vector<8x4xf32>
    %c0_76 = arith.constant 0 : index
    %c0_77 = arith.constant 0 : index
    %120 = vector.load %arg16[%c0_76, %c0_77] : memref<4x32xf32, #tpu.memory_space<vmem>>, vector<4x32xf32>
    %cst_78 = arith.constant dense<0.000000e+00> : vector<8x32xf32>
    %121 = tpu.matmul %119, %120, %cst_78 {dimension_numbers = #tpu.dot_dimension_numbers<[1], [0], [0], [1], [0, 0, 1, 1], [], []>} : vector<8x4xf32>, vector<4x32xf32>, vector<8x32xf32> -> vector<8x32xf32>
    %c0_79 = arith.constant 0 : index
    %c0_80 = arith.constant 0 : index
    %122 = vector.load %arg17[%c0_79, %c0_80] : memref<1x32xf32, #tpu.memory_space<vmem>>, vector<1x32xf32>
    %123 = vector.broadcast %122 : vector<1x32xf32> to vector<8x32xf32>
    %124 = arith.addf %121, %123 : vector<8x32xf32>
    %c0_81 = arith.constant 0 : index
    %c0_82 = arith.constant 0 : index
    %c0_83 = arith.constant 0 : index
    %125 = vector.load %arg18[%c0_81, %c0_82, %c0_83] : memref<2x32x16xf32, #tpu.memory_space<vmem>>, vector<1x32x16xf32>
    %126 = vector.shape_cast %125 : vector<1x32x16xf32> to vector<32x16xf32>
    %cst_84 = arith.constant dense<0.000000e+00> : vector<8x16xf32>
    %127 = tpu.matmul %124, %126, %cst_84 {dimension_numbers = #tpu.dot_dimension_numbers<[1], [0], [0], [1], [0, 0, 1, 1], [], []>} : vector<8x32xf32>, vector<32x16xf32>, vector<8x16xf32> -> vector<8x16xf32>
    %c0_85 = arith.constant 0 : index
    %c0_86 = arith.constant 0 : index
    %c0_87 = arith.constant 0 : index
    %128 = vector.load %arg19[%c0_85, %c0_86, %c0_87] : memref<2x32x16xf32, #tpu.memory_space<vmem>>, vector<1x32x16xf32>
    %129 = vector.shape_cast %128 : vector<1x32x16xf32> to vector<32x16xf32>
    %cst_88 = arith.constant dense<0.000000e+00> : vector<8x16xf32>
    %130 = tpu.matmul %124, %129, %cst_88 {dimension_numbers = #tpu.dot_dimension_numbers<[1], [0], [0], [1], [0, 0, 1, 1], [], []>} : vector<8x32xf32>, vector<32x16xf32>, vector<8x16xf32> -> vector<8x16xf32>
    %c0_89 = arith.constant 0 : index
    %c0_90 = arith.constant 0 : index
    %c0_91 = arith.constant 0 : index
    %131 = vector.load %arg20[%c0_89, %c0_90, %c0_91] : memref<2x32x32xf32, #tpu.memory_space<vmem>>, vector<1x32x32xf32>
    %132 = vector.shape_cast %131 : vector<1x32x32xf32> to vector<32x32xf32>
    %cst_92 = arith.constant dense<0.000000e+00> : vector<8x32xf32>
    %133 = tpu.matmul %124, %132, %cst_92 {dimension_numbers = #tpu.dot_dimension_numbers<[1], [0], [0], [1], [0, 0, 1, 1], [], []>} : vector<8x32xf32>, vector<32x32xf32>, vector<8x32xf32> -> vector<8x32xf32>
    %cst_93 = arith.constant dense<0.000000e+00> : vector<8x8xf32>
    %134 = tpu.matmul %127, %130, %cst_93 {dimension_numbers = #tpu.dot_dimension_numbers<[1], [1], [0], [0], [0, 0, 1, 0], [], []>} : vector<8x16xf32>, vector<8x16xf32>, vector<8x8xf32> -> vector<8x8xf32>
    %cst_94 = arith.constant dense<0xFF800000> : vector<8xf32>
    %135 = vector.multi_reduction <maximumf>, %134, %cst_94 [1] : vector<8x8xf32> to vector<8xf32>
    %136 = vector.shape_cast %135 : vector<8xf32> to vector<8x1xf32>
    %137 = vector.broadcast %136 : vector<8x1xf32> to vector<8x8xf32>
    %138 = arith.subf %134, %137 : vector<8x8xf32>
    %139 = math.exp %138 : vector<8x8xf32>
    %cst_95 = arith.constant dense<0.000000e+00> : vector<8xf32>
    %140 = vector.multi_reduction <add>, %139, %cst_95 [1] : vector<8x8xf32> to vector<8xf32>
    %141 = vector.shape_cast %140 : vector<8xf32> to vector<8x1xf32>
    %142 = tpu.reciprocal %141 {approx = true} : vector<8x1xf32> -> vector<8x1xf32>
    %143 = vector.broadcast %142 : vector<8x1xf32> to vector<8x8xf32>
    %144 = arith.mulf %139, %143 : vector<8x8xf32>
    %cst_96 = arith.constant dense<0.000000e+00> : vector<8x32xf32>
    %145 = tpu.matmul %144, %133, %cst_96 {dimension_numbers = #tpu.dot_dimension_numbers<[1], [0], [0], [1], [0, 0, 1, 1], [], []>} : vector<8x8xf32>, vector<8x32xf32>, vector<8x32xf32> -> vector<8x32xf32>
    %c0_97 = arith.constant 0 : index
    %c0_98 = arith.constant 0 : index
    %c0_99 = arith.constant 0 : index
    %146 = vector.load %arg21[%c0_97, %c0_98, %c0_99] : memref<2x32x32xf32, #tpu.memory_space<vmem>>, vector<1x32x32xf32>
    %147 = vector.shape_cast %146 : vector<1x32x32xf32> to vector<32x32xf32>
    %cst_100 = arith.constant dense<0.000000e+00> : vector<8x32xf32>
    %148 = tpu.matmul %145, %147, %cst_100 {dimension_numbers = #tpu.dot_dimension_numbers<[1], [0], [0], [1], [0, 0, 1, 1], [], []>} : vector<8x32xf32>, vector<32x32xf32>, vector<8x32xf32> -> vector<8x32xf32>
    %c1_101 = arith.constant 1 : index
    %c0_102 = arith.constant 0 : index
    %c0_103 = arith.constant 0 : index
    %149 = vector.load %arg18[%c1_101, %c0_102, %c0_103] : memref<2x32x16xf32, #tpu.memory_space<vmem>>, vector<1x32x16xf32>
    %150 = vector.shape_cast %149 : vector<1x32x16xf32> to vector<32x16xf32>
    %cst_104 = arith.constant dense<0.000000e+00> : vector<8x16xf32>
    %151 = tpu.matmul %124, %150, %cst_104 {dimension_numbers = #tpu.dot_dimension_numbers<[1], [0], [0], [1], [0, 0, 1, 1], [], []>} : vector<8x32xf32>, vector<32x16xf32>, vector<8x16xf32> -> vector<8x16xf32>
    %c1_105 = arith.constant 1 : index
    %c0_106 = arith.constant 0 : index
    %c0_107 = arith.constant 0 : index
    %152 = vector.load %arg19[%c1_105, %c0_106, %c0_107] : memref<2x32x16xf32, #tpu.memory_space<vmem>>, vector<1x32x16xf32>
    %153 = vector.shape_cast %152 : vector<1x32x16xf32> to vector<32x16xf32>
    %cst_108 = arith.constant dense<0.000000e+00> : vector<8x16xf32>
    %154 = tpu.matmul %124, %153, %cst_108 {dimension_numbers = #tpu.dot_dimension_numbers<[1], [0], [0], [1], [0, 0, 1, 1], [], []>} : vector<8x32xf32>, vector<32x16xf32>, vector<8x16xf32> -> vector<8x16xf32>
    %c1_109 = arith.constant 1 : index
    %c0_110 = arith.constant 0 : index
    %c0_111 = arith.constant 0 : index
    %155 = vector.load %arg20[%c1_109, %c0_110, %c0_111] : memref<2x32x32xf32, #tpu.memory_space<vmem>>, vector<1x32x32xf32>
    %156 = vector.shape_cast %155 : vector<1x32x32xf32> to vector<32x32xf32>
    %cst_112 = arith.constant dense<0.000000e+00> : vector<8x32xf32>
    %157 = tpu.matmul %124, %156, %cst_112 {dimension_numbers = #tpu.dot_dimension_numbers<[1], [0], [0], [1], [0, 0, 1, 1], [], []>} : vector<8x32xf32>, vector<32x32xf32>, vector<8x32xf32> -> vector<8x32xf32>
    %cst_113 = arith.constant dense<0.000000e+00> : vector<8x8xf32>
    %158 = tpu.matmul %151, %154, %cst_113 {dimension_numbers = #tpu.dot_dimension_numbers<[1], [1], [0], [0], [0, 0, 1, 0], [], []>} : vector<8x16xf32>, vector<8x16xf32>, vector<8x8xf32> -> vector<8x8xf32>
    %cst_114 = arith.constant dense<0xFF800000> : vector<8xf32>
    %159 = vector.multi_reduction <maximumf>, %158, %cst_114 [1] : vector<8x8xf32> to vector<8xf32>
    %160 = vector.shape_cast %159 : vector<8xf32> to vector<8x1xf32>
    %161 = vector.broadcast %160 : vector<8x1xf32> to vector<8x8xf32>
    %162 = arith.subf %158, %161 : vector<8x8xf32>
    %163 = math.exp %162 : vector<8x8xf32>
    %cst_115 = arith.constant dense<0.000000e+00> : vector<8xf32>
    %164 = vector.multi_reduction <add>, %163, %cst_115 [1] : vector<8x8xf32> to vector<8xf32>
    %165 = vector.shape_cast %164 : vector<8xf32> to vector<8x1xf32>
    %166 = tpu.reciprocal %165 {approx = true} : vector<8x1xf32> -> vector<8x1xf32>
    %167 = vector.broadcast %166 : vector<8x1xf32> to vector<8x8xf32>
    %168 = arith.mulf %163, %167 : vector<8x8xf32>
    %cst_116 = arith.constant dense<0.000000e+00> : vector<8x32xf32>
    %169 = tpu.matmul %168, %157, %cst_116 {dimension_numbers = #tpu.dot_dimension_numbers<[1], [0], [0], [1], [0, 0, 1, 1], [], []>} : vector<8x8xf32>, vector<8x32xf32>, vector<8x32xf32> -> vector<8x32xf32>
    %c1_117 = arith.constant 1 : index
    %c0_118 = arith.constant 0 : index
    %c0_119 = arith.constant 0 : index
    %170 = vector.load %arg21[%c1_117, %c0_118, %c0_119] : memref<2x32x32xf32, #tpu.memory_space<vmem>>, vector<1x32x32xf32>
    %171 = vector.shape_cast %170 : vector<1x32x32xf32> to vector<32x32xf32>
    %cst_120 = arith.constant dense<0.000000e+00> : vector<8x32xf32>
    %172 = tpu.matmul %169, %171, %cst_120 {dimension_numbers = #tpu.dot_dimension_numbers<[1], [0], [0], [1], [0, 0, 1, 1], [], []>} : vector<8x32xf32>, vector<32x32xf32>, vector<8x32xf32> -> vector<8x32xf32>
    %173 = arith.addf %148, %172 : vector<8x32xf32>
    %174 = arith.addf %124, %173 : vector<8x32xf32>
    %c0_121 = arith.constant 0 : index
    %c0_122 = arith.constant 0 : index
    %175 = vector.load %arg22[%c0_121, %c0_122] : memref<1x32xf32, #tpu.memory_space<vmem>>, vector<1x32xf32>
    %c0_123 = arith.constant 0 : index
    %c0_124 = arith.constant 0 : index
    %176 = vector.load %arg23[%c0_123, %c0_124] : memref<1x32xf32, #tpu.memory_space<vmem>>, vector<1x32xf32>
    %cst_125 = arith.constant dense<0.000000e+00> : vector<8xf32>
    %177 = vector.multi_reduction <add>, %174, %cst_125 [1] : vector<8x32xf32> to vector<8xf32>
    %178 = vector.shape_cast %177 : vector<8xf32> to vector<8x1xf32>
    %cst_126 = arith.constant 3.200000e+01 : f32
    %179 = vector.broadcast %cst_126 : f32 to vector<8x1xf32>
    %180 = arith.divf %178, %179 : vector<8x1xf32>
    %181 = vector.broadcast %180 : vector<8x1xf32> to vector<8x32xf32>
    %182 = arith.subf %174, %181 : vector<8x32xf32>
    %183 = arith.mulf %182, %182 : vector<8x32xf32>
    %cst_127 = arith.constant dense<0.000000e+00> : vector<8xf32>
    %184 = vector.multi_reduction <add>, %183, %cst_127 [1] : vector<8x32xf32> to vector<8xf32>
    %185 = vector.shape_cast %184 : vector<8xf32> to vector<8x1xf32>
    %cst_128 = arith.constant 3.200000e+01 : f32
    %186 = vector.broadcast %cst_128 : f32 to vector<8x1xf32>
    %187 = arith.divf %185, %186 : vector<8x1xf32>
    %cst_129 = arith.constant 9.99999974E-6 : f32
    %188 = vector.broadcast %cst_129 : f32 to vector<8x1xf32>
    %189 = arith.addf %187, %188 : vector<8x1xf32>
    %190 = math.rsqrt %189 : vector<8x1xf32>
    %191 = vector.broadcast %190 : vector<8x1xf32> to vector<8x32xf32>
    %192 = arith.mulf %182, %191 : vector<8x32xf32>
    %193 = vector.broadcast %175 : vector<1x32xf32> to vector<8x32xf32>
    %194 = arith.mulf %192, %193 : vector<8x32xf32>
    %195 = vector.broadcast %176 : vector<1x32xf32> to vector<8x32xf32>
    %196 = arith.addf %194, %195 : vector<8x32xf32>
    %c0_130 = arith.constant 0 : index
    %c0_131 = arith.constant 0 : index
    %c0_132 = arith.constant 0 : index
    %197 = vector.load %arg24[%c0_130, %c0_131, %c0_132] : memref<2x32x16xf32, #tpu.memory_space<vmem>>, vector<1x32x16xf32>
    %198 = vector.shape_cast %197 : vector<1x32x16xf32> to vector<32x16xf32>
    %cst_133 = arith.constant dense<0.000000e+00> : vector<8x16xf32>
    %199 = tpu.matmul %196, %198, %cst_133 {dimension_numbers = #tpu.dot_dimension_numbers<[1], [0], [0], [1], [0, 0, 1, 1], [], []>} : vector<8x32xf32>, vector<32x16xf32>, vector<8x16xf32> -> vector<8x16xf32>
    %c0_134 = arith.constant 0 : index
    %c0_135 = arith.constant 0 : index
    %c0_136 = arith.constant 0 : index
    %200 = vector.load %arg25[%c0_134, %c0_135, %c0_136] : memref<2x32x16xf32, #tpu.memory_space<vmem>>, vector<1x32x16xf32>
    %201 = vector.shape_cast %200 : vector<1x32x16xf32> to vector<32x16xf32>
    %cst_137 = arith.constant dense<0.000000e+00> : vector<16x16xf32>
    %202 = tpu.matmul %118, %201, %cst_137 {dimension_numbers = #tpu.dot_dimension_numbers<[1], [0], [0], [1], [0, 0, 1, 1], [], []>} : vector<16x32xf32>, vector<32x16xf32>, vector<16x16xf32> -> vector<16x16xf32>
    %c0_138 = arith.constant 0 : index
    %c0_139 = arith.constant 0 : index
    %c0_140 = arith.constant 0 : index
    %203 = vector.load %arg26[%c0_138, %c0_139, %c0_140] : memref<2x32x32xf32, #tpu.memory_space<vmem>>, vector<1x32x32xf32>
    %204 = vector.shape_cast %203 : vector<1x32x32xf32> to vector<32x32xf32>
    %cst_141 = arith.constant dense<0.000000e+00> : vector<16x32xf32>
    %205 = tpu.matmul %118, %204, %cst_141 {dimension_numbers = #tpu.dot_dimension_numbers<[1], [0], [0], [1], [0, 0, 1, 1], [], []>} : vector<16x32xf32>, vector<32x32xf32>, vector<16x32xf32> -> vector<16x32xf32>
    %cst_142 = arith.constant dense<0.000000e+00> : vector<8x16xf32>
    %206 = tpu.matmul %199, %202, %cst_142 {dimension_numbers = #tpu.dot_dimension_numbers<[1], [1], [0], [0], [0, 0, 1, 0], [], []>} : vector<8x16xf32>, vector<16x16xf32>, vector<8x16xf32> -> vector<8x16xf32>
    %cst_143 = arith.constant dense<0xFF800000> : vector<8xf32>
    %207 = vector.multi_reduction <maximumf>, %206, %cst_143 [1] : vector<8x16xf32> to vector<8xf32>
    %208 = vector.shape_cast %207 : vector<8xf32> to vector<8x1xf32>
    %209 = vector.broadcast %208 : vector<8x1xf32> to vector<8x16xf32>
    %210 = arith.subf %206, %209 : vector<8x16xf32>
    %211 = math.exp %210 : vector<8x16xf32>
    %cst_144 = arith.constant dense<0.000000e+00> : vector<8xf32>
    %212 = vector.multi_reduction <add>, %211, %cst_144 [1] : vector<8x16xf32> to vector<8xf32>
    %213 = vector.shape_cast %212 : vector<8xf32> to vector<8x1xf32>
    %214 = tpu.reciprocal %213 {approx = true} : vector<8x1xf32> -> vector<8x1xf32>
    %215 = vector.broadcast %214 : vector<8x1xf32> to vector<8x16xf32>
    %216 = arith.mulf %211, %215 : vector<8x16xf32>
    %cst_145 = arith.constant dense<0.000000e+00> : vector<8x32xf32>
    %217 = tpu.matmul %216, %205, %cst_145 {dimension_numbers = #tpu.dot_dimension_numbers<[1], [0], [0], [1], [0, 0, 1, 1], [], []>} : vector<8x16xf32>, vector<16x32xf32>, vector<8x32xf32> -> vector<8x32xf32>
    %c0_146 = arith.constant 0 : index
    %c0_147 = arith.constant 0 : index
    %c0_148 = arith.constant 0 : index
    %218 = vector.load %arg27[%c0_146, %c0_147, %c0_148] : memref<2x32x32xf32, #tpu.memory_space<vmem>>, vector<1x32x32xf32>
    %219 = vector.shape_cast %218 : vector<1x32x32xf32> to vector<32x32xf32>
    %cst_149 = arith.constant dense<0.000000e+00> : vector<8x32xf32>
    %220 = tpu.matmul %217, %219, %cst_149 {dimension_numbers = #tpu.dot_dimension_numbers<[1], [0], [0], [1], [0, 0, 1, 1], [], []>} : vector<8x32xf32>, vector<32x32xf32>, vector<8x32xf32> -> vector<8x32xf32>
    %c1_150 = arith.constant 1 : index
    %c0_151 = arith.constant 0 : index
    %c0_152 = arith.constant 0 : index
    %221 = vector.load %arg24[%c1_150, %c0_151, %c0_152] : memref<2x32x16xf32, #tpu.memory_space<vmem>>, vector<1x32x16xf32>
    %222 = vector.shape_cast %221 : vector<1x32x16xf32> to vector<32x16xf32>
    %cst_153 = arith.constant dense<0.000000e+00> : vector<8x16xf32>
    %223 = tpu.matmul %196, %222, %cst_153 {dimension_numbers = #tpu.dot_dimension_numbers<[1], [0], [0], [1], [0, 0, 1, 1], [], []>} : vector<8x32xf32>, vector<32x16xf32>, vector<8x16xf32> -> vector<8x16xf32>
    %c1_154 = arith.constant 1 : index
    %c0_155 = arith.constant 0 : index
    %c0_156 = arith.constant 0 : index
    %224 = vector.load %arg25[%c1_154, %c0_155, %c0_156] : memref<2x32x16xf32, #tpu.memory_space<vmem>>, vector<1x32x16xf32>
    %225 = vector.shape_cast %224 : vector<1x32x16xf32> to vector<32x16xf32>
    %cst_157 = arith.constant dense<0.000000e+00> : vector<16x16xf32>
    %226 = tpu.matmul %118, %225, %cst_157 {dimension_numbers = #tpu.dot_dimension_numbers<[1], [0], [0], [1], [0, 0, 1, 1], [], []>} : vector<16x32xf32>, vector<32x16xf32>, vector<16x16xf32> -> vector<16x16xf32>
    %c1_158 = arith.constant 1 : index
    %c0_159 = arith.constant 0 : index
    %c0_160 = arith.constant 0 : index
    %227 = vector.load %arg26[%c1_158, %c0_159, %c0_160] : memref<2x32x32xf32, #tpu.memory_space<vmem>>, vector<1x32x32xf32>
    %228 = vector.shape_cast %227 : vector<1x32x32xf32> to vector<32x32xf32>
    %cst_161 = arith.constant dense<0.000000e+00> : vector<16x32xf32>
    %229 = tpu.matmul %118, %228, %cst_161 {dimension_numbers = #tpu.dot_dimension_numbers<[1], [0], [0], [1], [0, 0, 1, 1], [], []>} : vector<16x32xf32>, vector<32x32xf32>, vector<16x32xf32> -> vector<16x32xf32>
    %cst_162 = arith.constant dense<0.000000e+00> : vector<8x16xf32>
    %230 = tpu.matmul %223, %226, %cst_162 {dimension_numbers = #tpu.dot_dimension_numbers<[1], [1], [0], [0], [0, 0, 1, 0], [], []>} : vector<8x16xf32>, vector<16x16xf32>, vector<8x16xf32> -> vector<8x16xf32>
    %cst_163 = arith.constant dense<0xFF800000> : vector<8xf32>
    %231 = vector.multi_reduction <maximumf>, %230, %cst_163 [1] : vector<8x16xf32> to vector<8xf32>
    %232 = vector.shape_cast %231 : vector<8xf32> to vector<8x1xf32>
    %233 = vector.broadcast %232 : vector<8x1xf32> to vector<8x16xf32>
    %234 = arith.subf %230, %233 : vector<8x16xf32>
    %235 = math.exp %234 : vector<8x16xf32>
    %cst_164 = arith.constant dense<0.000000e+00> : vector<8xf32>
    %236 = vector.multi_reduction <add>, %235, %cst_164 [1] : vector<8x16xf32> to vector<8xf32>
    %237 = vector.shape_cast %236 : vector<8xf32> to vector<8x1xf32>
    %238 = tpu.reciprocal %237 {approx = true} : vector<8x1xf32> -> vector<8x1xf32>
    %239 = vector.broadcast %238 : vector<8x1xf32> to vector<8x16xf32>
    %240 = arith.mulf %235, %239 : vector<8x16xf32>
    %cst_165 = arith.constant dense<0.000000e+00> : vector<8x32xf32>
    %241 = tpu.matmul %240, %229, %cst_165 {dimension_numbers = #tpu.dot_dimension_numbers<[1], [0], [0], [1], [0, 0, 1, 1], [], []>} : vector<8x16xf32>, vector<16x32xf32>, vector<8x32xf32> -> vector<8x32xf32>
    %c1_166 = arith.constant 1 : index
    %c0_167 = arith.constant 0 : index
    %c0_168 = arith.constant 0 : index
    %242 = vector.load %arg27[%c1_166, %c0_167, %c0_168] : memref<2x32x32xf32, #tpu.memory_space<vmem>>, vector<1x32x32xf32>
    %243 = vector.shape_cast %242 : vector<1x32x32xf32> to vector<32x32xf32>
    %cst_169 = arith.constant dense<0.000000e+00> : vector<8x32xf32>
    %244 = tpu.matmul %241, %243, %cst_169 {dimension_numbers = #tpu.dot_dimension_numbers<[1], [0], [0], [1], [0, 0, 1, 1], [], []>} : vector<8x32xf32>, vector<32x32xf32>, vector<8x32xf32> -> vector<8x32xf32>
    %245 = arith.addf %220, %244 : vector<8x32xf32>
    %246 = arith.addf %196, %245 : vector<8x32xf32>
    %c0_170 = arith.constant 0 : index
    %c0_171 = arith.constant 0 : index
    %247 = vector.load %arg28[%c0_170, %c0_171] : memref<1x32xf32, #tpu.memory_space<vmem>>, vector<1x32xf32>
    %c0_172 = arith.constant 0 : index
    %c0_173 = arith.constant 0 : index
    %248 = vector.load %arg29[%c0_172, %c0_173] : memref<1x32xf32, #tpu.memory_space<vmem>>, vector<1x32xf32>
    %cst_174 = arith.constant dense<0.000000e+00> : vector<8xf32>
    %249 = vector.multi_reduction <add>, %246, %cst_174 [1] : vector<8x32xf32> to vector<8xf32>
    %250 = vector.shape_cast %249 : vector<8xf32> to vector<8x1xf32>
    %cst_175 = arith.constant 3.200000e+01 : f32
    %251 = vector.broadcast %cst_175 : f32 to vector<8x1xf32>
    %252 = arith.divf %250, %251 : vector<8x1xf32>
    %253 = vector.broadcast %252 : vector<8x1xf32> to vector<8x32xf32>
    %254 = arith.subf %246, %253 : vector<8x32xf32>
    %255 = arith.mulf %254, %254 : vector<8x32xf32>
    %cst_176 = arith.constant dense<0.000000e+00> : vector<8xf32>
    %256 = vector.multi_reduction <add>, %255, %cst_176 [1] : vector<8x32xf32> to vector<8xf32>
    %257 = vector.shape_cast %256 : vector<8xf32> to vector<8x1xf32>
    %cst_177 = arith.constant 3.200000e+01 : f32
    %258 = vector.broadcast %cst_177 : f32 to vector<8x1xf32>
    %259 = arith.divf %257, %258 : vector<8x1xf32>
    %cst_178 = arith.constant 9.99999974E-6 : f32
    %260 = vector.broadcast %cst_178 : f32 to vector<8x1xf32>
    %261 = arith.addf %259, %260 : vector<8x1xf32>
    %262 = math.rsqrt %261 : vector<8x1xf32>
    %263 = vector.broadcast %262 : vector<8x1xf32> to vector<8x32xf32>
    %264 = arith.mulf %254, %263 : vector<8x32xf32>
    %265 = vector.broadcast %247 : vector<1x32xf32> to vector<8x32xf32>
    %266 = arith.mulf %264, %265 : vector<8x32xf32>
    %267 = vector.broadcast %248 : vector<1x32xf32> to vector<8x32xf32>
    %268 = arith.addf %266, %267 : vector<8x32xf32>
    %c0_179 = arith.constant 0 : index
    %c0_180 = arith.constant 0 : index
    %269 = vector.load %arg30[%c0_179, %c0_180] : memref<32x32xf32, #tpu.memory_space<vmem>>, vector<32x32xf32>
    %cst_181 = arith.constant dense<0.000000e+00> : vector<8x32xf32>
    %270 = tpu.matmul %268, %269, %cst_181 {dimension_numbers = #tpu.dot_dimension_numbers<[1], [0], [0], [1], [0, 0, 1, 1], [], []>} : vector<8x32xf32>, vector<32x32xf32>, vector<8x32xf32> -> vector<8x32xf32>
    %c0_182 = arith.constant 0 : index
    %c0_183 = arith.constant 0 : index
    %271 = vector.load %arg31[%c0_182, %c0_183] : memref<1x32xf32, #tpu.memory_space<vmem>>, vector<1x32xf32>
    %272 = vector.broadcast %271 : vector<1x32xf32> to vector<8x32xf32>
    %273 = arith.addf %270, %272 : vector<8x32xf32>
    %cst_184 = arith.constant 0.000000e+00 : f32
    %274 = vector.broadcast %cst_184 : f32 to vector<8x32xf32>
    %275 = arith.cmpf ogt, %273, %274 : vector<8x32xf32>
    %cst_185 = arith.constant 0.000000e+00 : f32
    %276 = vector.broadcast %cst_185 : f32 to vector<8x32xf32>
    %277 = arith.minimumf %273, %276 : vector<8x32xf32>
    %278 = math.exp %277 : vector<8x32xf32>
    %cst_186 = arith.constant 1.000000e+00 : f32
    %279 = vector.broadcast %cst_186 : f32 to vector<8x32xf32>
    %280 = arith.subf %278, %279 : vector<8x32xf32>
    %281 = arith.select %275, %273, %280 : vector<8x32xi1>, vector<8x32xf32>
    %c0_187 = arith.constant 0 : index
    %c0_188 = arith.constant 0 : index
    %282 = vector.load %arg32[%c0_187, %c0_188] : memref<32x32xf32, #tpu.memory_space<vmem>>, vector<32x32xf32>
    %cst_189 = arith.constant dense<0.000000e+00> : vector<8x32xf32>
    %283 = tpu.matmul %281, %282, %cst_189 {dimension_numbers = #tpu.dot_dimension_numbers<[1], [0], [0], [1], [0, 0, 1, 1], [], []>} : vector<8x32xf32>, vector<32x32xf32>, vector<8x32xf32> -> vector<8x32xf32>
    %c0_190 = arith.constant 0 : index
    %c0_191 = arith.constant 0 : index
    %284 = vector.load %arg33[%c0_190, %c0_191] : memref<1x32xf32, #tpu.memory_space<vmem>>, vector<1x32xf32>
    %285 = vector.broadcast %284 : vector<1x32xf32> to vector<8x32xf32>
    %286 = arith.addf %283, %285 : vector<8x32xf32>
    %287 = arith.addf %268, %286 : vector<8x32xf32>
    %c0_192 = arith.constant 0 : index
    %c0_193 = arith.constant 0 : index
    %288 = vector.load %arg34[%c0_192, %c0_193] : memref<1x32xf32, #tpu.memory_space<vmem>>, vector<1x32xf32>
    %c0_194 = arith.constant 0 : index
    %c0_195 = arith.constant 0 : index
    %289 = vector.load %arg35[%c0_194, %c0_195] : memref<1x32xf32, #tpu.memory_space<vmem>>, vector<1x32xf32>
    %cst_196 = arith.constant dense<0.000000e+00> : vector<8xf32>
    %290 = vector.multi_reduction <add>, %287, %cst_196 [1] : vector<8x32xf32> to vector<8xf32>
    %291 = vector.shape_cast %290 : vector<8xf32> to vector<8x1xf32>
    %cst_197 = arith.constant 3.200000e+01 : f32
    %292 = vector.broadcast %cst_197 : f32 to vector<8x1xf32>
    %293 = arith.divf %291, %292 : vector<8x1xf32>
    %294 = vector.broadcast %293 : vector<8x1xf32> to vector<8x32xf32>
    %295 = arith.subf %287, %294 : vector<8x32xf32>
    %296 = arith.mulf %295, %295 : vector<8x32xf32>
    %cst_198 = arith.constant dense<0.000000e+00> : vector<8xf32>
    %297 = vector.multi_reduction <add>, %296, %cst_198 [1] : vector<8x32xf32> to vector<8xf32>
    %298 = vector.shape_cast %297 : vector<8xf32> to vector<8x1xf32>
    %cst_199 = arith.constant 3.200000e+01 : f32
    %299 = vector.broadcast %cst_199 : f32 to vector<8x1xf32>
    %300 = arith.divf %298, %299 : vector<8x1xf32>
    %cst_200 = arith.constant 9.99999974E-6 : f32
    %301 = vector.broadcast %cst_200 : f32 to vector<8x1xf32>
    %302 = arith.addf %300, %301 : vector<8x1xf32>
    %303 = math.rsqrt %302 : vector<8x1xf32>
    %304 = vector.broadcast %303 : vector<8x1xf32> to vector<8x32xf32>
    %305 = arith.mulf %295, %304 : vector<8x32xf32>
    %306 = vector.broadcast %288 : vector<1x32xf32> to vector<8x32xf32>
    %307 = arith.mulf %305, %306 : vector<8x32xf32>
    %308 = vector.broadcast %289 : vector<1x32xf32> to vector<8x32xf32>
    %309 = arith.addf %307, %308 : vector<8x32xf32>
    %c0_201 = arith.constant 0 : index
    %c0_202 = arith.constant 0 : index
    %310 = vector.load %arg37[%c0_201, %c0_202] : memref<1x128xf32, #tpu.memory_space<vmem>>, vector<1x128xf32>
    %311 = vector.extract_strided_slice %309 {offsets = [0, 0], sizes = [1, 32], strides = [1, 1]} : vector<8x32xf32> to vector<1x32xf32>
    %c0_203 = arith.constant 0 : index
    %c0_204 = arith.constant 0 : index
    %c0_205 = arith.constant 0 : index
    %312 = vector.load %arg36[%c0_203, %c0_204, %c0_205] : memref<8x32x128xf32, #tpu.memory_space<vmem>>, vector<1x32x128xf32>
    %313 = vector.shape_cast %312 : vector<1x32x128xf32> to vector<32x128xf32>
    %cst_206 = arith.constant dense<0.000000e+00> : vector<1x128xf32>
    %314 = tpu.matmul %311, %313, %cst_206 {dimension_numbers = #tpu.dot_dimension_numbers<[1], [0], [0], [1], [0, 0, 1, 1], [], []>} : vector<1x32xf32>, vector<32x128xf32>, vector<1x128xf32> -> vector<1x128xf32>
    %315 = arith.addf %310, %314 : vector<1x128xf32>
    %316 = vector.extract_strided_slice %309 {offsets = [1, 0], sizes = [1, 32], strides = [1, 1]} : vector<8x32xf32> to vector<1x32xf32>
    %c1_207 = arith.constant 1 : index
    %c0_208 = arith.constant 0 : index
    %c0_209 = arith.constant 0 : index
    %317 = vector.load %arg36[%c1_207, %c0_208, %c0_209] : memref<8x32x128xf32, #tpu.memory_space<vmem>>, vector<1x32x128xf32>
    %318 = vector.shape_cast %317 : vector<1x32x128xf32> to vector<32x128xf32>
    %cst_210 = arith.constant dense<0.000000e+00> : vector<1x128xf32>
    %319 = tpu.matmul %316, %318, %cst_210 {dimension_numbers = #tpu.dot_dimension_numbers<[1], [0], [0], [1], [0, 0, 1, 1], [], []>} : vector<1x32xf32>, vector<32x128xf32>, vector<1x128xf32> -> vector<1x128xf32>
    %320 = arith.addf %315, %319 : vector<1x128xf32>
    %321 = vector.extract_strided_slice %309 {offsets = [2, 0], sizes = [1, 32], strides = [1, 1]} : vector<8x32xf32> to vector<1x32xf32>
    %c2 = arith.constant 2 : index
    %c0_211 = arith.constant 0 : index
    %c0_212 = arith.constant 0 : index
    %322 = vector.load %arg36[%c2, %c0_211, %c0_212] : memref<8x32x128xf32, #tpu.memory_space<vmem>>, vector<1x32x128xf32>
    %323 = vector.shape_cast %322 : vector<1x32x128xf32> to vector<32x128xf32>
    %cst_213 = arith.constant dense<0.000000e+00> : vector<1x128xf32>
    %324 = tpu.matmul %321, %323, %cst_213 {dimension_numbers = #tpu.dot_dimension_numbers<[1], [0], [0], [1], [0, 0, 1, 1], [], []>} : vector<1x32xf32>, vector<32x128xf32>, vector<1x128xf32> -> vector<1x128xf32>
    %325 = arith.addf %320, %324 : vector<1x128xf32>
    %326 = vector.extract_strided_slice %309 {offsets = [3, 0], sizes = [1, 32], strides = [1, 1]} : vector<8x32xf32> to vector<1x32xf32>
    %c3 = arith.constant 3 : index
    %c0_214 = arith.constant 0 : index
    %c0_215 = arith.constant 0 : index
    %327 = vector.load %arg36[%c3, %c0_214, %c0_215] : memref<8x32x128xf32, #tpu.memory_space<vmem>>, vector<1x32x128xf32>
    %328 = vector.shape_cast %327 : vector<1x32x128xf32> to vector<32x128xf32>
    %cst_216 = arith.constant dense<0.000000e+00> : vector<1x128xf32>
    %329 = tpu.matmul %326, %328, %cst_216 {dimension_numbers = #tpu.dot_dimension_numbers<[1], [0], [0], [1], [0, 0, 1, 1], [], []>} : vector<1x32xf32>, vector<32x128xf32>, vector<1x128xf32> -> vector<1x128xf32>
    %330 = arith.addf %325, %329 : vector<1x128xf32>
    %331 = vector.extract_strided_slice %309 {offsets = [4, 0], sizes = [1, 32], strides = [1, 1]} : vector<8x32xf32> to vector<1x32xf32>
    %c4 = arith.constant 4 : index
    %c0_217 = arith.constant 0 : index
    %c0_218 = arith.constant 0 : index
    %332 = vector.load %arg36[%c4, %c0_217, %c0_218] : memref<8x32x128xf32, #tpu.memory_space<vmem>>, vector<1x32x128xf32>
    %333 = vector.shape_cast %332 : vector<1x32x128xf32> to vector<32x128xf32>
    %cst_219 = arith.constant dense<0.000000e+00> : vector<1x128xf32>
    %334 = tpu.matmul %331, %333, %cst_219 {dimension_numbers = #tpu.dot_dimension_numbers<[1], [0], [0], [1], [0, 0, 1, 1], [], []>} : vector<1x32xf32>, vector<32x128xf32>, vector<1x128xf32> -> vector<1x128xf32>
    %335 = arith.addf %330, %334 : vector<1x128xf32>
    %336 = vector.extract_strided_slice %309 {offsets = [5, 0], sizes = [1, 32], strides = [1, 1]} : vector<8x32xf32> to vector<1x32xf32>
    %c5 = arith.constant 5 : index
    %c0_220 = arith.constant 0 : index
    %c0_221 = arith.constant 0 : index
    %337 = vector.load %arg36[%c5, %c0_220, %c0_221] : memref<8x32x128xf32, #tpu.memory_space<vmem>>, vector<1x32x128xf32>
    %338 = vector.shape_cast %337 : vector<1x32x128xf32> to vector<32x128xf32>
    %cst_222 = arith.constant dense<0.000000e+00> : vector<1x128xf32>
    %339 = tpu.matmul %336, %338, %cst_222 {dimension_numbers = #tpu.dot_dimension_numbers<[1], [0], [0], [1], [0, 0, 1, 1], [], []>} : vector<1x32xf32>, vector<32x128xf32>, vector<1x128xf32> -> vector<1x128xf32>
    %340 = arith.addf %335, %339 : vector<1x128xf32>
    %341 = vector.extract_strided_slice %309 {offsets = [6, 0], sizes = [1, 32], strides = [1, 1]} : vector<8x32xf32> to vector<1x32xf32>
    %c6 = arith.constant 6 : index
    %c0_223 = arith.constant 0 : index
    %c0_224 = arith.constant 0 : index
    %342 = vector.load %arg36[%c6, %c0_223, %c0_224] : memref<8x32x128xf32, #tpu.memory_space<vmem>>, vector<1x32x128xf32>
    %343 = vector.shape_cast %342 : vector<1x32x128xf32> to vector<32x128xf32>
    %cst_225 = arith.constant dense<0.000000e+00> : vector<1x128xf32>
    %344 = tpu.matmul %341, %343, %cst_225 {dimension_numbers = #tpu.dot_dimension_numbers<[1], [0], [0], [1], [0, 0, 1, 1], [], []>} : vector<1x32xf32>, vector<32x128xf32>, vector<1x128xf32> -> vector<1x128xf32>
    %345 = arith.addf %340, %344 : vector<1x128xf32>
    %346 = vector.extract_strided_slice %309 {offsets = [7, 0], sizes = [1, 32], strides = [1, 1]} : vector<8x32xf32> to vector<1x32xf32>
    %c7 = arith.constant 7 : index
    %c0_226 = arith.constant 0 : index
    %c0_227 = arith.constant 0 : index
    %347 = vector.load %arg36[%c7, %c0_226, %c0_227] : memref<8x32x128xf32, #tpu.memory_space<vmem>>, vector<1x32x128xf32>
    %348 = vector.shape_cast %347 : vector<1x32x128xf32> to vector<32x128xf32>
    %cst_228 = arith.constant dense<0.000000e+00> : vector<1x128xf32>
    %349 = tpu.matmul %346, %348, %cst_228 {dimension_numbers = #tpu.dot_dimension_numbers<[1], [0], [0], [1], [0, 0, 1, 1], [], []>} : vector<1x32xf32>, vector<32x128xf32>, vector<1x128xf32> -> vector<1x128xf32>
    %350 = arith.addf %345, %349 : vector<1x128xf32>
    %c0_229 = arith.constant 0 : index
    %c0_230 = arith.constant 0 : index
    %c0_231 = arith.constant 0 : index
    %351 = vector.load %arg38[%c0_229, %c0_230, %c0_231] : memref<1x1x128xf32, #tpu.memory_space<vmem>>, vector<1x1x128xf32>
    %352 = vector.shape_cast %351 : vector<1x1x128xf32> to vector<1x128xf32>
    %353 = vector.shape_cast %350 : vector<1x128xf32> to vector<1x1x128xf32>
    tpu.vector_store %arg38[%c0_229, %c0_230, %c0_231], %353 {strides = array<i32>} : memref<1x1x128xf32, #tpu.memory_space<vmem>>, vector<1x1x128xf32>,
    return
  }
  func.func @transform_0(%arg0: i32) -> (i32, i32, i32) {
    %c0_i32 = arith.constant 0 : i32
    %c0_i32_0 = arith.constant 0 : i32
    %c0_i32_1 = arith.constant 0 : i32
    return %arg0, %c0_i32, %c0_i32_0 : i32, i32, i32
  }
  func.func @transform_1(%arg0: i32) -> (i32, i32) {
    %c0_i32 = arith.constant 0 : i32
    %c0_i32_0 = arith.constant 0 : i32
    %c0_i32_1 = arith.constant 0 : i32
    return %c0_i32, %c0_i32_0 : i32, i32
  }
  func.func @transform_2(%arg0: i32) -> (i32, i32) {
    %c0_i32 = arith.constant 0 : i32
    %c0_i32_0 = arith.constant 0 : i32
    %c0_i32_1 = arith.constant 0 : i32
    return %c0_i32, %c0_i32_0 : i32, i32
  }
  func.func @transform_3(%arg0: i32) -> (i32, i32, i32) {
    %c0_i32 = arith.constant 0 : i32
    %c0_i32_0 = arith.constant 0 : i32
    %c0_i32_1 = arith.constant 0 : i32
    %c0_i32_2 = arith.constant 0 : i32
    return %c0_i32, %c0_i32_0, %c0_i32_1 : i32, i32, i32
  }
  func.func @transform_4(%arg0: i32) -> (i32, i32, i32) {
    %c0_i32 = arith.constant 0 : i32
    %c0_i32_0 = arith.constant 0 : i32
    %c0_i32_1 = arith.constant 0 : i32
    %c0_i32_2 = arith.constant 0 : i32
    return %c0_i32, %c0_i32_0, %c0_i32_1 : i32, i32, i32
  }
  func.func @transform_5(%arg0: i32) -> (i32, i32, i32) {
    %c0_i32 = arith.constant 0 : i32
    %c0_i32_0 = arith.constant 0 : i32
    %c0_i32_1 = arith.constant 0 : i32
    %c0_i32_2 = arith.constant 0 : i32
    return %c0_i32, %c0_i32_0, %c0_i32_1 : i32, i32, i32
  }
  func.func @transform_6(%arg0: i32) -> (i32, i32, i32) {
    %c0_i32 = arith.constant 0 : i32
    %c0_i32_0 = arith.constant 0 : i32
    %c0_i32_1 = arith.constant 0 : i32
    %c0_i32_2 = arith.constant 0 : i32
    return %c0_i32, %c0_i32_0, %c0_i32_1 : i32, i32, i32
  }
  func.func @transform_7(%arg0: i32) -> (i32, i32) {
    %c0_i32 = arith.constant 0 : i32
    %c0_i32_0 = arith.constant 0 : i32
    %c0_i32_1 = arith.constant 0 : i32
    return %c0_i32, %c0_i32_0 : i32, i32
  }
  func.func @transform_8(%arg0: i32) -> (i32, i32) {
    %c0_i32 = arith.constant 0 : i32
    %c0_i32_0 = arith.constant 0 : i32
    %c0_i32_1 = arith.constant 0 : i32
    return %c0_i32, %c0_i32_0 : i32, i32
  }
  func.func @transform_9(%arg0: i32) -> (i32, i32) {
    %c0_i32 = arith.constant 0 : i32
    %c0_i32_0 = arith.constant 0 : i32
    %c0_i32_1 = arith.constant 0 : i32
    return %c0_i32, %c0_i32_0 : i32, i32
  }
  func.func @transform_10(%arg0: i32) -> (i32, i32) {
    %c0_i32 = arith.constant 0 : i32
    %c0_i32_0 = arith.constant 0 : i32
    %c0_i32_1 = arith.constant 0 : i32
    return %c0_i32, %c0_i32_0 : i32, i32
  }
  func.func @transform_11(%arg0: i32) -> (i32, i32) {
    %c0_i32 = arith.constant 0 : i32
    %c0_i32_0 = arith.constant 0 : i32
    %c0_i32_1 = arith.constant 0 : i32
    return %c0_i32, %c0_i32_0 : i32, i32
  }
  func.func @transform_12(%arg0: i32) -> (i32, i32) {
    %c0_i32 = arith.constant 0 : i32
    %c0_i32_0 = arith.constant 0 : i32
    %c0_i32_1 = arith.constant 0 : i32
    return %c0_i32, %c0_i32_0 : i32, i32
  }
  func.func @transform_13(%arg0: i32) -> (i32, i32) {
    %c0_i32 = arith.constant 0 : i32
    %c0_i32_0 = arith.constant 0 : i32
    %c0_i32_1 = arith.constant 0 : i32
    return %c0_i32, %c0_i32_0 : i32, i32
  }
  func.func @transform_14(%arg0: i32) -> (i32, i32) {
    %c0_i32 = arith.constant 0 : i32
    %c0_i32_0 = arith.constant 0 : i32
    %c0_i32_1 = arith.constant 0 : i32
    return %c0_i32, %c0_i32_0 : i32, i32
  }
  func.func @transform_15(%arg0: i32) -> (i32, i32) {
    %c0_i32 = arith.constant 0 : i32
    %c0_i32_0 = arith.constant 0 : i32
    %c0_i32_1 = arith.constant 0 : i32
    return %c0_i32, %c0_i32_0 : i32, i32
  }
  func.func @transform_16(%arg0: i32) -> (i32, i32) {
    %c0_i32 = arith.constant 0 : i32
    %c0_i32_0 = arith.constant 0 : i32
    %c0_i32_1 = arith.constant 0 : i32
    return %c0_i32, %c0_i32_0 : i32, i32
  }
  func.func @transform_17(%arg0: i32) -> (i32, i32, i32) {
    %c0_i32 = arith.constant 0 : i32
    %c0_i32_0 = arith.constant 0 : i32
    %c0_i32_1 = arith.constant 0 : i32
    %c0_i32_2 = arith.constant 0 : i32
    return %c0_i32, %c0_i32_0, %c0_i32_1 : i32, i32, i32
  }
  func.func @transform_18(%arg0: i32) -> (i32, i32, i32) {
    %c0_i32 = arith.constant 0 : i32
    %c0_i32_0 = arith.constant 0 : i32
    %c0_i32_1 = arith.constant 0 : i32
    %c0_i32_2 = arith.constant 0 : i32
    return %c0_i32, %c0_i32_0, %c0_i32_1 : i32, i32, i32
  }
  func.func @transform_19(%arg0: i32) -> (i32, i32, i32) {
    %c0_i32 = arith.constant 0 : i32
    %c0_i32_0 = arith.constant 0 : i32
    %c0_i32_1 = arith.constant 0 : i32
    %c0_i32_2 = arith.constant 0 : i32
    return %c0_i32, %c0_i32_0, %c0_i32_1 : i32, i32, i32
  }
  func.func @transform_20(%arg0: i32) -> (i32, i32, i32) {
    %c0_i32 = arith.constant 0 : i32
    %c0_i32_0 = arith.constant 0 : i32
    %c0_i32_1 = arith.constant 0 : i32
    %c0_i32_2 = arith.constant 0 : i32
    return %c0_i32, %c0_i32_0, %c0_i32_1 : i32, i32, i32
  }
  func.func @transform_21(%arg0: i32) -> (i32, i32) {
    %c0_i32 = arith.constant 0 : i32
    %c0_i32_0 = arith.constant 0 : i32
    %c0_i32_1 = arith.constant 0 : i32
    return %c0_i32, %c0_i32_0 : i32, i32
  }
  func.func @transform_22(%arg0: i32) -> (i32, i32) {
    %c0_i32 = arith.constant 0 : i32
    %c0_i32_0 = arith.constant 0 : i32
    %c0_i32_1 = arith.constant 0 : i32
    return %c0_i32, %c0_i32_0 : i32, i32
  }
  func.func @transform_23(%arg0: i32) -> (i32, i32, i32) {
    %c0_i32 = arith.constant 0 : i32
    %c0_i32_0 = arith.constant 0 : i32
    %c0_i32_1 = arith.constant 0 : i32
    %c0_i32_2 = arith.constant 0 : i32
    return %c0_i32, %c0_i32_0, %c0_i32_1 : i32, i32, i32
  }
  func.func @transform_24(%arg0: i32) -> (i32, i32, i32) {
    %c0_i32 = arith.constant 0 : i32
    %c0_i32_0 = arith.constant 0 : i32
    %c0_i32_1 = arith.constant 0 : i32
    %c0_i32_2 = arith.constant 0 : i32
    return %c0_i32, %c0_i32_0, %c0_i32_1 : i32, i32, i32
  }
  func.func @transform_25(%arg0: i32) -> (i32, i32, i32) {
    %c0_i32 = arith.constant 0 : i32
    %c0_i32_0 = arith.constant 0 : i32
    %c0_i32_1 = arith.constant 0 : i32
    %c0_i32_2 = arith.constant 0 : i32
    return %c0_i32, %c0_i32_0, %c0_i32_1 : i32, i32, i32
  }
  func.func @transform_26(%arg0: i32) -> (i32, i32, i32) {
    %c0_i32 = arith.constant 0 : i32
    %c0_i32_0 = arith.constant 0 : i32
    %c0_i32_1 = arith.constant 0 : i32
    %c0_i32_2 = arith.constant 0 : i32
    return %c0_i32, %c0_i32_0, %c0_i32_1 : i32, i32, i32
  }
  func.func @transform_27(%arg0: i32) -> (i32, i32) {
    %c0_i32 = arith.constant 0 : i32
    %c0_i32_0 = arith.constant 0 : i32
    %c0_i32_1 = arith.constant 0 : i32
    return %c0_i32, %c0_i32_0 : i32, i32
  }
  func.func @transform_28(%arg0: i32) -> (i32, i32) {
    %c0_i32 = arith.constant 0 : i32
    %c0_i32_0 = arith.constant 0 : i32
    %c0_i32_1 = arith.constant 0 : i32
    return %c0_i32, %c0_i32_0 : i32, i32
  }
  func.func @transform_29(%arg0: i32) -> (i32, i32) {
    %c0_i32 = arith.constant 0 : i32
    %c0_i32_0 = arith.constant 0 : i32
    %c0_i32_1 = arith.constant 0 : i32
    return %c0_i32, %c0_i32_0 : i32, i32
  }
  func.func @transform_30(%arg0: i32) -> (i32, i32) {
    %c0_i32 = arith.constant 0 : i32
    %c0_i32_0 = arith.constant 0 : i32
    %c0_i32_1 = arith.constant 0 : i32
    return %c0_i32, %c0_i32_0 : i32, i32
  }
  func.func @transform_31(%arg0: i32) -> (i32, i32) {
    %c0_i32 = arith.constant 0 : i32
    %c0_i32_0 = arith.constant 0 : i32
    %c0_i32_1 = arith.constant 0 : i32
    return %c0_i32, %c0_i32_0 : i32, i32
  }
  func.func @transform_32(%arg0: i32) -> (i32, i32) {
    %c0_i32 = arith.constant 0 : i32
    %c0_i32_0 = arith.constant 0 : i32
    %c0_i32_1 = arith.constant 0 : i32
    return %c0_i32, %c0_i32_0 : i32, i32
  }
  func.func @transform_33(%arg0: i32) -> (i32, i32) {
    %c0_i32 = arith.constant 0 : i32
    %c0_i32_0 = arith.constant 0 : i32
    %c0_i32_1 = arith.constant 0 : i32
    return %c0_i32, %c0_i32_0 : i32, i32
  }
  func.func @transform_34(%arg0: i32) -> (i32, i32) {
    %c0_i32 = arith.constant 0 : i32
    %c0_i32_0 = arith.constant 0 : i32
    %c0_i32_1 = arith.constant 0 : i32
    return %c0_i32, %c0_i32_0 : i32, i32
  }
  func.func @transform_35(%arg0: i32) -> (i32, i32, i32) {
    %c0_i32 = arith.constant 0 : i32
    %c0_i32_0 = arith.constant 0 : i32
    %c0_i32_1 = arith.constant 0 : i32
    %c0_i32_2 = arith.constant 0 : i32
    return %c0_i32, %c0_i32_0, %c0_i32_1 : i32, i32, i32
  }
  func.func @transform_36(%arg0: i32) -> (i32, i32) {
    %c0_i32 = arith.constant 0 : i32
    %c0_i32_0 = arith.constant 0 : i32
    %c0_i32_1 = arith.constant 0 : i32
    return %c0_i32, %c0_i32_0 : i32, i32
  }
  func.func @transform_37(%arg0: i32) -> (i32, i32, i32) {
    %c0_i32 = arith.constant 0 : i32
    %c0_i32_0 = arith.constant 0 : i32
    %c0_i32_1 = arith.constant 0 : i32
    return %arg0, %c0_i32, %c0_i32_0 : i32, i32, i32
  }
}

</mosaic_0001>

<bundles_post_ra>
// kernel: transformer_forward.1
= control target key start
LH: loop header
LB: loop body
LE: loop exit
PB: predicated region body
PF: predicated region fallthrough
CT: control target
= control target key end

     0   :  { %s7611_s6 = smov 1   ;;  %s7612_s10 = smov 2   ;;  %s8583_s0 = inlined_call_operand.smem [shape: u32[38], index: -1, kind: input, shape index: {}] }
   0x1   :  { %s7677_s5 = sld [smem:[%s8583_s0]]   ;;  %s7613_s14 = smov 3  }
   0x2   :  { %s7682_s9 = sld [smem:[%s8583_s0 + %s7611_s6]]   ;;  %s7614_s18 = smov 4  }
   0x3   :  { %s7687_s13 = sld [smem:[%s8583_s0 + %s7612_s10]]   ;;  %s7615_s22 = smov 5  }
   0x4   :  { %s7692_s17 = sld [smem:[%s8583_s0 + %s7613_s14]]   ;;  %s7616_s26 = smov 6  }
   0x5   :  { %s7697_s21 = sld [smem:[%s8583_s0 + %s7614_s18]]   ;;  %s7617_s30 = smov 7  }
   0x6   :  { %s7702_s25 = sld [smem:[%s8583_s0 + %s7615_s22]]   ;;  %s7618_s4 = smov 8  }
   0x7   :  { %8612 = sst [smem:[#allocation39_spill]] %s7677_s5  ;;  %s7619_s10 = smov 9  }
   0x8   :  { %8613 = sst [smem:[#allocation40_spill]] %s7682_s9  ;;  %s7620_s15 = smov 10  }
   0x9   :  { %s7707_s29 = sld [smem:[%s8583_s0 + %s7616_s26]]   ;;  %s7621_s20 = smov 11  }
   0xa   :  { %8614 = sst [smem:[#allocation41_spill]] %s7692_s17  ;;  %s7622_s26 = smov 12  }
   0xb   :  { %8615 = sst [smem:[#allocation42_spill]] %s7697_s21  ;;  %s7623_s1 = smov 13  }
   0xc   :  { %8616 = sst [smem:[#allocation43_spill]] %s7702_s25  ;;  %s7624_s7 = smov 14  }
   0xd   :  { %s7712_s3 = sld [smem:[%s8583_s0 + %s7617_s30]]   ;;  %s7626_s22 = smov 16  }
   0xe   :  { %s7717_s8 = sld [smem:[%s8583_s0 + %s7618_s4]]   ;;  %s7627_s28 = smov 17  }
   0xf   :  { %8617 = sst [smem:[#allocation44_spill]] %s7707_s29 }
  0x10   :  { %s7722_s14 = sld [smem:[%s8583_s0 + %s7619_s10]]  }
  0x11   :  { %s7727_s19 = sld [smem:[%s8583_s0 + %s7620_s15]]   ;;  %s7625_s15 = smov 15  }
  0x12   :  { %s7732_s24 = sld [smem:[%s8583_s0 + %s7621_s20]]  }
  0x13   :  { %8618 = sst [smem:[#allocation45_spill]] %s7712_s3 }
  0x14   :  { %8619 = sst [smem:[#allocation46_spill]] %s7717_s8 }
  0x15   :  { %s7737_s30 = sld [smem:[%s8583_s0 + %s7622_s26]]  }
  0x16   :  { %8620 = sst [smem:[#allocation47_spill]] %s7722_s14 }
  0x17   :  { %8621 = sst [smem:[#allocation48_spill]] %s7727_s19 }
  0x18   :  { %s7742_s6 = sld [smem:[%s8583_s0 + %s7623_s1]]  }
  0x19   :  { %s7747_s12 = sld [smem:[%s8583_s0 + %s7624_s7]]   ;;  %s7628_s7 = smov 18  }
  0x1a   :  { %s7752_s20 = sld [smem:[%s8583_s0 + %s7625_s15]]   ;;  %s7629_s15 = smov 19  }
  0x1b   :  { %8622 = sst [smem:[#allocation49_spill]] %s7737_s30 }
  0x1c   :  { %s7757_s27 = sld [smem:[%s8583_s0 + %s7626_s22]]   ;;  %s7630_s22 = smov 20  }
  0x1d   :  { %s7762_s4 = sld [smem:[%s8583_s0 + %s7627_s28]]   ;;  %s7631_s28 = smov 21  }
  0x1e   :  { %8623 = sst [smem:[#allocation50_spill]] %s7742_s6 }
  0x1f   :  { %8624 = sst [smem:[#allocation51_spill]] %s7747_s12 }
  0x20   :  { %8625 = sst [smem:[#allocation52_spill]] %s7752_s20 }
  0x21   :  { %s7767_s12 = sld [smem:[%s8583_s0 + %s7628_s7]]   ;;  %s7632_s7 = smov 22  }
  0x22   :  { %s7772_s6 = sld [smem:[%s8583_s0 + %s7629_s15]]   ;;  %s7633_s15 = smov 23  }
  0x23   :  { %8626 = sst [smem:[#allocation53_spill]] %s7762_s4 }
  0x24   :  { %s7777_s30 = sld [smem:[%s8583_s0 + %s7630_s22]]   ;;  %s7634_s22 = smov 24  }
  0x25   :  { %s7782_s4 = sld [smem:[%s8583_s0 + %s7631_s28]]   ;;  %s7635_s28 = smov 25  }
  0x26   :  { %s7787_s19 = sld [smem:[%s8583_s0 + %s7632_s7]]   ;;  %s7636_s7 = smov 26  }
  0x27   :  { %8627 = sst [smem:[#allocation54_spill]] %s7767_s12 }
  0x28   :  { %8628 = sst [smem:[#allocation55_spill]] %s7772_s6 }
  0x29   :  { %s7792_s6 = sld [smem:[%s8583_s0 + %s7633_s15]]   ;;  %s7637_s15 = smov 27  }
  0x2a   :  { %8629 = sst [smem:[#allocation56_spill]] %s7777_s30 }
  0x2b   :  { %8630 = sst [smem:[#allocation57_spill]] %s7782_s4 }
  0x2c   :  { %s7797_s30 = sld [smem:[%s8583_s0 + %s7634_s22]]   ;;  %s7638_s22 = smov 28  }
  0x2d   :  { %s7802_s12 = sld [smem:[%s8583_s0 + %s7635_s28]]   ;;  %s7639_s28 = smov 29  }
  0x2e   :  { %s7807_s8 = sld [smem:[%s8583_s0 + %s7636_s7]]   ;;  %s7640_s7 = smov 30  }
  0x2f   :  { %8631 = sst [smem:[#allocation58_spill]] %s7792_s6 }
  0x30   :  { %s7812_s6 = sld [smem:[%s8583_s0 + %s7637_s15]]   ;;  %s7641_s15 = smov 31  }
  0x31   :  { %s7827_s3 = sld [smem:[%s8583_s0 + %s7640_s7]]   ;;  %s7644_s7 = smov 34  }
  0x32   :  { %8632 = sst [smem:[#allocation59_spill]] %s7797_s30 }
  0x33   :  { %8633 = sst [smem:[#allocation60_spill]] %s7802_s12 }
  0x34   :  { %8634 = sst [smem:[#allocation61_spill]] %s7807_s8 }
  0x35   :  { %s7817_s30 = sld [smem:[%s8583_s0 + %s7638_s22]]   ;;  %s7642_s22 = smov 32  }
  0x36   :  { %8635 = sst [smem:[#allocation62_spill]] %s7812_s6 }
  0x37   :  { %s7822_s12 = sld [smem:[%s8583_s0 + %s7639_s28]]   ;;  %s7643_s28 = smov 33  }
  0x38   :  { %8636 = sst [smem:[#allocation63_spill]] %s7827_s3 }
  0x39   :  { %s7832_s29 = sld [smem:[%s8583_s0 + %s7641_s15]]   ;;  %s7645_s15 = smov 35  }
  0x3a   :  { %s7837_s25 = sld [smem:[%s8583_s0 + %s7642_s22]]   ;;  %s7646_s22 = smov 36  }
  0x3b   :  { %s7842_s21 = sld [smem:[%s8583_s0 + %s7643_s28]]   ;;  %s7647_s28 = smov 37  }
  0x3c   :  { %s7847_s17 = sld [smem:[%s8583_s0 + %s7644_s7]]  }
  0x3d   :  { %s7852_s9 = sld [smem:[%s8583_s0 + %s7645_s15]]  }
  0x3e   :  { %s7857_s5 = sld [smem:[%s8583_s0 + %s7646_s22]]  }
  0x41   :  { %8637 = sst [smem:[#allocation64_spill]] %s7842_s21 }
  0x42   :  { %s7862_s21 = sld [smem:[%s8583_s0 + %s7647_s28]]  }
  0x44   :  { %8638 = sst [smem:[#allocation65_spill]] %s7857_s5 }
  0x45   :  { %80 = vsyncpa [#allocation3], 0 }
  0x46   :  { %81 = vsyncpa [#allocation6], 0 }
  0x47   :  { %82 = vsyncpa [#allocation9], 0 }
  0x48   :  { %83 = vsyncpa [#allocation12], 0 }
  0x49   :  { %84 = vsyncpa [#allocation15], 0 }
  0x4a   :  { %85 = vsyncpa [#allocation18], 0 }
  0x4b   :  { %86 = vsyncpa [#allocation21], 0 }
  0x4c   :  { %87 = vsyncpa [#allocation24], 0 }
  0x4d   :  { %88 = vsyncpa [#allocation27], 0 }
  0x4e   :  { %89 = vsyncpa [#allocation4], 0 }
  0x4f   :  { %91 = vsyncpa [#allocation4 + $0x1], 0  ;;  %s7864_s7 = smov 0   ;;  %s7866_s10 = smov 0  }
  0x50   :  { %s7868_s11 = smov 0   ;;  %s7870_s15 = smov 0  }
  0x51 LB: > { %8639 = sst [smem:[#allocation66_spill]] %s7597_s7  ;;  %s7885_s0 = sadd.s32 4294967295, %s7609_s15   ;;  %s7609_s15 = sphi %s7870_s15, %s8709_s15   ;;  %s7605_s11 = sphi %s7868_s11, %s8711_s11   ;;  %s7601_s10 = sphi %s7866_s10, %s8713_s10   ;;  %s7597_s7 = sphi %s7864_s7, %s8712_s7  }
  0x52   : > { %8640 = sst [smem:[#allocation67_spill]] %s7605_s11  ;;  %s5874_s16 = sadd.s32 4294967294, %s7609_s15  }
  0x53   : > { %8641 = sst [smem:[#allocation68_spill]] %s7609_s15  ;;  %s7889_s18 = sadd.s32 1, %s7609_s15  }
  0x54   : > { %8642 = sst [smem:[#allocation69_spill]] %s7889_s18  ;;  %s886_s22 = sadd.s32 1, %s7605_s11 }
  0x55   : > { %s883_s23 = ssub.s32 %s7609_s15, %s7889_s18  ;;  %p896_p0 = scmp.ne.s32.totalorder %s7605_s11, %s7601_s10 }
  0x56   : > { %p884_p1 = scmp.eq.s32.totalorder %s883_s23, 0  ;;  %p897_p2 = scmp.eq.s32.totalorder %s7885_s0, 1 }
  0x57   : > { %p902_p3 = scmp.ne.s32.totalorder %s7601_s10, %s7597_s7  ;;  %p903_p4 = scmp.eq.s32.totalorder %s5874_s16, 1 }
  0x58   : > { %s7900_s26 = scalar_select %p884_p1, %s7605_s11, %s886_s22  }
  0x59   : > { %p7902_p5 = por %p897_p2, %p896_p0  ;;  %p7906_p6 = por %p903_p4, %p902_p3 }
  0x5a   : > { %8643 = sst [smem:[#allocation70_spill]] %s7900_s26  ;;  %p5875_p7 = scmp.ge.s32.totalorder %s7609_s15, 1 }
  0x5b   : > { %s8644_s28 = scalar_select %p7902_p5, 1, 0 }
  0x5c   : > { %s8645_s1 = scalar_select %p7906_p6, 1, 0 }
  0x5d   : > { %p910_p8 = scmp.lt.s32.totalorder %s7609_s15, 3  ;;  %p8601_p9 = scmp.eq.s32.totalorder %s7885_s0, 0 }
  0x5e   : > { %8646 = sst [smem:[#allocation71_spill]] %s8645_s1  ;;  %s7648_s16 = smov [#allocation5]  }
  0x5f   : > { %p7913_p10 = pnand %p5875_p7, %p910_p8  ;;  %s956_s22 = sshll.u32 %s7648_s16, 4  ;;  %s957_s22 = int_to_ptr.vmem [resolvable:$true] %s956_s22 }
  0x60   : > { %s7649_s26 = smov [#allocation8]   ;;  %s7650_s18 = smov [#allocation11]  }
  0x61   : > { %s8647_s2 = scalar_select %p7913_p10, 1, 0 }
  0x62   : > { %p6870_p11 = pneg %p7913_p10  ;;  %s995_s11 = sshll.u32 %s7649_s26, 4  ;;  %s996_s11 = int_to_ptr.vmem [resolvable:$true] %s995_s11 }
  0x63   : > { %s1029_s1 = sshll.u32 %s7650_s18, 4  ;;  %s7108_s15 = scalar_lea.vmem %s957_s22, 512  ;;  %s1030_s1 = int_to_ptr.vmem [resolvable:$true] %s1029_s1 }
  0x64   : > { %p7921_p12 = pnand %p8601_p9, %p6870_p11  ;;  %p7109_p0 = scmp.ne.s32.totalorder %s957_s22, %s7108_s15 }
  0x65   : > { %p7116_p3 = scmp.lt.s32.totalorder %s957_s22, %s957_s22  ;;  %p7117_p4 = scmp.lt.s32.totalorder %s7108_s15, %s7108_s15 }
  0x66   : > { %p7927_p13 = pneg %p7921_p12 }
  0x67   : > { %p7118_p7 = por %p7117_p4, %p7116_p3 }
  0x68   : > { %p7111_p1 = pnand %p7109_p0, %p7927_p13 }
  0x6a   : > { %p7112_p2 = pneg %p7111_p1 }
  0x6c   : > { %p7119_p8 = pnand %p7118_p7, %p7112_p2 }
  0x6e   : > { %7122 = shalt.err (!%p7119_p8)
}
  0x6f   : > { %s8604_s26 = smov 128   ;;  %s8650_s14 = sld [smem:[#allocation47_spill]] }
  0x70   : > { %s8606_s18 = smov 8   ;;  %s7134_s16 = scalar_lea.vmem %s996_s11, 64 }
  0x71   : > { %p7135_p11 = scmp.ne.s32.totalorder %s996_s11, %s7134_s16  ;;  %p7142_p9 = scmp.lt.s32.totalorder %s996_s11, %s996_s11 }
  0x72   : > { %p7143_p6 = scmp.lt.s32.totalorder %s7134_s16, %s7134_s16 }
  0x73   : > { %p7137_p0 = pnand %p7135_p11, %p7927_p13 }
  0x74   : > { %p7144_p3 = por %p7143_p6, %p7142_p9 }
  0x75   : > { %6876 = dma.hbm_to_vmem [thread:$0]  (!%p7921_p12), %s8650_s14, 512, %s957_s22, [#allocation6], %s8604_s26, %s8604_s26, %s8606_s18  }
  0x76   : > { %p7138_p1 = pneg %p7137_p0 }
  0x78   : > { %p7145_p2 = pnand %p7144_p3, %p7138_p1 }
  0x7a   : > { %7148 = shalt.err (!%p7145_p2)
}
  0x7b   : > { %s8651_s20 = sld [smem:[#allocation52_spill]]  ;;  %s7160_s15 = scalar_lea.vmem %s1030_s1, 16 }
  0x7c   : > { %p7161_p4 = scmp.ne.s32.totalorder %s1030_s1, %s7160_s15  ;;  %s7167_s22 = scalar_lea.vmem %s1030_s1, 32 }
  0x7d   : > { %p7168_p5 = scmp.lt.s32.totalorder %s1030_s1, %s1030_s1  ;;  %p7169_p11 = scmp.lt.s32.totalorder %s7167_s22, %s7160_s15 }
  0x7e   : > { %p7163_p7 = pnand %p7161_p4, %p7927_p13 }
  0x7f   : > { %p7170_p0 = por %p7169_p11, %p7168_p5 }
  0x80   : > { %p7164_p8 = pneg %p7163_p7 }
  0x81   : > { %6882 = dma.hbm_to_vmem [thread:$0]  (!%p7921_p12), %s8651_s20, 64, %s996_s11, [#allocation9]  }
  0x82   : > { %p7171_p10 = pnand %p7170_p0, %p7164_p8 }
  0x84   : > { %7174 = shalt.err (!%p7171_p10)
}
  0x85   : > { %s8652_s4 = sld [smem:[#allocation57_spill]]  ;;  %s7653_s16 = smov [#allocation14]  }
  0x86   : > { %s1059_s26 = sshll.u32 %s7653_s16, 4  ;;  %s7654_s11 = smov [#allocation17]   ;;  %s1060_s26 = int_to_ptr.vmem [resolvable:$true] %s1059_s26 }
  0x87   : > { %s1084_s18 = sshll.u32 %s7654_s11, 4  ;;  %s7186_s14 = scalar_lea.vmem %s1060_s26, 1024  ;;  %s1085_s18 = int_to_ptr.vmem [resolvable:$true] %s1084_s18 }
  0x88   : > { %p7187_p6 = scmp.ne.s32.totalorder %s1060_s26, %s7186_s14  ;;  %p7194_p3 = scmp.lt.s32.totalorder %s1060_s26, %s1060_s26 }
  0x89   : > { %p7195_p2 = scmp.lt.s32.totalorder %s7186_s14, %s7186_s14 }
  0x8a   : > { %p7189_p9 = pnand %p7187_p6, %p7927_p13 }
  0x8b   : > { %6888 = dma.hbm_to_vmem [thread:$0]  (!%p7921_p12), %s8652_s4, 16, %s1030_s1, [#allocation12]  }
  0x8c   : > { %p7190_p1 = pneg %p7189_p9  ;;  %p7196_p5 = por %p7195_p2, %p7194_p3 }
  0x8e   : > { %p7197_p4 = pnand %p7196_p5, %p7190_p1 }
  0x90   : > { %7200 = shalt.err (!%p7197_p4)
}
  0x91   : > { %s8653_s15 = smov 8   ;;  %s8654_s22 = smov 128  }
  0x92   : > { %s8655_s8 = sld [smem:[#allocation61_spill]]  ;;  %s7212_s1 = scalar_lea.vmem %s1085_s18, 16 }
  0x93   : > { %p7213_p10 = scmp.ne.s32.totalorder %s1085_s18, %s7212_s1  ;;  %s7219_s16 = scalar_lea.vmem %s1085_s18, 32 }
  0x94   : > { %p7220_p11 = scmp.lt.s32.totalorder %s1085_s18, %s1085_s18  ;;  %p7221_p0 = scmp.lt.s32.totalorder %s7219_s16, %s7212_s1 }
  0x95   : > { %p7215_p7 = pnand %p7213_p10, %p7927_p13 }
  0x96   : > { %p7222_p6 = por %p7221_p0, %p7220_p11 }
  0x97   : > { %p7216_p8 = pneg %p7215_p7 }
  0x98   : > { %6894 = dma.hbm_to_vmem [thread:$0]  (!%p7921_p12), %s8655_s8, 1024, %s1060_s26, [#allocation15], %s8654_s22, %s8654_s22, %s8653_s15  }
  0x99   : > { %p7223_p9 = pnand %p7222_p6, %p7216_p8 }
  0x9b   : > { %7226 = shalt.err (!%p7223_p9)
}
  0x9c   : > { %6900 = dma.hbm_to_vmem [thread:$0]  (!%p7921_p12), %s7817_s30, 16, %s1085_s18, [#allocation18]  }
  0x9d   : > { %s7655_s14 = smov [#allocation20]   ;;  %s7656_s26 = smov [#allocation23]  }
  0x9e   : > { %s1108_s11 = sshll.u32 %s7655_s14, 4  ;;  %s1132_s4 = sshll.u32 %s7656_s26, 4  ;;  %s1109_s11 = int_to_ptr.vmem [resolvable:$true] %s1108_s11  ;;  %s1133_s4 = int_to_ptr.vmem [resolvable:$true] %s1132_s4 }
  0x9f   : > { %s7238_s8 = scalar_lea.vmem %s1109_s11, 16  ;;  %s7245_s20 = scalar_lea.vmem %s1109_s11, 32 }
  0xa0   : > { %p7239_p1 = scmp.ne.s32.totalorder %s1109_s11, %s7238_s8  ;;  %p7246_p5 = scmp.lt.s32.totalorder %s1109_s11, %s1109_s11 }
  0xa1   : > { %p7247_p4 = scmp.lt.s32.totalorder %s7245_s20, %s7238_s8 }
  0xa2   : > { %p7241_p3 = pnand %p7239_p1, %p7927_p13 }
  0xa3   : > { %p7248_p10 = por %p7247_p4, %p7246_p5 }
  0xa4   : > { %p7242_p2 = pneg %p7241_p3 }
  0xa6   : > { %p7249_p7 = pnand %p7248_p10, %p7242_p2 }
  0xa8   : > { %7252 = shalt.err (!%p7249_p7)
}
  0xa9   : > { %s8656_s3 = sld [smem:[#allocation63_spill]]  ;;  %s7264_s18 = scalar_lea.vmem %s1133_s4, 16 }
  0xaa   : > { %p7265_p8 = scmp.ne.s32.totalorder %s1133_s4, %s7264_s18  ;;  %s7271_s1 = scalar_lea.vmem %s1133_s4, 32 }
  0xab   : > { %p7272_p6 = scmp.lt.s32.totalorder %s1133_s4, %s1133_s4  ;;  %p7273_p9 = scmp.lt.s32.totalorder %s7271_s1, %s7264_s18 }
  0xac   : > { %p7267_p11 = pnand %p7265_p8, %p7927_p13 }
  0xad   : > { %p7274_p1 = por %p7273_p9, %p7272_p6 }
  0xae   : > { %p7268_p0 = pneg %p7267_p11 }
  0xaf   : > { %6906 = dma.hbm_to_vmem [thread:$0]  (!%p7921_p12), %s8656_s3, 16, %s1109_s11, [#allocation21]  }
  0xb0   : > { %p7275_p3 = pnand %p7274_p1, %p7268_p0 }
  0xb2   : > { %7278 = shalt.err (!%p7275_p3)
}
  0xb3   : > { %6912 = dma.hbm_to_vmem [thread:$0]  (!%p7921_p12), %s7837_s25, 16, %s1133_s4, [#allocation24]  }
  0xb4   : > { %s7657_s8 = smov [#allocation2]   ;;  %s7658_s16 = smov [#allocation7]  }
  0xb5   : > { %s925_s20 = sshll.u32 %s7657_s8, 4  ;;  %s972_s14 = sshll.u32 %s7658_s16, 4  ;;  %s926_s20 = int_to_ptr.vmem [resolvable:$true] %s925_s20  ;;  %s973_s14 = int_to_ptr.vmem [resolvable:$true] %s972_s14 }
  0xb6   : > { %s7290_s11 = scalar_lea.vmem %s926_s20, 256  ;;  %p7298_p10 = scmp.lt.s32.totalorder %s926_s20, %s926_s20 }
  0xb7   : > { %p7291_p2 = scmp.ne.s32.totalorder %s926_s20, %s7290_s11  ;;  %p7299_p7 = scmp.lt.s32.totalorder %s7290_s11, %s7290_s11 }
  0xb9   : > { %p7293_p5 = pnand %p7291_p2, %p7927_p13  ;;  %p7300_p8 = por %p7299_p7, %p7298_p10 }
  0xbb   : > { %p7294_p4 = pneg %p7293_p5 }
  0xbd   : > { %p7301_p11 = pnand %p7300_p8, %p7294_p4 }
  0xbf   : > { %7304 = shalt.err (!%p7301_p11)
}
  0xc0   : > { %6873 = dma.hbm_to_vmem [thread:$0]  (!%p7921_p12), %s7687_s13, 256, %s926_s20, [#allocation3], %s8654_s22, %s8654_s22, %s8653_s15  }
  0xc1   : > { %s7316_s4 = scalar_lea.vmem %s973_s14, 512  ;;  %p7324_p1 = scmp.lt.s32.totalorder %s973_s14, %s973_s14 }
  0xc2   : > { %p7317_p0 = scmp.ne.s32.totalorder %s973_s14, %s7316_s4  ;;  %p7325_p3 = scmp.lt.s32.totalorder %s7316_s4, %s7316_s4 }
  0xc4   : > { %p7319_p6 = pnand %p7317_p0, %p7927_p13  ;;  %p7326_p2 = por %p7325_p3, %p7324_p1 }
  0xc6   : > { %p7320_p9 = pneg %p7319_p6 }
  0xc8   : > { %p7327_p5 = pnand %p7326_p2, %p7320_p9 }
  0xca   : > { %7330 = shalt.err (!%p7327_p5)
}
  0xcb   : > { %6879 = dma.hbm_to_vmem [thread:$0]  (!%p7921_p12), %s7732_s24, 512, %s973_s14, [#allocation6], %s8654_s22, %s8654_s22, %s8653_s15  }
  0xcc   : > { %s7659_s26 = smov [#allocation10]   ;;  %s7660_s1 = smov [#allocation13]  }
  0xcd   : > { %s1006_s18 = sshll.u32 %s7659_s26, 4  ;;  %s1040_s8 = sshll.u32 %s7660_s1, 4  ;;  %s1007_s18 = int_to_ptr.vmem [resolvable:$true] %s1006_s18  ;;  %s1041_s8 = int_to_ptr.vmem [resolvable:$true] %s1040_s8 }
  0xce   : > { %s7342_s20 = scalar_lea.vmem %s1007_s18, 16  ;;  %s7349_s16 = scalar_lea.vmem %s1007_s18, 32 }
  0xcf   : > { %p7343_p4 = scmp.ne.s32.totalorder %s1007_s18, %s7342_s20  ;;  %p7350_p8 = scmp.lt.s32.totalorder %s1007_s18, %s1007_s18 }
  0xd0   : > { %p7351_p11 = scmp.lt.s32.totalorder %s7349_s16, %s7342_s20 }
  0xd1   : > { %p7345_p10 = pnand %p7343_p4, %p7927_p13 }
  0xd2   : > { %p7352_p0 = por %p7351_p11, %p7350_p8 }
  0xd3   : > { %p7346_p7 = pneg %p7345_p10 }
  0xd5   : > { %p7353_p6 = pnand %p7352_p0, %p7346_p7 }
  0xd7   : > { %7356 = shalt.err (!%p7353_p6)
}
  0xd8   : > { %6885 = dma.hbm_to_vmem [thread:$0]  (!%p7921_p12), %s7757_s27, 16, %s1007_s18, [#allocation9]  }
  0xd9   : > { %s7368_s14 = scalar_lea.vmem %s1041_s8, 16  ;;  %s7375_s11 = scalar_lea.vmem %s1041_s8, 32 }
  0xda   : > { %p7369_p9 = scmp.ne.s32.totalorder %s1041_s8, %s7368_s14  ;;  %p7376_p2 = scmp.lt.s32.totalorder %s1041_s8, %s1041_s8 }
  0xdb   : > { %p7377_p5 = scmp.lt.s32.totalorder %s7375_s11, %s7368_s14 }
  0xdc   : > { %p7371_p1 = pnand %p7369_p9, %p7927_p13 }
  0xdd   : > { %p7378_p4 = por %p7377_p5, %p7376_p2 }
  0xde   : > { %p7372_p3 = pneg %p7371_p1 }
  0xe0   : > { %p7379_p10 = pnand %p7378_p4, %p7372_p3 }
  0xe2   : > { %7382 = shalt.err (!%p7379_p10)
}
  0xe3   : > { %6891 = dma.hbm_to_vmem [thread:$0]  (!%p7921_p12), %s7787_s19, 16, %s1041_s8, [#allocation12]  }
  0xe4   : > { %s7661_s4 = smov [#allocation16]   ;;  %s7662_s18 = smov [#allocation19]  }
  0xe5   : > { %s1073_s26 = sshll.u32 %s7661_s4, 4  ;;  %s1094_s1 = sshll.u32 %s7662_s18, 4  ;;  %s1074_s26 = int_to_ptr.vmem [resolvable:$true] %s1073_s26  ;;  %s1095_s1 = int_to_ptr.vmem [resolvable:$true] %s1094_s1 }
  0xe6   : > { %s7394_s20 = scalar_lea.vmem %s1074_s26, 16  ;;  %s7401_s16 = scalar_lea.vmem %s1074_s26, 32 }
  0xe7   : > { %p7395_p7 = scmp.ne.s32.totalorder %s1074_s26, %s7394_s20  ;;  %p7402_p0 = scmp.lt.s32.totalorder %s1074_s26, %s1074_s26 }
  0xe8   : > { %p7403_p6 = scmp.lt.s32.totalorder %s7401_s16, %s7394_s20 }
  0xe9   : > { %p7397_p8 = pnand %p7395_p7, %p7927_p13 }
  0xea   : > { %p7404_p9 = por %p7403_p6, %p7402_p0 }
  0xeb   : > { %p7398_p11 = pneg %p7397_p8 }
  0xed   : > { %p7405_p1 = pnand %p7404_p9, %p7398_p11 }
  0xef   : > { %7408 = shalt.err (!%p7405_p1)
}
  0xf0   : > { %s8657_s6 = sld [smem:[#allocation62_spill]]  ;;  %s7420_s8 = scalar_lea.vmem %s1095_s1, 512 }
  0xf1   : > { %p7421_p3 = scmp.ne.s32.totalorder %s1095_s1, %s7420_s8  ;;  %p7428_p4 = scmp.lt.s32.totalorder %s1095_s1, %s1095_s1 }
  0xf2   : > { %p7429_p10 = scmp.lt.s32.totalorder %s7420_s8, %s7420_s8 }
  0xf3   : > { %p7423_p2 = pnand %p7421_p3, %p7927_p13 }
  0xf4   : > { %p7430_p7 = por %p7429_p10, %p7428_p4 }
  0xf5   : > { %p7424_p5 = pneg %p7423_p2 }
  0xf6   : > { %6897 = dma.hbm_to_vmem [thread:$0]  (!%p7921_p12), %s8657_s6, 16, %s1074_s26, [#allocation15]  }
  0xf7   : > { %p7431_p8 = pnand %p7430_p7, %p7424_p5 }
  0xf9   : > { %7434 = shalt.err (!%p7431_p8)
}
  0xfa   : > { %6903 = dma.hbm_to_vmem [thread:$0]  (!%p7921_p12), %s7822_s12, 512, %s1095_s1, [#allocation18], %s8654_s22, %s8654_s22, %s8653_s15  }
  0xfb   : > { %s7663_s14 = smov [#allocation22]   ;;  %s7664_s4 = smov [#allocation25]  }
  0xfc   : > { %s1118_s11 = sshll.u32 %s7663_s14, 4  ;;  %s1143_s26 = sshll.u32 %s7664_s4, 4  ;;  %s1119_s11 = int_to_ptr.vmem [resolvable:$true] %s1118_s11  ;;  %s1144_s26 = int_to_ptr.vmem [resolvable:$true] %s1143_s26 }
  0xfd   : > { %s7446_s18 = scalar_lea.vmem %s1119_s11, 512  ;;  %p7454_p9 = scmp.lt.s32.totalorder %s1119_s11, %s1119_s11 }
  0xfe   : > { %p7447_p11 = scmp.ne.s32.totalorder %s1119_s11, %s7446_s18  ;;  %p7455_p1 = scmp.lt.s32.totalorder %s7446_s18, %s7446_s18 }
 0x100   : > { %p7449_p0 = pnand %p7447_p11, %p7927_p13  ;;  %p7456_p3 = por %p7455_p1, %p7454_p9 }
 0x102   : > { %p7450_p6 = pneg %p7449_p0 }
 0x104   : > { %p7457_p2 = pnand %p7456_p3, %p7450_p6 }
 0x106   : > { %7460 = shalt.err (!%p7457_p2)
}
 0x107   : > { %6909 = dma.hbm_to_vmem [thread:$0]  (!%p7921_p12), %s7832_s29, 512, %s1119_s11, [#allocation21], %s8654_s22, %s8654_s22, %s8653_s15  }
 0x108   : > { %s7472_s1 = scalar_lea.vmem %s1144_s26, 16  ;;  %s7479_s20 = scalar_lea.vmem %s1144_s26, 32 }
 0x109   : > { %p7473_p5 = scmp.ne.s32.totalorder %s1144_s26, %s7472_s1  ;;  %p7480_p7 = scmp.lt.s32.totalorder %s1144_s26, %s1144_s26 }
 0x10a   : > { %p7481_p8 = scmp.lt.s32.totalorder %s7479_s20, %s7472_s1 }
 0x10b   : > { %p7475_p4 = pnand %p7473_p5, %p7927_p13 }
 0x10c   : > { %p7482_p11 = por %p7481_p8, %p7480_p7 }
 0x10d   : > { %p7476_p10 = pneg %p7475_p4 }
 0x10f   : > { %p7483_p0 = pnand %p7482_p11, %p7476_p10 }
 0x111   : > { %7486 = shalt.err (!%p7483_p0)
}
 0x112   : > { %s8658_s16 = sld [smem:[#allocation64_spill]]  ;;  %s7665_s8 = smov [#allocation26]  }
 0x113   : > { %s1154_s14 = sshll.u32 %s7665_s8, 4  ;;  %s1155_s14 = int_to_ptr.vmem [resolvable:$true] %s1154_s14 }
 0x114   : > { %s7498_s15 = scalar_lea.vmem %s1155_s14, 16  ;;  %s7505_s22 = scalar_lea.vmem %s1155_s14, 32 }
 0x115   : > { %p7499_p6 = scmp.ne.s32.totalorder %s1155_s14, %s7498_s15  ;;  %p7506_p3 = scmp.lt.s32.totalorder %s1155_s14, %s1155_s14 }
 0x116   : > { %p7507_p2 = scmp.lt.s32.totalorder %s7505_s22, %s7498_s15 }
 0x117   : > { %p7501_p9 = pnand %p7499_p6, %p7927_p13 }
 0x118   : > { %6915 = dma.hbm_to_vmem [thread:$0]  (!%p7921_p12), %s8658_s16, 16, %s1144_s26, [#allocation24]  }
 0x119   : > { %p7502_p1 = pneg %p7501_p9  ;;  %p7508_p5 = por %p7507_p2, %p7506_p3 }
 0x11b   : > { %p7509_p4 = pnand %p7508_p5, %p7502_p1 }
 0x11d   : > { %7512 = shalt.err (!%p7509_p4)
}
 0x11e   : > { %6918 = dma.hbm_to_vmem [thread:$0]  (!%p7921_p12), %s7847_s17, 16, %s1155_s14, [#allocation27]  }
 0x11f   : > { %p8659_p10 = scmp.ne.s32.totalorder %s8647_s2, 0 }
 0x120   : > { %p8660_p7 = scmp.eq.s32.totalorder (!%p8659_p10), %s7885_s0, 0 }
 0x121   : > { %1181 = sbr.rel (%p8659_p10) target bundleno = 8060 (0x1f7c), region = 168 }
 0x126   : > { %7556 = dma.done.wait (%p8660_p7), [#allocation3], 256   ;;  %p8661_p8 = pmov %p8660_p7 }
 0x127   : > { %p8662_p13 = pmov %p8660_p7 }
 0x128   : > { %7558 = vsyncadd (%p8661_p8), [#allocation3], 4294967040 }
 0x129   : > { %7560 = dma.done.wait (%p8662_p13), [#allocation6], 1024   ;;  %p8663_p11 = pmov %p8660_p7 }
 0x12a   : > { %p8664_p0 = pmov %p8660_p7 }
 0x12b   : > { %7562 = vsyncadd (%p8663_p11), [#allocation6], 4294966272 }
 0x12c   : > { %7564 = dma.done.wait (%p8664_p0), [#allocation9], 80   ;;  %p8665_p12 = pmov %p8664_p0 }
 0x12d   : > { %p8666_p6 = pmov %p8664_p0 }
 0x12e   : > { %7566 = vsyncadd (%p8665_p12), [#allocation9], 4294967216 }
 0x12f   : > { %7568 = dma.done.wait (%p8666_p6), [#allocation12], 32   ;;  %p8667_p9 = pmov %p8664_p0 }
 0x130   : > { %p8668_p1 = pmov %p8664_p0 }
 0x131   : > { %7570 = vsyncadd (%p8667_p9), [#allocation12], 4294967264 }
 0x132   : > { %7572 = dma.done.wait (%p8668_p1), [#allocation15], 1040   ;;  %p8669_p3 = pmov %p8664_p0 }
 0x133   : > { %p8670_p2 = pmov %p8664_p0 }
 0x134   : > { %7574 = vsyncadd (%p8669_p3), [#allocation15], 4294966256 }
 0x135   : > { %7576 = dma.done.wait (%p8670_p2), [#allocation18], 528   ;;  %p8671_p5 = pmov %p8664_p0 }
 0x136   : > { %p8672_p4 = pmov %p8664_p0 }
 0x137   : > { %7578 = vsyncadd (%p8671_p5), [#allocation18], 4294966768 }
 0x138   : > { %7580 = dma.done.wait (%p8672_p4), [#allocation21], 528   ;;  %p8673_p10 = pmov %p8664_p0 }
 0x139   : > { %p8674_p7 = pmov %p8664_p0 }
 0x13a   : > { %7582 = vsyncadd (%p8673_p10), [#allocation21], 4294966768 }
 0x13b   : > { %7584 = dma.done.wait (%p8674_p7), [#allocation24], 32   ;;  %p8675_p8 = pmov %p8664_p0 }
 0x13c   : > { %p8676_p13 = pmov %p8664_p0 }
 0x13d   : > { %7586 = vsyncadd (%p8675_p8), [#allocation24], 4294967264 }
 0x13e   : > { %7588 = dma.done.wait (%p8676_p13), [#allocation27], 16   ;;  %p8677_p11 = pmov %p8664_p0 }
 0x13f   : > { %s8678_s7 = sld [smem:[#allocation39_spill]]  ;;  %p1332_p0 = scmp.lt.s32.totalorder %s7885_s0, 1  ;;  %vm1349_vm0 = vcmask 1043456   ;;  %vm1342_vm1 = vcmask 31744   ;;  %v1340_v13 = vld [vmem:[#allocation2] sm:$0xff]  ;;  %v1341_v14 = vld [vmem:[#allocation2 + $0x8] sm:$0xff] }
 0x140   : > { %7590 = vsyncadd (%p8677_p11), [#allocation27], 4294967280  ;;  %s8679_s2 = sld [smem:[#allocation40_spill]]  ;;  %vm1432_vm2 = vcmask 261120   ;;  %vm1672_vm3 = vcmask 130048   ;;  %vm7667_vm4 = vmmov 0  }
 0x141   : > { %s8680_s23 = sld [smem:[#allocation41_spill]]  ;;  %vm3135_vm7 = vcmask 64512   ;;  %p8704_p6 = scmp.ne.s32.totalorder %s8644_s28, 0 }
 0x142   : > { %s8681_s11 = sld [smem:[#allocation42_spill]] }
 0x143   : > { %s1333_s26 = scalar_select %p1332_p0, %s7885_s0, 1 }
 0x144   : > { %s8683_s20 = sld [smem:[#allocation43_spill]] }
 0x145   : > { %s6086_s18 = sshll.u32 %s1333_s26, 4  ;;  %s8684_s16 = sld [smem:[#allocation44_spill]] }
 0x146   : > { %s1336_s1 = scalar_lea.vmem %s8678_s7, %s6086_s18  ;;  %v1339_v0 = vld [vmem:[%s8679_s2] sm:$0xf]  ;;  %s8685_s8 = sld [smem:[#allocation45_spill]] }
 0x147   : > { %v1337_v1 = vld [vmem:[%s1336_s1] sm:$0xff]  ;;  %v8071_v2 = vld [vmem:[%s1336_s1 + $0x8] sm:$0xff]  ;;  %6322 = vmatprep.subr.msk.mxu0 %vm1349_vm0, %v1339_v0  ;;  %v1431_v3 = vld [vmem:[%s8680_s23 + $0x18] sm:$0xff]  ;;  %s8686_s14 = sld [smem:[#allocation46_spill]] }
 0x148   : > { %s8682_s4 = smov %s8681_s11  ;;  %6324 = vmatprep.mubr.msk.f32.mxu0 %vm1342_vm1, %v1337_v1  ;;  %v1517_v4 = vld [vmem:[%s8681_s11 + $0x18] sm:$0xff]  ;;  %v1430_v5 = vld [vmem:[%s8680_s23 + $0x10] sm:$0xff]  ;;  %6323 = vmatpush3.msk.msra.mxu0 %vm1349_vm0, %v1339_v0  ;;  %v1429_v7 = vld [vmem:[%s8680_s23 + $0x8] sm:$0xff]  ;;  %s8687_s15 = sld [smem:[#allocation54_spill]] }
 0x149   : > { %6327 = vmatprep.subr.mxu1 %v1431_v3  ;;  %6325 = vmatmul.mubr.msk.f32.vlgmr.msra.gmra.mxu0 %vm1342_vm1, %v8071_v2  ;;  %v1516_v6 = vld [vmem:[%s8682_s4 + $0x10] sm:$0xff]  ;;  %v1515_v8 = vld [vmem:[%s8682_s4 + $0x8] sm:$0xff]  ;;  %v1428_v9 = vld [vmem:[%s8680_s23] sm:$0xff]  ;;  %s8689_s7 = sld [smem:[#allocation48_spill]] }
 0x14a   : > { %6328 = vmatpush3.msra.mxu1 %v1431_v3  ;;  %6338 = vmatprep.subr.mxu0 %v1517_v4  ;;  %v1514_v10 = vld [vmem:[%s8682_s4] sm:$0xff]  ;;  %v1596_v11 = vld [vmem:[%s8683_s20 + $0x18] sm:$0xff]  ;;  %v1595_v18 = vld [vmem:[%s8683_s20 + $0x10] sm:$0xff]  ;;  %s8690_s2 = sld [smem:[#allocation53_spill]] }
 0x14b   : > { %6329 = vmatprep.subr.mxu1 %v1430_v5  ;;  %6339 = vmatpush3.msra.mxu0 %v1517_v4  ;;  %v1594_v19 = vld [vmem:[%s8683_s20 + $0x8] sm:$0xff]  ;;  %v1593_v20 = vld [vmem:[%s8683_s20] sm:$0xff]  ;;  %v5930_v25 = vld [vmem:[%s8680_s23 + $0x38] sm:$0xff]  ;;  %s8691_s11 = sld [smem:[#allocation55_spill]] }
 0x14c   : > { %6330 = vmatpush3.msra.mxu1 %v1430_v5  ;;  %6340 = vmatprep.subr.mxu0 %v1516_v6  ;;  %v5929_v27 = vld [vmem:[%s8680_s23 + $0x30] sm:$0xff]  ;;  %v5928_v29 = vld [vmem:[%s8680_s23 + $0x28] sm:$0xff]  ;;  %v5927_v30 = vld [vmem:[%s8680_s23 + $0x20] sm:$0xff]  ;;  %s8693_s18 = sld [smem:[#allocation49_spill]] }
 0x14d   : > { %6331 = vmatprep.subr.mxu1 %v1429_v7  ;;  %6341 = vmatpush3.msra.mxu0 %v1516_v6  ;;  %v5942_v31 = vld [vmem:[%s8683_s20 + $0x38] sm:$0xff]  ;;  %v5941_v32 = vld [vmem:[%s8683_s20 + $0x30] sm:$0xff]  ;;  %v5940_v33 = vld [vmem:[%s8683_s20 + $0x28] sm:$0xff]  ;;  %s8694_s1 = sld [smem:[#allocation56_spill]] }
 0x14e   : > { %6332 = vmatpush3.msra.mxu1 %v1429_v7  ;;  %6342 = vmatprep.subr.mxu0 %v1515_v8  ;;  %v5939_v34 = vld [vmem:[%s8683_s20 + $0x20] sm:$0xff]  ;;  %v5936_v53 = vld [vmem:[%s8682_s4 + $0x38] sm:$0xff]  ;;  %v5935_v60 = vld [vmem:[%s8682_s4 + $0x30] sm:$0xff]  ;;  %s8688_s22 = smov %s8687_s15  ;;  %s8703_s5 = sld [smem:[#allocation65_spill]] }
 0x14f   : > { %6333 = vmatprep.subr.mxu1 %v1428_v9  ;;  %6343 = vmatpush3.msra.mxu0 %v1515_v8  ;;  %v5934_v61 = vld [vmem:[%s8682_s4 + $0x28] sm:$0xff]  ;;  %v5933_v62 = vld [vmem:[%s8682_s4 + $0x20] sm:$0xff] }
 0x150   : > { %6334 = vmatpush3.msra.mxu1 %v1428_v9  ;;  %6344 = vmatprep.subr.mxu0 %v1514_v10 }
 0x151   : > { %6345 = vmatpush3.msra.mxu0 %v1514_v10  ;;  %6349 = vmatprep.subr.mxu1 %v1596_v11  ;;  %s8692_s26 = smov %s8691_s11 }
 0x209   : > { %v6326_v12 = vpop.f32.mrf.mxu0 }
 0x20a   : > { %v8089_v17 = vadd.f32 %v6326_v12, %v1341_v14 }
 0x20b   : > { %v1419_v15 = vpop.f32.mrf.mxu0 }
 0x20c   : > { %v8087_v16 = vadd.f32 %v1419_v15, %v1340_v13 }
 0x20e   : > { %6335 = vmatprep.mubr.msk.f32.mxu1 %vm1432_vm2, %v8087_v16  ;;  %6346 = vmatprep.mubr.msk.f32.mxu0 %vm1432_vm2, %v8087_v16 }
 0x20f   : > { %6336 = vmatmul.mubr.msk.f32.vlgmr.msra.gmra.mxu1 %vm1432_vm2, %v8089_v17  ;;  %6347 = vmatmul.mubr.msk.f32.vlgmr.msra.gmra.mxu0 %vm1432_vm2, %v8089_v17 }
 0x210   : > { %6350 = vmatpush3.msra.mxu1 %v1596_v11  ;;  %6357 = vmatprep.mubr.msk.f32.mxu1 %vm1432_vm2, %v8087_v16 }
 0x211   : > { %6351 = vmatprep.subr.mxu1 %v1595_v18 }
 0x212   : > { %6352 = vmatpush3.msra.mxu1 %v1595_v18 }
 0x213   : > { %6353 = vmatprep.subr.mxu1 %v1594_v19 }
 0x214   : > { %6354 = vmatpush3.msra.mxu1 %v1594_v19 }
 0x215   : > { %6355 = vmatprep.subr.mxu1 %v1593_v20 }
 0x216   : > { %6356 = vmatpush3.msra.mxu1 %v1593_v20  ;;  %v1866_v20 = vld [vmem:[%s8684_s16 + $0x18] sm:$0xff] }
 0x217   : > { %6358 = vmatmul.mubr.msk.f32.vlgmr.msra.gmra.mxu1 %vm1432_vm2, %v8089_v17 }
 0x2cf   : > { %v6337_v21 = vpop.f32.mrf.mxu1  ;;  %v6348_v22 = vpop.f32.mrf.mxu0 }
 0x2d0   : > { %6360 = vmatprep.subr.msk.mxu0 %vm1672_vm3, %v6348_v22 }
 0x2d1   : > { %v1505_v23 = vpop.f32.mrf.mxu1  ;;  %v1584_v24 = vpop.f32.mrf.mxu0  ;;  %6361 = vmatpush3.xpose.msk.msra.mxu0 %vm1672_vm3, %v6348_v22  ;;  %v5953_v22 = vld [vmem:[%s8684_s16 + $0x30] sm:$0xff] }
 0x2d2   : > { %6362 = vmatprep.subr.msk.mxu0 %vm1672_vm3, %v1584_v24  ;;  %6364 = vmatprep.mubr.msk.f32.mxu0 %vm1672_vm3, %v1505_v23 }
 0x2d5   : > { %6363 = vmatpush3.xpose.msk.msra.mxu0 %vm1672_vm3, %v1584_v24 }
 0x2d6   : > { %6374 = vmatprep.subr.mxu0 %v5930_v25 }
 0x2d7   : > { %v6359_v26 = vpop.f32.mrf.mxu1 }
 0x2d8   : > { %6367 = vmatprep.subr.mxu1 %v6359_v26  ;;  %6365 = vmatmul.mubr.msk.f32.vlgmr.msra.gmra.mxu0 %vm1672_vm3, %v6337_v21  ;;  %v5954_v21 = vld [vmem:[%s8684_s16 + $0x38] sm:$0xff] }
 0x2d9   : > { %v1663_v28 = vpop.f32.mrf.mxu1  ;;  %6368 = vmatpush3.msra.mxu1 %v6359_v26  ;;  %6375 = vmatpush3.msra.mxu0 %v5930_v25 }
 0x2da   : > { %6369 = vmatprep.subr.mxu1 %v1663_v28  ;;  %6382 = vmatprep.mubr.msk.f32.mxu0 %vm1432_vm2, %v8087_v16 }
 0x2db   : > { %6370 = vmatpush3.msra.mxu1 %v1663_v28  ;;  %6376 = vmatprep.subr.mxu0 %v5929_v27 }
 0x2dc   : > { %6377 = vmatpush3.msra.mxu0 %v5929_v27  ;;  %6385 = vmatprep.subr.mxu1 %v5936_v53 }
 0x2dd   : > { %6378 = vmatprep.subr.mxu0 %v5928_v29 }
 0x2de   : > { %6379 = vmatpush3.msra.mxu0 %v5928_v29  ;;  %v1865_v29 = vld [vmem:[%s8684_s16 + $0x10] sm:$0xff] }
 0x2df   : > { %6380 = vmatprep.subr.mxu0 %v5927_v30 }
 0x2e0   : > { %6381 = vmatpush3.msra.mxu0 %v5927_v30  ;;  %v1864_v30 = vld [vmem:[%s8684_s16 + $0x8] sm:$0xff] }
 0x2e1   : > { %6383 = vmatmul.mubr.msk.f32.vlgmr.msra.gmra.mxu0 %vm1432_vm2, %v8089_v17  ;;  %6396 = vmatprep.subr.mxu0 %v5942_v31 }
 0x2e2   : > { %6397 = vmatpush3.msra.mxu0 %v5942_v31  ;;  %6404 = vmatprep.mubr.msk.f32.mxu0 %vm1432_vm2, %v8087_v16  ;;  %v1863_v31 = vld [vmem:[%s8684_s16] sm:$0xff] }
 0x2e3   : > { %6398 = vmatprep.subr.mxu0 %v5941_v32 }
 0x2e4   : > { %6399 = vmatpush3.msra.mxu0 %v5941_v32  ;;  %v5952_v32 = vld [vmem:[%s8684_s16 + $0x28] sm:$0xff] }
 0x2e5   : > { %6400 = vmatprep.subr.mxu0 %v5940_v33 }
 0x2e6   : > { %6401 = vmatpush3.msra.mxu0 %v5940_v33  ;;  %v5951_v33 = vld [vmem:[%s8684_s16 + $0x20] sm:$0xff] }
 0x2e7   : > { %6402 = vmatprep.subr.mxu0 %v5939_v34 }
 0x2e8   : > { %6403 = vmatpush3.msra.mxu0 %v5939_v34 }
 0x2e9   : > { %6405 = vmatmul.mubr.msk.f32.vlgmr.msra.gmra.mxu0 %vm1432_vm2, %v8089_v17 }
 0x398   : > { %v6366_v35 = vpop.f32.mrf.mxu0 }
 0x399   : > { %v1763_v38 = vsel %vm1672_vm3, %v6366_v35, -inf }
 0x39a   : > { %v1751_v36 = vpop.f32.mrf.mxu0 }
 0x39b   : > { %v1760_v37 = vsel %vm1672_vm3, %v1751_v36, -inf }
 0x39c   : > { %1761 = vmax.xlane.f32.xlu0 %v1760_v37 }
 0x3a0   : > { %1764 = vmax.xlane.f32.xlu0 %v1763_v38 }
 0x3a1   : > { %v6384_v39 = vpop.f32.mrf.mxu0 }
 0x3a3   : > { %v1938_v40 = vpop.f32.mrf.mxu0 }
 0x3a9   : > { %v6406_v41 = vpop.f32.mrf.mxu0 }
 0x3aa   : > { %6414 = vmatprep.subr.mxu0 %v6406_v41 }
 0x3ab   : > { %v2098_v42 = vpop.f32.mrf.mxu0  ;;  %6415 = vmatpush3.msra.mxu0 %v6406_v41 }
 0x3ac   : > { %6416 = vmatprep.subr.mxu0 %v2098_v42 }
 0x3ad   : > { %6417 = vmatpush3.msra.mxu0 %v2098_v42 }
 0x3ae   : > { %6432 = vmatprep.subr.mxu0 %v1866_v20 }
 0x425   : > { %v1762_v43 = vpop.xlane.xlu0 %1761 }
 0x426   : > { %v1766_v44 = vsub.f32 %v1751_v36, %v1762_v43 }
 0x428   : > { %v1768_v45 = vmul.f32 1.442695, %v1766_v44 }
 0x429   : > { %v1765_v46 = vpop.xlane.xlu0 %1764 }
 0x42a   : > { %7045 = vpow2.f32 %v1768_v45  ;;  %v1767_v47 = vsub.f32 %v6366_v35, %v1765_v46 }
 0x42c   : > { %v1770_v48 = vmul.f32 1.442695, %v1767_v47 }
 0x42e   : > { %7047 = vpow2.f32 %v1770_v48 }
 0x437   : > { %v7046_v49 = vpop.eup %7045 }
 0x438   : > { %v1772_v50 = vsel %vm1672_vm3, %v7046_v49, 0.0 }
 0x439   : > { %1773 = vadd.xlane.f32.xlu1 %v1772_v50 }
 0x43b   : > { %v7048_v51 = vpop.eup %7047 }
 0x43c   : > { %v1775_v52 = vsel %vm1672_vm3, %v7048_v51, 0.0 }
 0x43d   : > { %1776 = vadd.xlane.f32.xlu1 %v1775_v52 }
 0x4c2   : > { %v1774_v54 = vpop.xlane.xlu1 %1773 }
 0x4c3   : > { %7049 = vrcp.f32 %v1774_v54 }
 0x4c6   : > { %v1777_v55 = vpop.xlane.xlu1 %1776 }
 0x4c7   : > { %7051 = vrcp.f32 %v1777_v55  ;;  %v2514_v55 = vld [vmem:[#allocation5 + $0x18] sm:$0xff] }
 0x4d0   : > { %v7050_v56 = vpop.eup %7049 }
 0x4d1   : > { %v1780_v57 = vmul.f32 %v7050_v56, %v7046_v49  ;;  %v2512_v56 = vld [vmem:[#allocation5 + $0x8] sm:$0xff] }
 0x4d3   : > { %6371 = vmatprep.mubr.msk.f32.mxu1 %vm1672_vm3, %v1780_v57  ;;  %v2511_v57 = vld [vmem:[#allocation5] sm:$0xff] }
 0x4d4   : > { %v7052_v58 = vpop.eup %7051 }
 0x4d5   : > { %v1781_v59 = vmul.f32 %v7052_v58, %v7048_v51  ;;  %v7666_v58 = vmov 0.0  }
 0x4d7   : > { %6372 = vmatmul.mubr.msk.f32.vlgmr.msra.gmra.mxu1 %vm1672_vm3, %v1781_v59 }
 0x4d8   : > { %6386 = vmatpush3.msra.mxu1 %v5936_v53  ;;  %6393 = vmatprep.mubr.msk.f32.mxu1 %vm1432_vm2, %v8087_v16 }
 0x4d9   : > { %6387 = vmatprep.subr.mxu1 %v5935_v60 }
 0x4da   : > { %6388 = vmatpush3.msra.mxu1 %v5935_v60 }
 0x4db   : > { %6389 = vmatprep.subr.mxu1 %v5934_v61 }
 0x4dc   : > { %6390 = vmatpush3.msra.mxu1 %v5934_v61 }
 0x4dd   : > { %6391 = vmatprep.subr.mxu1 %v5933_v62 }
 0x4de   : > { %6392 = vmatpush3.msra.mxu1 %v5933_v62 }
 0x4df   : > { %6394 = vmatmul.mubr.msk.f32.vlgmr.msra.gmra.mxu1 %vm1432_vm2, %v8089_v17 }
 0x4e0   : > { %6411 = vmatprep.mubr.msk.f32.mxu1 %vm1672_vm3, %v1938_v40 }
 0x597   : > { %v6373_v63 = vpop.f32.mrf.mxu1 }
 0x599   : > { %v1854_v0 = vpop.f32.mrf.mxu1 }
 0x59f   : > { %v6395_v1 = vpop.f32.mrf.mxu1 }
 0x5a0   : > { %6407 = vmatprep.subr.msk.mxu1 %vm1672_vm3, %v6395_v1 }
 0x5a1   : > { %v2018_v3 = vpop.f32.mrf.mxu1  ;;  %6408 = vmatpush3.xpose.msk.msra.mxu1 %vm1672_vm3, %v6395_v1 }
 0x5a2   : > { %6409 = vmatprep.subr.msk.mxu1 %vm1672_vm3, %v2018_v3 }
 0x5a5   : > { %6410 = vmatpush3.xpose.msk.msra.mxu1 %vm1672_vm3, %v2018_v3  ;;  %v5959_v3 = vld [vmem:[%s8685_s8] ss:$0 sm:$0xff]  ;;  %s8695_s8 = sld [smem:[#allocation50_spill]] }
 0x5a6   : > { %6421 = vmatprep.subr.mxu1 %v5954_v21 }
 0x5a8   : > { %6412 = vmatmul.mubr.msk.f32.vlgmr.msra.gmra.mxu1 %vm1672_vm3, %v6384_v39 }
 0x5a9   : > { %6422 = vmatpush3.msra.mxu1 %v5954_v21  ;;  %v2911_v21 = vld [vmem:[%s8688_s22] sm:$0xff] }
 0x5aa   : > { %6423 = vmatprep.subr.mxu1 %v5953_v22 }
 0x5ab   : > { %6424 = vmatpush3.msra.mxu1 %v5953_v22  ;;  %v5961_v22 = vld [vmem:[%s8689_s7] ss:$0 sm:$0xff]  ;;  %s8699_s7 = sld [smem:[#allocation58_spill]] }
 0x5ac   : > { %6425 = vmatprep.subr.mxu1 %v5952_v32 }
 0x5ad   : > { %6426 = vmatpush3.msra.mxu1 %v5952_v32 }
 0x5ae   : > { %6427 = vmatprep.subr.mxu1 %v5951_v33 }
 0x5af   : > { %6428 = vmatpush3.msra.mxu1 %v5951_v33 }
 0x5b0   : > { %6443 = vmatprep.subr.mxu1 %v2514_v55 }
 0x668   : > { %v6413_v4 = vpop.f32.mrf.mxu1 }
 0x669   : > { %v2197_v5 = vsel %vm1672_vm3, %v6413_v4, -inf }
 0x66a   : > { %2198 = vmax.xlane.f32.xlu1 %v2197_v5  ;;  %v2185_v6 = vpop.f32.mrf.mxu1 }
 0x66b   : > { %v2194_v7 = vsel %vm1672_vm3, %v2185_v6, -inf }
 0x66c   : > { %2195 = vmax.xlane.f32.xlu0 %v2194_v7 }
 0x6f3   : > { %v2199_v8 = vpop.xlane.xlu1 %2198 }
 0x6f4   : > { %v2201_v9 = vsub.f32 %v6413_v4, %v2199_v8  ;;  %v5960_v8 = vld [vmem:[%s8686_s14] ss:$0 sm:$0xff]  ;;  %s8696_s14 = sld [smem:[#allocation51_spill]] }
 0x6f5   : > { %v2196_v10 = vpop.xlane.xlu0 %2195 }
 0x6f6   : > { %v2204_v11 = vmul.f32 1.442695, %v2201_v9  ;;  %v2200_v12 = vsub.f32 %v2185_v6, %v2196_v10 }
 0x6f8   : > { %7053 = vpow2.f32 %v2204_v11  ;;  %v2202_v13 = vmul.f32 1.442695, %v2200_v12  ;;  %v2753_v12 = vld [vmem:[#allocation8] sm:$0xf] }
 0x6fa   : > { %7055 = vpow2.f32 %v2202_v13  ;;  %v2618_v13 = vld [vmem:[#allocation7 + $0x18] sm:$0xff] }
 0x705   : > { %v7054_v14 = vpop.eup %7053 }
 0x706   : > { %v2209_v15 = vsel %vm1672_vm3, %v7054_v14, 0.0 }
 0x707   : > { %v7056_v18 = vpop.eup %7055  ;;  %2210 = vadd.xlane.f32.xlu1 %v2209_v15  ;;  %v2616_v15 = vld [vmem:[#allocation7 + $0x8] sm:$0xff] }
 0x708   : > { %v2206_v19 = vsel %vm1672_vm3, %v7056_v18, 0.0 }
 0x709   : > { %2207 = vadd.xlane.f32.xlu0 %v2206_v19  ;;  %v2615_v19 = vld [vmem:[#allocation7] sm:$0xff] }
 0x790   : > { %v2211_v23 = vpop.xlane.xlu1 %2210 }
 0x791   : > { %7057 = vrcp.f32 %v2211_v23 }
 0x792   : > { %v2208_v24 = vpop.xlane.xlu0 %2207 }
 0x793   : > { %7059 = vrcp.f32 %v2208_v24 }
 0x79e   : > { %v7058_v25 = vpop.eup %7057 }
 0x79f   : > { %v2215_v28 = vmul.f32 %v7058_v25, %v7054_v14  ;;  %v2617_v14 = vld [vmem:[#allocation7 + $0x10] sm:$0xff] }
 0x7a0   : > { %v7060_v26 = vpop.eup %7059 }
 0x7a1   : > { %v2214_v27 = vmul.f32 %v7060_v26, %v7056_v18  ;;  %v2914_v18 = vld [vmem:[%s8687_s15 + $0x18] sm:$0xff]  ;;  %v5971_v26 = vld [vmem:[#allocation10] ss:$0 sm:$0xff]  ;;  %s8697_s15 = sld [smem:[#allocation59_spill]] }
 0x7a3   : > { %6418 = vmatprep.mubr.msk.f32.mxu0 %vm1672_vm3, %v2214_v27 }
 0x7a4   : > { %6419 = vmatmul.mubr.msk.f32.vlgmr.msra.gmra.mxu0 %vm1672_vm3, %v2215_v28 }
 0x7a5   : > { %6433 = vmatpush3.msra.mxu0 %v1866_v20  ;;  %6440 = vmatprep.mubr.msk.f32.mxu0 %vm1432_vm2, %v1854_v0  ;;  %v2913_v20 = vld [vmem:[%s8688_s22 + $0x10] sm:$0xff] }
 0x7a6   : > { %6434 = vmatprep.subr.mxu0 %v1865_v29 }
 0x7a7   : > { %6435 = vmatpush3.msra.mxu0 %v1865_v29 }
 0x7a8   : > { %6436 = vmatprep.subr.mxu0 %v1864_v30 }
 0x7a9   : > { %6437 = vmatpush3.msra.mxu0 %v1864_v30 }
 0x7aa   : > { %6438 = vmatprep.subr.mxu0 %v1863_v31 }
 0x7ab   : > { %6439 = vmatpush3.msra.mxu0 %v1863_v31 }
 0x7ac   : > { %6441 = vmatmul.mubr.msk.f32.vlgmr.msra.gmra.mxu0 %vm1432_vm2, %v6373_v63  ;;  %6454 = vmatprep.subr.mxu0 %v2618_v13 }
 0x7ad   : > { %6455 = vmatpush3.msra.mxu0 %v2618_v13 }
 0x7ae   : > { %6456 = vmatprep.subr.mxu0 %v2617_v14 }
 0x7af   : > { %6457 = vmatpush3.msra.mxu0 %v2617_v14 }
 0x7b0   : > { %6458 = vmatprep.subr.mxu0 %v2616_v15 }
 0x7b1   : > { %6459 = vmatpush3.msra.mxu0 %v2616_v15 }
 0x7b2   : > { %6460 = vmatprep.subr.mxu0 %v2615_v19 }
 0x7b3   : > { %6461 = vmatpush3.msra.mxu0 %v2615_v19 }
 0x7b4   : > { %6470 = vmatprep.subr.mxu0 %v7666_v58 }
 0x864   : > { %v6420_v34 = vpop.f32.mrf.mxu0 }
 0x866   : > { %v2288_v35 = vpop.f32.mrf.mxu0 }
 0x867   : > { %6429 = vmatprep.mubr.msk.f32.mxu1 %vm1432_vm2, %v2288_v35 }
 0x868   : > { %6430 = vmatmul.mubr.msk.f32.vlgmr.msra.gmra.mxu1 %vm1432_vm2, %v6420_v34 }
 0x869   : > { %6444 = vmatpush3.msra.mxu1 %v2514_v55  ;;  %v5990_v55 = vld [vmem:[%s8692_s26 + $0x20] sm:$0xff] }
 0x86c   : > { %v6442_v36 = vpop.f32.mrf.mxu0 }
 0x86e   : > { %v2455_v39 = vpop.f32.mrf.mxu0 }
 0x928   : > { %v6431_v37 = vpop.f32.mrf.mxu1 }
 0x929   : > { %v2461_v38 = vadd.f32 %v6442_v36, %v6431_v37 }
 0x92a   : > { %v2374_v40 = vpop.f32.mrf.mxu1 }
 0x92b   : > { %v2456_v41 = vadd.f32 %v2455_v39, %v2374_v40  ;;  %v2465_v42 = vadd.f32 %v2461_v38, %v8089_v17  ;;  %v2837_v40 = vld [vmem:[%s8690_s2 + $0x18] sm:$0xff] }
 0x92d   : > { %v2471_v43 = vsel %vm1432_vm2, %v2465_v42, 0.0  ;;  %v2464_v44 = vadd.f32 %v2456_v41, %v8087_v16  ;;  %v2513_v16 = vld [vmem:[#allocation5 + $0x10] sm:$0xff] }
 0x92e   : > { %2472 = vadd.xlane.f32.xlu1 %v2471_v43  ;;  %6445 = vmatprep.subr.mxu1 %v2513_v16  ;;  %v2835_v43 = vld [vmem:[%s8690_s2 + $0x8] sm:$0xff] }
 0x92f   : > { %v2468_v45 = vsel %vm1432_vm2, %v2464_v44, 0.0  ;;  %6446 = vmatpush3.msra.mxu1 %v2513_v16 }
 0x930   : > { %2469 = vadd.xlane.f32.xlu0 %v2468_v45  ;;  %6447 = vmatprep.subr.mxu1 %v2512_v56  ;;  %v2988_v45 = vld [vmem:[%s8691_s11 + $0x18] sm:$0xff]  ;;  %s8701_s11 = sld [smem:[#allocation60_spill]] }
 0x931   : > { %6448 = vmatpush3.msra.mxu1 %v2512_v56 }
 0x932   : > { %6449 = vmatprep.subr.mxu1 %v2511_v57 }
 0x933   : > { %6450 = vmatpush3.msra.mxu1 %v2511_v57  ;;  %v5966_v57 = vld [vmem:[%s8693_s18] ss:$0 sm:$0xff]  ;;  %s8698_s18 = smov %s8697_s15 }
 0x934   : > { %6465 = vmatprep.subr.mxu1 %v7666_v58 }
 0x9b7   : > { %v2473_v46 = vpop.xlane.xlu1 %2472 }
 0x9b8   : > { %v2476_v47 = vmul.f32 0.03125, %v2473_v46  ;;  %v2987_v46 = vld [vmem:[%s8692_s26 + $0x10] sm:$0xff] }
 0x9b9   : > { %v2470_v48 = vpop.xlane.xlu0 %2469 }
 0x9ba   : > { %v2478_v49 = vsub.f32 %v2465_v42, %v2476_v47  ;;  %v2475_v50 = vmul.f32 0.03125, %v2470_v48  ;;  %v2836_v42 = vld [vmem:[%s8690_s2 + $0x10] sm:$0xff]  ;;  %v2986_v47 = vld [vmem:[%s8692_s26 + $0x8] sm:$0xff]  ;;  %v2985_v48 = vld [vmem:[%s8692_s26] sm:$0xff] }
 0x9bc   : > { %v2477_v51 = vsub.f32 %v2464_v44, %v2475_v50  ;;  %v2480_v52 = vmul.f32 %v2478_v49, %v2478_v49  ;;  %v2834_v44 = vld [vmem:[%s8690_s2] sm:$0xff]  ;;  %v5982_v50 = vld [vmem:[%s8690_s2 + $0x30] sm:$0xff] }
 0x9be   : > { %v2484_v53 = vsel %vm1432_vm2, %v2480_v52, 0.0  ;;  %v2479_v54 = vmul.f32 %v2477_v51, %v2477_v51  ;;  %v5980_v52 = vld [vmem:[%s8690_s2 + $0x20] sm:$0xff] }
 0x9bf   : > { %2485 = vadd.xlane.f32.xlu1 %v2484_v53  ;;  %v5993_v53 = vld [vmem:[%s8692_s26 + $0x38] sm:$0xff] }
 0x9c0   : > { %v2481_v17 = vsel %vm1432_vm2, %v2479_v54, 0.0  ;;  %v5992_v54 = vld [vmem:[%s8692_s26 + $0x30] sm:$0xff] }
 0x9c1   : > { %2482 = vadd.xlane.f32.xlu0 %v2481_v17  ;;  %v5991_v17 = vld [vmem:[%s8692_s26 + $0x28] sm:$0xff] }
 0xa48   : > { %v2486_v59 = vpop.xlane.xlu1 %2485 }
 0xa49   : > { %v2488_v60 = vmul.f32 0.03125, %v2486_v59 }
 0xa4a   : > { %v2483_v61 = vpop.xlane.xlu0 %2482 }
 0xa4b   : > { %v2490_v62 = vadd.f32 1e-05, %v2488_v60  ;;  %v2487_v63 = vmul.f32 0.03125, %v2483_v61 }
 0xa4d   : > { %7061 = vrsqrt.f32 %v2490_v62  ;;  %v2489_v0 = vadd.f32 1e-05, %v2487_v63 }
 0xa4f   : > { %7063 = vrsqrt.f32 %v2489_v0 }
 0xa5a   : > { %v7062_v1 = vpop.eup %7061 }
 0xa5b   : > { %v2494_v4 = vmul.f32 %v7062_v1, %v2478_v49  ;;  %v5983_v49 = vld [vmem:[%s8690_s2 + $0x38] sm:$0xff] }
 0xa5c   : > { %v7064_v5 = vpop.eup %7063 }
 0xa5d   : > { %v2493_v6 = vmul.f32 %v7064_v5, %v2477_v51  ;;  %v2502_v7 = vmul.f32 %v5959_v3, %v2494_v4  ;;  %v5981_v51 = vld [vmem:[%s8690_s2 + $0x28] sm:$0xff] }
 0xa5f   : > { %v2501_v9 = vmul.f32 %v5959_v3, %v2493_v6  ;;  %v8177_v11 = vadd.f32 %v5960_v8, %v2502_v7 }
 0xa61   : > { %v8175_v10 = vadd.f32 %v5960_v8, %v2501_v9 }
 0xa63   : > { %6451 = vmatprep.mubr.msk.f32.mxu1 %vm1432_vm2, %v8175_v10 }
 0xa64   : > { %6452 = vmatmul.mubr.msk.f32.vlgmr.msra.gmra.mxu1 %vm1432_vm2, %v8177_v11 }
 0xa65   : > { %6466 = vmatpush3.msk.msra.mxu1 %vm1349_vm0, %v2753_v12  ;;  %6467 = vmatprep.mubr.msk.f32.mxu1 %vm7667_vm4, %v7666_v58 }
 0xa66   : > { %6481 = vmatprep.subr.mxu1 %v7666_v58 }
 0xa68   : > { %6468 = vmatmul.mubr.msk.f32.vlgmr.msra.gmra.mxu1 %vm1342_vm1, %v8071_v2  ;;  %v2912_v2 = vld [vmem:[%s8688_s22 + $0x8] sm:$0xff] }
 0xa69   : > { %6489 = vmatprep.mubr.msk.f32.mxu1 %vm7667_vm4, %v7666_v58  ;;  %6482 = vmatpush3.msra.mxu1 %v2914_v18 }
 0xa6a   : > { %6483 = vmatprep.subr.mxu1 %v7666_v58 }
 0xa6b   : > { %6484 = vmatpush3.msra.mxu1 %v2913_v20 }
 0xa6c   : > { %6485 = vmatprep.subr.mxu1 %v7666_v58 }
 0xa6d   : > { %6486 = vmatpush3.msra.mxu1 %v2912_v2 }
 0xa6e   : > { %6487 = vmatprep.subr.mxu1 %v7666_v58 }
 0xa6f   : > { %6488 = vmatpush3.msra.mxu1 %v2911_v21  ;;  %v5988_v21 = vld [vmem:[%s8688_s22 + $0x38] sm:$0xff] }
 0xa70   : > { %6503 = vmatprep.subr.mxu1 %v7666_v58 }
 0xb24   : > { %v6453_v23 = vpop.f32.mrf.mxu1 }
 0xb25   : > { %v2600_v24 = vadd.f32 %v6453_v23, %v5961_v22  ;;  %v5986_v23 = vld [vmem:[%s8688_s22 + $0x28] sm:$0xff] }
 0xb26   : > { %v2594_v25 = vpop.f32.mrf.mxu1 }
 0xb27   : > { %v2606_v27 = vmin.f32 %v2600_v24, 0.0  ;;  %v2595_v28 = vadd.f32 %v5961_v22, %v2594_v25  ;;  %vm2604_vm6 = vcmp.gt.f32.partialorder %v2600_v24, 0.0  ;;  %v5987_v22 = vld [vmem:[%s8688_s22 + $0x30] sm:$0xff] }
 0xb28   : > { %v2830_v29 = vpop.f32.mrf.mxu1 }
 0xb29   : > { %v2609_v30 = vmul.f32 1.442695, %v2606_v27  ;;  %v2605_v31 = vmin.f32 %v2595_v28, 0.0  ;;  %v8201_v32 = vadd.f32 %v5971_v26, %v2830_v29  ;;  %vm2603_vm5 = vcmp.gt.f32.partialorder %v2595_v28, 0.0 }
 0xb2a   : > { %v6469_v33 = vpop.f32.mrf.mxu1 }
 0xb2b   : > { %7065 = vpow2.f32 %v2609_v30  ;;  %v2607_v34 = vmul.f32 1.442695, %v2605_v31  ;;  %6490 = vmatmul.mubr.msk.f32.vlgmr.msra.gmra.mxu1 %vm1432_vm2, %v8201_v32 }
 0xb2c   : > { %6505 = vmatprep.mubr.msk.f32.mxu1 %vm7667_vm4, %v7666_v58 }
 0xb2d   : > { %7067 = vpow2.f32 %v2607_v34 }
 0xb38   : > { %v7066_v35 = vpop.eup %7065 }
 0xb39   : > { %v5965_v37 = vadd.f32 -1.0, %v7066_v35 }
 0xb3a   : > { %v7068_v36 = vpop.eup %7067 }
 0xb3b   : > { %v5964_v38 = vadd.f32 -1.0, %v7068_v36  ;;  %v2614_v41 = vsel %vm2604_vm6, %v2600_v24, %v5965_v37  ;;  %v5985_v24 = vld [vmem:[%s8688_s22 + $0x20] sm:$0xff] }
 0xb3d   : > { %v2613_v39 = vsel %vm2603_vm5, %v2595_v28, %v5964_v38 }
 0xb3e   : > { %6462 = vmatprep.mubr.msk.f32.mxu0 %vm1432_vm2, %v2613_v39 }
 0xb3f   : > { %6463 = vmatmul.mubr.msk.f32.vlgmr.msra.gmra.mxu0 %vm1432_vm2, %v2614_v41 }
 0xb40   : > { %6471 = vmatpush3.msra.mxu0 %v2837_v40  ;;  %6478 = vmatprep.mubr.msk.f32.mxu0 %vm7667_vm4, %v7666_v58 }
 0xb41   : > { %6472 = vmatprep.subr.mxu0 %v7666_v58 }
 0xb42   : > { %6473 = vmatpush3.msra.mxu0 %v2836_v42 }
 0xb43   : > { %6474 = vmatprep.subr.mxu0 %v7666_v58 }
 0xb44   : > { %6475 = vmatpush3.msra.mxu0 %v2835_v43 }
 0xb45   : > { %6476 = vmatprep.subr.mxu0 %v7666_v58 }
 0xb46   : > { %6477 = vmatpush3.msra.mxu0 %v2834_v44 }
 0xb47   : > { %6479 = vmatmul.mubr.msk.f32.vlgmr.msra.gmra.mxu0 %vm1432_vm2, %v8201_v32  ;;  %6492 = vmatprep.subr.mxu0 %v7666_v58 }
 0xb48   : > { %6493 = vmatpush3.msra.mxu0 %v2988_v45  ;;  %6500 = vmatprep.mubr.msk.f32.mxu0 %vm7667_vm4, %v7666_v58 }
 0xb49   : > { %6494 = vmatprep.subr.mxu0 %v7666_v58 }
 0xb4a   : > { %6495 = vmatpush3.msra.mxu0 %v2987_v46 }
 0xb4b   : > { %6496 = vmatprep.subr.mxu0 %v7666_v58 }
 0xb4c   : > { %6497 = vmatpush3.msra.mxu0 %v2986_v47  ;;  %v6001_v47 = vld [vmem:[%s8694_s1 + $0x38] sm:$0xff] }
 0xb4d   : > { %6498 = vmatprep.subr.mxu0 %v7666_v58 }
 0xb4e   : > { %6499 = vmatpush3.msra.mxu0 %v2985_v48  ;;  %v6000_v48 = vld [vmem:[%s8694_s1 + $0x30] sm:$0xff] }
 0xb4f   : > { %6501 = vmatmul.mubr.msk.f32.vlgmr.msra.gmra.mxu0 %vm1432_vm2, %v8201_v32  ;;  %6513 = vmatprep.subr.mxu0 %v7666_v58 }
 0xb50   : > { %6514 = vmatpush3.msra.mxu0 %v5983_v49  ;;  %6521 = vmatprep.mubr.msk.f32.mxu0 %vm7667_vm4, %v7666_v58  ;;  %v5999_v49 = vld [vmem:[%s8694_s1 + $0x28] sm:$0xff] }
 0xb51   : > { %6515 = vmatprep.subr.mxu0 %v7666_v58 }
 0xb52   : > { %6516 = vmatpush3.msra.mxu0 %v5982_v50 }
 0xb53   : > { %6517 = vmatprep.subr.mxu0 %v7666_v58 }
 0xb54   : > { %6518 = vmatpush3.msra.mxu0 %v5981_v51 }
 0xb55   : > { %6519 = vmatprep.subr.mxu0 %v7666_v58 }
 0xb56   : > { %6520 = vmatpush3.msra.mxu0 %v5980_v52 }
 0xb57   : > { %6522 = vmatmul.mubr.msk.f32.vlgmr.msra.gmra.mxu0 %vm1432_vm2, %v8201_v32  ;;  %6535 = vmatprep.subr.mxu0 %v7666_v58 }
 0xb58   : > { %6536 = vmatpush3.msra.mxu0 %v5993_v53  ;;  %6543 = vmatprep.mubr.msk.f32.mxu0 %vm7667_vm4, %v7666_v58 }
 0xb59   : > { %6537 = vmatprep.subr.mxu0 %v7666_v58 }
 0xb5a   : > { %6538 = vmatpush3.msra.mxu0 %v5992_v54 }
 0xb5b   : > { %6539 = vmatprep.subr.mxu0 %v7666_v58 }
 0xb5c   : > { %6540 = vmatpush3.msra.mxu0 %v5991_v17 }
 0xb5d   : > { %6541 = vmatprep.subr.mxu0 %v7666_v58 }
 0xb5e   : > { %6542 = vmatpush3.msra.mxu0 %v5990_v55  ;;  %v3223_v55 = vld [vmem:[%s8694_s1 + $0x18] sm:$0xff] }
 0xb5f   : > { %6544 = vmatmul.mubr.msk.f32.vlgmr.msra.gmra.mxu0 %vm1432_vm2, %v8201_v32  ;;  %6556 = vmatprep.subr.mxu0 %v7666_v58 }
 0xb60   : > { %6564 = vmatprep.mubr.msk.f32.mxu0 %vm7667_vm4, %v7666_v58  ;;  %6557 = vmatpush3.msra.mxu0 %v6001_v47 }
 0xb61   : > { %6558 = vmatprep.subr.mxu0 %v7666_v58 }
 0xb62   : > { %6559 = vmatpush3.msra.mxu0 %v6000_v48 }
 0xb63   : > { %6560 = vmatprep.subr.mxu0 %v7666_v58 }
 0xb64   : > { %6561 = vmatpush3.msra.mxu0 %v5999_v49 }
 0xb65   : > { %6562 = vmatprep.subr.mxu0 %v7666_v58 }
 0xbeb   : > { %v2981_v16 = vpop.f32.mrf.mxu1 }
 0xbec   : > { %6504 = vmatpush3.xpose.msk.msra.mxu1 %vm1672_vm3, %v2981_v16  ;;  %v3222_v16 = vld [vmem:[%s8694_s1 + $0x10] sm:$0xff] }
 0xbed   : > { %v6491_v56 = vpop.f32.mrf.mxu1  ;;  %6508 = vmatprep.subr.mxu1 %v7666_v58 }
 0xbee   : > { %v3221_v56 = vld [vmem:[%s8694_s1 + $0x8] sm:$0xff] }
 0xbff   : > { %v6464_v59 = vpop.f32.mrf.mxu0 }
 0xc00   : > { %v8262_v60 = vadd.f32 %v6464_v59, %v5966_v57 }
 0xc01   : > { %v2698_v61 = vpop.f32.mrf.mxu0 }
 0xc02   : > { %v2699_v29 = vadd.f32 %v5966_v57, %v2698_v61  ;;  %v3220_v57 = vld [vmem:[%s8694_s1] sm:$0xff] }
 0xc04   : > { %v2707_v33 = vadd.f32 %v2699_v29, %v8175_v10  ;;  %v2708_v10 = vadd.f32 %v8262_v60, %v8177_v11  ;;  %v5969_v60 = vld [vmem:[%s8695_s8] ss:$0 sm:$0xff]  ;;  %s8700_s8 = smov %s8699_s7 }
 0xc06   : > { %v2711_v35 = vsel %vm1432_vm2, %v2707_v33, 0.0  ;;  %v2714_v44 = vsel %vm1432_vm2, %v2708_v10, 0.0 }
 0xc07   : > { %v2907_v62 = vpop.f32.mrf.mxu0 }
 0xc08   : > { %6506 = vmatmul.mubr.msk.f32.vlgmr.msra.gmra.mxu1 %vm1672_vm3, %v2907_v62  ;;  %v5970_v62 = vld [vmem:[%s8696_s14] ss:$0 sm:$0xff]  ;;  %s8702_s14 = smov %s8701_s11 }
 0xc09   : > { %v6480_v63 = vpop.f32.mrf.mxu0  ;;  %6510 = vmatprep.mubr.msk.f32.mxu1 %vm7667_vm4, %v7666_v58  ;;  %v3954_v48 = vld [vmem:[%s8702_s14 + $0x10] sm:$0xff]  ;;  %v3953_v49 = vld [vmem:[%s8702_s14 + $0x8] sm:$0xff] }
 0xc0f   : > { %v3055_v0 = vpop.f32.mrf.mxu0 }
 0xc10   : > { %6509 = vmatpush3.msra.mxu1 %v3055_v0 }
 0xc11   : > { %v6502_v1 = vpop.f32.mrf.mxu0  ;;  %6524 = vmatprep.subr.mxu1 %v7666_v58 }
 0xc12   : > { %v5998_v1 = vld [vmem:[%s8694_s1 + $0x20] sm:$0xff] }
 0xc13   : > { %6563 = vmatpush3.msra.mxu0 %v5998_v1 }
 0xc14   : > { %6578 = vmatprep.subr.mxu0 %v7666_v58 }
 0xc17   : > { %v3295_v3 = vpop.f32.mrf.mxu0 }
 0xc19   : > { %v6523_v4 = vpop.f32.mrf.mxu0 }
 0xc1f   : > { %v3445_v5 = vpop.f32.mrf.mxu0 }
 0xc21   : > { %v6545_v6 = vpop.f32.mrf.mxu0 }
 0xcc8   : > { %v3131_v7 = vpop.f32.mrf.mxu1 }
 0xcc9   : > { %v3136_v8 = vsel %vm3135_vm7, %v3131_v7, -inf }
 0xcca   : > { %3137 = vmax.xlane.f32.xlu0 %v3136_v8  ;;  %v6507_v9 = vpop.f32.mrf.mxu1 }
 0xd53   : > { %v3138_v12 = vpop.xlane.xlu0 %3137 }
 0xd54   : > { %v3139_v13 = vsub.f32 %v3131_v7, %v3138_v12 }
 0xd56   : > { %v3140_v14 = vmul.f32 1.442695, %v3139_v13 }
 0xd58   : > { %7069 = vpow2.f32 %v3140_v14 }
 0xd65   : > { %v7070_v15 = vpop.eup %7069 }
 0xd66   : > { %v3142_v18 = vsel %vm3135_vm7, %v7070_v15, 0.0 }
 0xd67   : > { %3143 = vadd.xlane.f32.xlu1 %v3142_v18 }
 0xdf0   : > { %v3144_v19 = vpop.xlane.xlu1 %3143 }
 0xdf1   : > { %7071 = vrcp.f32 %v3144_v19 }
 0xdfe   : > { %v7072_v20 = vpop.eup %7071 }
 0xdff   : > { %v3146_v2 = vmul.f32 %v7072_v20, %v7070_v15  ;;  %v3870_v20 = vld [vmem:[%s8697_s15 + $0x18] sm:$0xff]  ;;  %s1330_s15 = sand.u32 1, %s7601_s10  }
 0xe00   : > { %s5615_s3 = scalar_lea.sflag [#allocation4], %s1330_s15 }
 0xe01   : > { %6511 = vmatmul.mubr.msk.f32.vlgmr.msra.gmra.mxu1 %vm3135_vm7, %v3146_v2  ;;  %v3869_v2 = vld [vmem:[%s8698_s18 + $0x10] sm:$0xff] }
 0xe02   : > { %6525 = vmatpush3.msra.mxu1 %v5988_v21  ;;  %6532 = vmatprep.mubr.msk.f32.mxu1 %vm7667_vm4, %v7666_v58  ;;  %v3868_v21 = vld [vmem:[%s8698_s18 + $0x8] sm:$0xff] }
 0xe03   : > { %6526 = vmatprep.subr.mxu1 %v7666_v58 }
 0xe04   : > { %6527 = vmatpush3.msra.mxu1 %v5987_v22  ;;  %v3867_v22 = vld [vmem:[%s8698_s18] sm:$0xff] }
 0xe05   : > { %6528 = vmatprep.subr.mxu1 %v7666_v58 }
 0xe06   : > { %6529 = vmatpush3.msra.mxu1 %v5986_v23 }
 0xe07   : > { %6530 = vmatprep.subr.mxu1 %v7666_v58 }
 0xe08   : > { %6531 = vmatpush3.msra.mxu1 %v5985_v24 }
 0xe09   : > { %6533 = vmatmul.mubr.msk.f32.vlgmr.msra.gmra.mxu1 %vm1432_vm2, %v8201_v32  ;;  %6546 = vmatprep.subr.mxu1 %v7666_v58 }
 0xe0a   : > { %6548 = vmatprep.mubr.msk.f32.mxu1 %vm7667_vm4, %v7666_v58 }
 0xec1   : > { %v8285_v25 = vpop.f32.mrf.mxu1 }
 0xec3   : > { %v6512_v26 = vpop.f32.mrf.mxu1 }
 0xec9   : > { %v3370_v27 = vpop.f32.mrf.mxu1 }
 0xeca   : > { %6547 = vmatpush3.xpose.msk.msra.mxu1 %vm1672_vm3, %v3370_v27 }
 0xecb   : > { %v6534_v28 = vpop.f32.mrf.mxu1  ;;  %6551 = vmatprep.subr.mxu1 %v7666_v58 }
 0xecd   : > { %6549 = vmatmul.mubr.msk.f32.vlgmr.msra.gmra.mxu1 %vm1672_vm3, %v3295_v3 }
 0xece   : > { %6552 = vmatpush3.msra.mxu1 %v3445_v5  ;;  %6553 = vmatprep.mubr.msk.f32.mxu1 %vm7667_vm4, %v7666_v58 }
 0xecf   : > { %6567 = vmatprep.subr.mxu1 %v7666_v58 }
 0xf8d   : > { %v3521_v30 = vpop.f32.mrf.mxu1 }
 0xf8e   : > { %v3525_v31 = vsel %vm3135_vm7, %v3521_v30, -inf }
 0xf8f   : > { %3526 = vmax.xlane.f32.xlu0 %v3525_v31  ;;  %v6550_v34 = vpop.f32.mrf.mxu1 }
 0xf93   : > { %2712 = vadd.xlane.f32.xlu0 %v2711_v35  ;;  %v3793_v35 = vld [vmem:[%s8699_s7 + $0x18] sm:$0xff]  ;;  %s6083_s7 = sshll.u32 %s7885_s0, 4 }
 0xf94   : > { %s8552_s2 = scalar_lea.hbm %s7862_s21, %s6083_s7 }
0x1018   : > { %v3527_v36 = vpop.xlane.xlu0 %3526 }
0x1019   : > { %v3528_v37 = vsub.f32 %v3521_v30, %v3527_v36  ;;  %v3792_v36 = vld [vmem:[%s8700_s8 + $0x10] sm:$0xff] }
0x101b   : > { %v3529_v38 = vmul.f32 1.442695, %v3528_v37  ;;  %v3791_v37 = vld [vmem:[%s8700_s8 + $0x8] sm:$0xff] }
0x101c   : > { %v2713_v39 = vpop.xlane.xlu0 %2712 }
0x101d   : > { %7073 = vpow2.f32 %v3529_v38  ;;  %v2717_v40 = vmul.f32 0.03125, %v2713_v39  ;;  %v3790_v38 = vld [vmem:[%s8700_s8] sm:$0xff]  ;;  %v3955_v39 = vld [vmem:[%s8701_s11 + $0x18] sm:$0xff]  ;;  %s1331_s11 = scalar_lea.vmem [#allocation28], %s1330_s15 }
0x101e   : > { %s5627_s1 = sshll.u32 %s1331_s11, 4  ;;  %s5628_s1 = int_to_ptr.vmem [resolvable:$true] %s5627_s1 }
0x101f   : > { %v2719_v42 = vsub.f32 %v2707_v33, %v2717_v40  ;;  %s7513_s4 = scalar_lea.vmem %s5628_s1, 16 }
0x1020   : > { %p7514_p12 = scmp.ne.s32.totalorder %s5628_s1, %s7513_s4 }
0x1021   : > { %v2721_v45 = vmul.f32 %v2719_v42, %v2719_v42 }
0x1022   : > { %p7515_p9 = pnand %p7514_p12, %p8704_p6 }
0x1023   : > { %v2723_v46 = vsel %vm1432_vm2, %v2721_v45, 0.0  ;;  %v6005_v45 = vld [vmem:[#allocation13] ss:$0 sm:$0xff] }
0x1024   : > { %p7516_p1 = pneg %p7515_p9 }
0x102a   : > { %v7074_v41 = vpop.eup %7073 }
0x102b   : > { %v3531_v43 = vsel %vm3135_vm7, %v7074_v41, 0.0 }
0x102c   : > { %3532 = vadd.xlane.f32.xlu1 %v3531_v43 }
0x1030   : > { %2715 = vadd.xlane.f32.xlu1 %v2714_v44 }
0x1034   : > { %2724 = vadd.xlane.f32.xlu1 %v2723_v46 }
0x10b5   : > { %v3533_v11 = vpop.xlane.xlu1 %3532 }
0x10b6   : > { %7075 = vrcp.f32 %v3533_v11  ;;  %v3952_v11 = vld [vmem:[%s8702_s14] sm:$0xff] }
0x10b9   : > { %v2716_v50 = vpop.xlane.xlu1 %2715 }
0x10ba   : > { %v2718_v7 = vmul.f32 0.03125, %v2716_v50 }
0x10bc   : > { %v2720_v9 = vsub.f32 %v2708_v10, %v2718_v7  ;;  %v6004_v10 = vld [vmem:[#allocation11] ss:$0 sm:$0xff] }
0x10bd   : > { %v2725_v51 = vpop.xlane.xlu1 %2724 }
0x10be   : > { %v2729_v52 = vmul.f32 0.03125, %v2725_v51  ;;  %v2722_v18 = vmul.f32 %v2720_v9, %v2720_v9 }
0x10c0   : > { %v2731_v53 = vadd.f32 1e-05, %v2729_v52  ;;  %v2726_v19 = vsel %vm1432_vm2, %v2722_v18, 0.0  ;;  %v6018_v52 = vld [vmem:[%s8700_s8 + $0x38] sm:$0xff] }
0x10c2   : > { %7077 = vrsqrt.f32 %v2731_v53 }
0x10c3   : > { %v7076_v54 = vpop.eup %7075 }
0x10c4   : > { %v3535_v17 = vmul.f32 %v7076_v54, %v7074_v41  ;;  %v6017_v54 = vld [vmem:[%s8700_s8 + $0x30] sm:$0xff] }
0x10c6   : > { %6554 = vmatmul.mubr.msk.f32.vlgmr.msra.gmra.mxu1 %vm3135_vm7, %v3535_v17 }
0x10c7   : > { %6568 = vmatpush3.msra.mxu1 %v3223_v55  ;;  %6575 = vmatprep.mubr.msk.f32.mxu1 %vm7667_vm4, %v7666_v58  ;;  %v6016_v55 = vld [vmem:[%s8700_s8 + $0x28] sm:$0xff] }
0x10c8   : > { %6569 = vmatprep.subr.mxu1 %v7666_v58 }
0x10c9   : > { %6570 = vmatpush3.msra.mxu1 %v3222_v16  ;;  %v6015_v16 = vld [vmem:[%s8700_s8 + $0x20] sm:$0xff] }
0x10ca   : > { %6571 = vmatprep.subr.mxu1 %v7666_v58 }
0x10cb   : > { %6572 = vmatpush3.msra.mxu1 %v3221_v56  ;;  %v6029_v56 = vld [vmem:[%s8702_s14 + $0x38] sm:$0xff] }
0x10cc   : > { %6573 = vmatprep.subr.mxu1 %v7666_v58 }
0x10cd   : > { %6574 = vmatpush3.msra.mxu1 %v3220_v57 }
0x10ce   : > { %6576 = vmatmul.mubr.msk.f32.vlgmr.msra.gmra.mxu1 %vm1432_vm2, %v8285_v25  ;;  %6589 = vmatprep.subr.mxu1 %v3870_v20 }
0x10cf   : > { %v7078_v59 = vpop.eup %7077  ;;  %6590 = vmatpush3.msra.mxu1 %v3870_v20 }
0x10d0   : > { %v2735_v61 = vmul.f32 %v7078_v59, %v2719_v42  ;;  %6591 = vmatprep.subr.mxu1 %v3869_v2  ;;  %v6028_v59 = vld [vmem:[%s8702_s14 + $0x30] sm:$0xff] }
0x10d1   : > { %6592 = vmatpush3.msra.mxu1 %v3869_v2  ;;  %v6022_v2 = vld [vmem:[%s8698_s18 + $0x30] sm:$0xff] }
0x10d2   : > { %v2743_v63 = vmul.f32 %v5969_v60, %v2735_v61  ;;  %6593 = vmatprep.subr.mxu1 %v3868_v21  ;;  %v6027_v61 = vld [vmem:[%s8702_s14 + $0x28] sm:$0xff] }
0x10d3   : > { %6594 = vmatpush3.msra.mxu1 %v3868_v21  ;;  %v6021_v21 = vld [vmem:[%s8698_s18 + $0x28] sm:$0xff] }
0x10d4   : > { %v8321_v0 = vadd.f32 %v5970_v62, %v2743_v63  ;;  %6595 = vmatprep.subr.mxu1 %v3867_v22 }
0x10d5   : > { %6596 = vmatpush3.msra.mxu1 %v3867_v22  ;;  %v6020_v22 = vld [vmem:[%s8698_s18 + $0x20] sm:$0xff] }
0x10d6   : > { %6597 = vmatprep.mubr.msk.f32.mxu1 %vm1432_vm2, %v8321_v0  ;;  %6611 = vmatprep.subr.mxu1 %v7666_v58 }
0x1186   : > { %v3605_v3 = vpop.f32.mrf.mxu1 }
0x1187   : > { %6565 = vmatmul.mubr.msk.f32.vlgmr.msra.gmra.mxu0 %vm1432_vm2, %v3605_v3 }
0x1188   : > { %v6555_v4 = vpop.f32.mrf.mxu1  ;;  %6586 = vmatprep.mubr.msk.f32.mxu0 %vm7667_vm4, %v7666_v58  ;;  %6579 = vmatpush3.msra.mxu0 %v3793_v35  ;;  %v4599_v35 = vld [vmem:[#allocation14 + $0x30] sm:$0xff] }
0x1189   : > { %6580 = vmatprep.subr.mxu0 %v7666_v58 }
0x118a   : > { %6581 = vmatpush3.msra.mxu0 %v3792_v36  ;;  %v4598_v36 = vld [vmem:[#allocation14 + $0x28] sm:$0xff] }
0x118b   : > { %6582 = vmatprep.subr.mxu0 %v7666_v58 }
0x118c   : > { %6583 = vmatpush3.msra.mxu0 %v3791_v37 }
0x118d   : > { %6584 = vmatprep.subr.mxu0 %v7666_v58 }
0x118e   : > { %v3756_v5 = vpop.f32.mrf.mxu1  ;;  %6585 = vmatpush3.msra.mxu0 %v3790_v38 }
0x118f   : > { %6600 = vmatprep.subr.mxu0 %v3955_v39 }
0x1190   : > { %v6577_v6 = vpop.f32.mrf.mxu1 }
0x1247   : > { %v3683_v8 = vpop.f32.mrf.mxu0 }
0x1248   : > { %v3757_v12 = vadd.f32 %v3756_v5, %v3683_v8 }
0x1249   : > { %v6566_v13 = vpop.f32.mrf.mxu0 }
0x124a   : > { %v3760_v14 = vadd.f32 %v3757_v12, %v8201_v32 }
0x124c   : > { %v3763_v15 = vsel %vm1432_vm2, %v3760_v14, 0.0 }
0x124d   : > { %3764 = vadd.xlane.f32.xlu0 %v3763_v15  ;;  %v6023_v15 = vld [vmem:[%s8698_s18 + $0x38] sm:$0xff] }
0x1251   : > { %2727 = vadd.xlane.f32.xlu0 %v2726_v19 }
0x12d6   : > { %v3765_v32 = vpop.xlane.xlu0 %3764 }
0x12d7   : > { %v3766_v23 = vmul.f32 0.03125, %v3765_v32 }
0x12d9   : > { %v3767_v24 = vsub.f32 %v3760_v14, %v3766_v23 }
0x12da   : > { %v2728_v25 = vpop.xlane.xlu0 %2727 }
0x12db   : > { %v2730_v26 = vmul.f32 0.03125, %v2728_v25  ;;  %v3768_v27 = vmul.f32 %v3767_v24, %v3767_v24 }
0x12dd   : > { %v2732_v28 = vadd.f32 1e-05, %v2730_v26  ;;  %v3769_v29 = vsel %vm1432_vm2, %v3768_v27, 0.0 }
0x12de   : > { %3770 = vadd.xlane.f32.xlu1 %v3769_v29 }
0x12df   : > { %7079 = vrsqrt.f32 %v2732_v28 }
0x12ec   : > { %v7080_v30 = vpop.eup %7079 }
0x12ed   : > { %v2736_v31 = vmul.f32 %v7080_v30, %v2720_v9 }
0x12ef   : > { %v2744_v33 = vmul.f32 %v5969_v60, %v2736_v31 }
0x12f1   : > { %v8339_v34 = vadd.f32 %v5970_v62, %v2744_v33  ;;  %v6026_v62 = vld [vmem:[%s8702_s14 + $0x20] sm:$0xff] }
0x12f3   : > { %6598 = vmatmul.mubr.msk.f32.vlgmr.msra.gmra.mxu1 %vm1432_vm2, %v8339_v34 }
0x12f4   : > { %6615 = vmatprep.mubr.msk.f32.mxu1 %vm7667_vm4, %v7666_v58 }
0x1367   : > { %v3771_v40 = vpop.xlane.xlu1 %3770 }
0x1368   : > { %v3772_v41 = vmul.f32 0.03125, %v3771_v40  ;;  %v4197_v40 = vld [vmem:[#allocation14 + $0x18] sm:$0xff] }
0x136a   : > { %v3773_v42 = vadd.f32 1e-05, %v3772_v41  ;;  %v4196_v41 = vld [vmem:[#allocation14 + $0x10] sm:$0xff] }
0x136c   : > { %7081 = vrsqrt.f32 %v3773_v42  ;;  %v4195_v42 = vld [vmem:[#allocation14 + $0x8] sm:$0xff] }
0x1379   : > { %v7082_v43 = vpop.eup %7081 }
0x137a   : > { %v3775_v44 = vmul.f32 %v7082_v43, %v3767_v24  ;;  %v4194_v43 = vld [vmem:[#allocation14] sm:$0xff] }
0x137c   : > { %v3782_v46 = vmul.f32 %v6004_v10, %v3775_v44  ;;  %v4597_v10 = vld [vmem:[#allocation14 + $0x20] sm:$0xff] }
0x137e   : > { %v8353_v47 = vadd.f32 %v6005_v45, %v3782_v46 }
0x1380   : > { %6587 = vmatmul.mubr.msk.f32.vlgmr.msra.gmra.mxu0 %vm1432_vm2, %v8353_v47 }
0x1381   : > { %6601 = vmatpush3.msra.mxu0 %v3955_v39  ;;  %6608 = vmatprep.mubr.msk.f32.mxu0 %vm1432_vm2, %v8321_v0 }
0x1382   : > { %6602 = vmatprep.subr.mxu0 %v3954_v48 }
0x1383   : > { %6603 = vmatpush3.msra.mxu0 %v3954_v48 }
0x1384   : > { %6604 = vmatprep.subr.mxu0 %v3953_v49 }
0x1385   : > { %6605 = vmatpush3.msra.mxu0 %v3953_v49 }
0x1386   : > { %6606 = vmatprep.subr.mxu0 %v3952_v11 }
0x1387   : > { %6607 = vmatpush3.msra.mxu0 %v3952_v11 }
0x1388   : > { %6609 = vmatmul.mubr.msk.f32.vlgmr.msra.gmra.mxu0 %vm1432_vm2, %v8339_v34  ;;  %6618 = vmatprep.subr.mxu0 %v7666_v58 }
0x1389   : > { %6622 = vmatprep.mubr.msk.f32.mxu0 %vm7667_vm4, %v7666_v58 }
0x13b3   : > { %v6599_v50 = vpop.f32.mrf.mxu1 }
0x13b4   : > { %6612 = vmatpush3.xpose.msk.msra.mxu1 %vm1672_vm3, %v6599_v50 }
0x13b5   : > { %6613 = vmatprep.subr.mxu1 %v7666_v58  ;;  %v3943_v51 = vpop.f32.mrf.mxu1 }
0x13b8   : > { %6614 = vmatpush3.xpose.msk.msra.mxu1 %vm1672_vm3, %v3943_v51 }
0x13b9   : > { %6625 = vmatprep.subr.mxu1 %v7666_v58 }
0x1440   : > { %v3863_v53 = vpop.f32.mrf.mxu0 }
0x1441   : > { %6616 = vmatmul.mubr.msk.f32.vlgmr.msra.gmra.mxu1 %vm1672_vm3, %v3863_v53 }
0x1442   : > { %6626 = vmatpush3.msra.mxu1 %v6018_v52  ;;  %v6588_v17 = vpop.f32.mrf.mxu0  ;;  %6633 = vmatprep.mubr.msk.f32.mxu1 %vm7667_vm4, %v7666_v58 }
0x1443   : > { %6627 = vmatprep.subr.mxu1 %v7666_v58 }
0x1444   : > { %6628 = vmatpush3.msra.mxu1 %v6017_v54 }
0x1445   : > { %6629 = vmatprep.subr.mxu1 %v7666_v58 }
0x1446   : > { %6630 = vmatpush3.msra.mxu1 %v6016_v55 }
0x1447   : > { %6631 = vmatprep.subr.mxu1 %v7666_v58 }
0x1448   : > { %v6610_v57 = vpop.f32.mrf.mxu0  ;;  %6632 = vmatpush3.msra.mxu1 %v6015_v16 }
0x1449   : > { %6619 = vmatpush3.msra.mxu0 %v6610_v57  ;;  %6634 = vmatmul.mubr.msk.f32.vlgmr.msra.gmra.mxu1 %vm1432_vm2, %v8353_v47  ;;  %v4779_v57 = vld [vmem:[#allocation19 + $0x10] sm:$0xff] }
0x144a   : > { %6647 = vmatprep.subr.mxu1 %v6029_v56  ;;  %v4022_v60 = vpop.f32.mrf.mxu0  ;;  %6620 = vmatprep.subr.mxu0 %v7666_v58 }
0x144b   : > { %6648 = vmatpush3.msra.mxu1 %v6029_v56  ;;  %6655 = vmatprep.mubr.msk.f32.mxu1 %vm1432_vm2, %v8321_v0  ;;  %v4780_v56 = vld [vmem:[#allocation19 + $0x18] sm:$0xff] }
0x144c   : > { %6621 = vmatpush3.msra.mxu0 %v4022_v60  ;;  %6649 = vmatprep.subr.mxu1 %v6028_v59 }
0x144d   : > { %6650 = vmatpush3.msra.mxu1 %v6028_v59  ;;  %6636 = vmatprep.subr.mxu0 %v6023_v15  ;;  %v4778_v59 = vld [vmem:[#allocation19 + $0x8] sm:$0xff] }
0x144e   : > { %6651 = vmatprep.subr.mxu1 %v6027_v61 }
0x144f   : > { %6652 = vmatpush3.msra.mxu1 %v6027_v61 }
0x1450   : > { %6653 = vmatprep.subr.mxu1 %v6026_v62 }
0x1451   : > { %6654 = vmatpush3.msra.mxu1 %v6026_v62 }
0x1452   : > { %6656 = vmatmul.mubr.msk.f32.vlgmr.msra.gmra.mxu1 %vm1432_vm2, %v8339_v34  ;;  %6665 = vmatprep.subr.mxu1 %v7666_v58 }
0x1453   : > { %6669 = vmatprep.mubr.msk.f32.mxu1 %vm7667_vm4, %v7666_v58 }
0x1501   : > { %v4106_v63 = vpop.f32.mrf.mxu1 }
0x1502   : > { %v4110_v1 = vsel %vm1672_vm3, %v4106_v63, -inf }
0x1503   : > { %4111 = vmax.xlane.f32.xlu0 %v4110_v1  ;;  %v6617_v3 = vpop.f32.mrf.mxu1  ;;  %v6038_v1 = vld [vmem:[#allocation16] ss:$0 sm:$0xff] }
0x1509   : > { %v4269_v4 = vpop.f32.mrf.mxu1 }
0x150b   : > { %v6635_v5 = vpop.f32.mrf.mxu1 }
0x1512   : > { %v6657_v6 = vpop.f32.mrf.mxu1 }
0x1513   : > { %6666 = vmatpush3.msra.mxu1 %v6657_v6 }
0x1514   : > { %v4424_v7 = vpop.f32.mrf.mxu1  ;;  %6667 = vmatprep.subr.mxu1 %v7666_v58 }
0x1515   : > { %6668 = vmatpush3.msra.mxu1 %v4424_v7  ;;  %v4870_v7 = vld [vmem:[#allocation22 + $0x18] sm:$0xff] }
0x1516   : > { %6683 = vmatprep.subr.mxu1 %v7666_v58 }
0x158c   : > { %v4112_v8 = vpop.xlane.xlu0 %4111 }
0x158d   : > { %v4113_v9 = vsub.f32 %v4106_v63, %v4112_v8  ;;  %v4869_v8 = vld [vmem:[#allocation22 + $0x10] sm:$0xff] }
0x158f   : > { %v4114_v12 = vmul.f32 1.442695, %v4113_v9  ;;  %v4868_v9 = vld [vmem:[#allocation22 + $0x8] sm:$0xff] }
0x1591   : > { %7083 = vpow2.f32 %v4114_v12  ;;  %v4867_v12 = vld [vmem:[#allocation22] sm:$0xff] }
0x159e   : > { %v7084_v13 = vpop.eup %7083 }
0x159f   : > { %v4116_v14 = vsel %vm1672_vm3, %v7084_v13, 0.0 }
0x15a0   : > { %4117 = vadd.xlane.f32.xlu1 %v4116_v14 }
0x1629   : > { %v4118_v18 = vpop.xlane.xlu1 %4117 }
0x162a   : > { %7085 = vrcp.f32 %v4118_v18 }
0x1637   : > { %v7086_v19 = vpop.eup %7085 }
0x1638   : > { %v4120_v20 = vmul.f32 %v7086_v19, %v7084_v13  ;;  %v6040_v13 = vld [vmem:[#allocation20] ss:$0 sm:$0xff] }
0x163a   : > { %6623 = vmatmul.mubr.msk.f32.vlgmr.msra.gmra.mxu0 %vm1672_vm3, %v4120_v20 }
0x163b   : > { %6637 = vmatpush3.msra.mxu0 %v6023_v15  ;;  %6644 = vmatprep.mubr.msk.f32.mxu0 %vm1432_vm2, %v8321_v0 }
0x163c   : > { %6638 = vmatprep.subr.mxu0 %v6022_v2 }
0x163d   : > { %6639 = vmatpush3.msra.mxu0 %v6022_v2 }
0x163e   : > { %6640 = vmatprep.subr.mxu0 %v6021_v21 }
0x163f   : > { %6641 = vmatpush3.msra.mxu0 %v6021_v21 }
0x1640   : > { %6642 = vmatprep.subr.mxu0 %v6020_v22 }
0x1641   : > { %6643 = vmatpush3.msra.mxu0 %v6020_v22 }
0x1642   : > { %6645 = vmatmul.mubr.msk.f32.vlgmr.msra.gmra.mxu0 %vm1432_vm2, %v8339_v34  ;;  %6658 = vmatprep.subr.mxu0 %v7666_v58  ;;  %v4600_v34 = vld [vmem:[#allocation14 + $0x38] sm:$0xff] }
0x1643   : > { %6662 = vmatprep.mubr.msk.f32.mxu0 %vm7667_vm4, %v7666_v58 }
0x16fa   : > { %v4190_v32 = vpop.f32.mrf.mxu0 }
0x16fc   : > { %v6624_v23 = vpop.f32.mrf.mxu0 }
0x1702   : > { %v6646_v24 = vpop.f32.mrf.mxu0 }
0x1703   : > { %6659 = vmatpush3.xpose.msk.msra.mxu0 %vm1672_vm3, %v6646_v24 }
0x1704   : > { %6660 = vmatprep.subr.mxu0 %v7666_v58  ;;  %v4344_v0 = vpop.f32.mrf.mxu0 }
0x1707   : > { %6661 = vmatpush3.xpose.msk.msra.mxu0 %vm1672_vm3, %v4344_v0 }
0x1708   : > { %6672 = vmatprep.subr.mxu0 %v7666_v58 }
0x170a   : > { %6663 = vmatmul.mubr.msk.f32.vlgmr.msra.gmra.mxu0 %vm1672_vm3, %v4269_v4  ;;  %v6039_v4 = vld [vmem:[#allocation17] ss:$0 sm:$0xff] }
0x170b   : > { %6680 = vmatprep.mubr.msk.f32.mxu0 %vm7667_vm4, %v7666_v58  ;;  %6673 = vmatpush3.msra.mxu0 %v4600_v34  ;;  %v4984_v34 = vld [vmem:[%s7852_s9 + $0x10] sm:$0xff] }
0x170c   : > { %6674 = vmatprep.subr.mxu0 %v7666_v58 }
0x170d   : > { %6675 = vmatpush3.msra.mxu0 %v4599_v35  ;;  %v6051_v35 = vld [vmem:[%s7852_s9 + $0x38] sm:$0xff] }
0x170e   : > { %6676 = vmatprep.subr.mxu0 %v7666_v58 }
0x170f   : > { %6677 = vmatpush3.msra.mxu0 %v4598_v36  ;;  %v4983_v36 = vld [vmem:[%s7852_s9 + $0x8] sm:$0xff] }
0x1710   : > { %6678 = vmatprep.subr.mxu0 %v7666_v58 }
0x1711   : > { %6679 = vmatpush3.msra.mxu0 %v4597_v10 }
0x1712   : > { %6694 = vmatprep.subr.mxu0 %v7666_v58 }
0x17ca   : > { %v4508_v25 = vpop.f32.mrf.mxu0 }
0x17cb   : > { %v4512_v26 = vsel %vm1672_vm3, %v4508_v25, -inf }
0x17cc   : > { %4513 = vmax.xlane.f32.xlu0 %v4512_v26  ;;  %v6664_v27 = vpop.f32.mrf.mxu0 }
0x1855   : > { %v4514_v28 = vpop.xlane.xlu0 %4513 }
0x1856   : > { %v4515_v29 = vsub.f32 %v4508_v25, %v4514_v28 }
0x1858   : > { %v4516_v30 = vmul.f32 1.442695, %v4515_v29 }
0x185a   : > { %7087 = vpow2.f32 %v4516_v30 }
0x1867   : > { %v7088_v31 = vpop.eup %7087 }
0x1868   : > { %v4518_v33 = vsel %vm1672_vm3, %v7088_v31, 0.0 }
0x1869   : > { %4519 = vadd.xlane.f32.xlu1 %v4518_v33  ;;  %v4985_v33 = vld [vmem:[%s7852_s9 + $0x18] sm:$0xff] }
0x18f2   : > { %v4520_v37 = vpop.xlane.xlu1 %4519 }
0x18f3   : > { %7089 = vrcp.f32 %v4520_v37  ;;  %v6050_v37 = vld [vmem:[%s7852_s9 + $0x30] sm:$0xff] }
0x1900   : > { %v7090_v38 = vpop.eup %7089 }
0x1901   : > { %v4522_v39 = vmul.f32 %v7090_v38, %v7088_v31  ;;  %v4982_v38 = vld [vmem:[%s7852_s9] sm:$0xff] }
0x1903   : > { %6670 = vmatmul.mubr.msk.f32.vlgmr.msra.gmra.mxu1 %vm1672_vm3, %v4522_v39  ;;  %v6049_v39 = vld [vmem:[%s7852_s9 + $0x28] sm:$0xff] }
0x1904   : > { %6684 = vmatpush3.msra.mxu1 %v4197_v40  ;;  %6691 = vmatprep.mubr.msk.f32.mxu1 %vm7667_vm4, %v7666_v58  ;;  %v6048_v40 = vld [vmem:[%s7852_s9 + $0x20] sm:$0xff] }
0x1905   : > { %6685 = vmatprep.subr.mxu1 %v7666_v58 }
0x1906   : > { %6686 = vmatpush3.msra.mxu1 %v4196_v41 }
0x1907   : > { %6687 = vmatprep.subr.mxu1 %v7666_v58 }
0x1908   : > { %6688 = vmatpush3.msra.mxu1 %v4195_v42 }
0x1909   : > { %6689 = vmatprep.subr.mxu1 %v7666_v58 }
0x190a   : > { %6690 = vmatpush3.msra.mxu1 %v4194_v43 }
0x190b   : > { %6692 = vmatmul.mubr.msk.f32.vlgmr.msra.gmra.mxu1 %vm1432_vm2, %v4190_v32  ;;  %6705 = vmatprep.subr.mxu1 %v7666_v58  ;;  %v6043_v32 = vld [vmem:[#allocation23] ss:$0 sm:$0xff] }
0x190c   : > { %6713 = vmatprep.mubr.msk.f32.mxu1 %vm7667_vm4, %v7666_v58  ;;  %6706 = vmatpush3.msra.mxu1 %v4870_v7  ;;  %v6075_v7 = vld [vmem:[%s7852_s9 + $0xd0] sm:$0xff] }
0x190d   : > { %6707 = vmatprep.subr.mxu1 %v7666_v58 }
0x190e   : > { %6708 = vmatpush3.msra.mxu1 %v4869_v8  ;;  %v6081_v8 = vld [vmem:[%s7852_s9 + $0xf8] sm:$0xff] }
0x190f   : > { %6709 = vmatprep.subr.mxu1 %v7666_v58 }
0x1910   : > { %6710 = vmatpush3.msra.mxu1 %v4868_v9  ;;  %v6074_v9 = vld [vmem:[%s7852_s9 + $0xc8] sm:$0xff] }
0x1911   : > { %6711 = vmatprep.subr.mxu1 %v7666_v58 }
0x1912   : > { %6712 = vmatpush3.msra.mxu1 %v4867_v12  ;;  %v6080_v12 = vld [vmem:[%s7852_s9 + $0xf0] sm:$0xff] }
0x1913   : > { %6727 = vmatprep.subr.mxu1 %v7666_v58 }
0x19c3   : > { %v4592_v44 = vpop.f32.mrf.mxu1 }
0x19c4   : > { %6681 = vmatmul.mubr.msk.f32.vlgmr.msra.gmra.mxu0 %vm1432_vm2, %v4592_v44  ;;  %v6045_v44 = vld [vmem:[#allocation25] ss:$0 sm:$0xff] }
0x19c5   : > { %v6671_v45 = vpop.f32.mrf.mxu1  ;;  %6702 = vmatprep.mubr.msk.f32.mxu0 %vm7667_vm4, %v7666_v58  ;;  %6695 = vmatpush3.msra.mxu0 %v4780_v56  ;;  %v6058_v56 = vld [vmem:[%s7852_s9 + $0x60] sm:$0xff] }
0x19c6   : > { %6696 = vmatprep.subr.mxu0 %v7666_v58 }
0x19c7   : > { %6697 = vmatpush3.msra.mxu0 %v4779_v57  ;;  %v6066_v57 = vld [vmem:[%s7852_s9 + $0x98] sm:$0xff] }
0x19c8   : > { %6698 = vmatprep.subr.mxu0 %v7666_v58 }
0x19c9   : > { %6699 = vmatpush3.msra.mxu0 %v4778_v59 }
0x19ca   : > { %6700 = vmatprep.subr.mxu0 %v7666_v58 }
0x19cb   : > { %v4743_v46 = vpop.f32.mrf.mxu1 }
0x19cd   : > { %v6693_v48 = vpop.f32.mrf.mxu1 }
0x1a84   : > { %v4670_v49 = vpop.f32.mrf.mxu0 }
0x1a85   : > { %v4744_v11 = vadd.f32 %v4743_v46, %v4670_v49  ;;  %v6046_v46 = vld [vmem:[#allocation26] ss:$0 sm:$0xff] }
0x1a86   : > { %v6682_v50 = vpop.f32.mrf.mxu0 }
0x1a87   : > { %v4747_v51 = vadd.f32 %v4744_v11, %v8353_v47  ;;  %v4777_v47 = vld [vmem:[#allocation19] sm:$0xff] }
0x1a88   : > { %6701 = vmatpush3.msra.mxu0 %v4777_v47  ;;  %v6056_v11 = vld [vmem:[%s7852_s9 + $0x58] sm:$0xff]  ;;  %v6065_v47 = vld [vmem:[%s7852_s9 + $0x90] sm:$0xff] }
0x1a89   : > { %v4750_v52 = vsel %vm1432_vm2, %v4747_v51, 0.0  ;;  %6716 = vmatprep.subr.mxu0 %v7666_v58 }
0x1a8a   : > { %4751 = vadd.xlane.f32.xlu0 %v4750_v52  ;;  %v6061_v52 = vld [vmem:[%s7852_s9 + $0x78] sm:$0xff] }
0x1b13   : > { %v4752_v53 = vpop.xlane.xlu0 %4751 }
0x1b14   : > { %v4753_v54 = vmul.f32 0.03125, %v4752_v53  ;;  %v6054_v53 = vld [vmem:[%s7852_s9 + $0x48] sm:$0xff] }
0x1b16   : > { %v4754_v17 = vsub.f32 %v4747_v51, %v4753_v54  ;;  %v6055_v51 = vld [vmem:[%s7852_s9 + $0x50] sm:$0xff] }
0x1b17   : > { %v6060_v54 = vld [vmem:[%s7852_s9 + $0x70] sm:$0xff] }
0x1b18   : > { %v4755_v55 = vmul.f32 %v4754_v17, %v4754_v17 }
0x1b1a   : > { %v4756_v16 = vsel %vm1432_vm2, %v4755_v55, 0.0  ;;  %v6059_v55 = vld [vmem:[%s7852_s9 + $0x68] sm:$0xff] }
0x1b1b   : > { %4757 = vadd.xlane.f32.xlu1 %v4756_v16 }
0x1ba4   : > { %v4758_v60 = vpop.xlane.xlu1 %4757 }
0x1ba5   : > { %v4759_v61 = vmul.f32 0.03125, %v4758_v60  ;;  %v6071_v60 = vld [vmem:[%s7852_s9 + $0xb8] sm:$0xff] }
0x1ba7   : > { %v4760_v62 = vadd.f32 1e-05, %v4759_v61  ;;  %v6064_v61 = vld [vmem:[%s7852_s9 + $0x88] sm:$0xff] }
0x1ba9   : > { %7091 = vrsqrt.f32 %v4760_v62  ;;  %v6070_v62 = vld [vmem:[%s7852_s9 + $0xb0] sm:$0xff] }
0x1bb6   : > { %v7092_v63 = vpop.eup %7091 }
0x1bb7   : > { %v4762_v3 = vmul.f32 %v7092_v63, %v4754_v17  ;;  %v6053_v17 = vld [vmem:[%s7852_s9 + $0x40] sm:$0xff] }
0x1bb8   : > { %v6063_v63 = vld [vmem:[%s7852_s9 + $0x80] sm:$0xff] }
0x1bb9   : > { %v4769_v5 = vmul.f32 %v6038_v1, %v4762_v3  ;;  %v6069_v1 = vld [vmem:[%s7852_s9 + $0xa8] sm:$0xff] }
0x1bbb   : > { %v4776_v6 = vadd.f32 %v6039_v4, %v4769_v5  ;;  %v6068_v4 = vld [vmem:[%s7852_s9 + $0xa0] sm:$0xff]  ;;  %v6076_v5 = vld [vmem:[%s7852_s9 + $0xd8] sm:$0xff] }
0x1bbd   : > { %6703 = vmatmul.mubr.msk.f32.vlgmr.msra.gmra.mxu0 %vm1432_vm2, %v4776_v6 }
0x1bbe   : > { %6724 = vmatprep.mubr.msk.f32.mxu0 %vm7667_vm4, %v7666_v58  ;;  %6717 = vmatpush3.msra.mxu0 %v4985_v33 }
0x1bbf   : > { %6718 = vmatprep.subr.mxu0 %v7666_v58 }
0x1bc0   : > { %6719 = vmatpush3.msra.mxu0 %v4984_v34 }
0x1bc1   : > { %6720 = vmatprep.subr.mxu0 %v7666_v58 }
0x1bc2   : > { %6721 = vmatpush3.msra.mxu0 %v4983_v36 }
0x1bc3   : > { %6722 = vmatprep.subr.mxu0 %v7666_v58 }
0x1bc4   : > { %6723 = vmatpush3.msra.mxu0 %v4982_v38 }
0x1bc5   : > { %6738 = vmatprep.subr.mxu0 %v7666_v58 }
0x1c7d   : > { %v4857_v14 = vpop.f32.mrf.mxu0 }
0x1c7e   : > { %v4858_v15 = vadd.f32 %v6040_v13, %v4857_v14  ;;  %v6073_v13 = vld [vmem:[%s7852_s9 + $0xc0] sm:$0xff]  ;;  %v6079_v14 = vld [vmem:[%s7852_s9 + $0xe8] sm:$0xff] }
0x1c7f   : > { %v6704_v18 = vpop.f32.mrf.mxu0 }
0x1c80   : > { %v4862_v19 = vmin.f32 %v4858_v15, 0.0  ;;  %vm4861_vm8 = vcmp.gt.f32.partialorder %v4858_v15, 0.0  ;;  %v6078_v18 = vld [vmem:[%s7852_s9 + $0xe0] sm:$0xff] }
0x1c82   : > { %v4863_v20 = vmul.f32 1.442695, %v4862_v19 }
0x1c84   : > { %7093 = vpow2.f32 %v4863_v20 }
0x1c91   : > { %v7094_v2 = vpop.eup %7093 }
0x1c92   : > { %v6042_v21 = vadd.f32 -1.0, %v7094_v2 }
0x1c94   : > { %v4866_v22 = vsel %vm4861_vm8, %v4858_v15, %v6042_v21 }
0x1c95   : > { %6714 = vmatmul.mubr.msk.f32.vlgmr.msra.gmra.mxu1 %vm1432_vm2, %v4866_v22 }
0x1c96   : > { %6735 = vmatprep.mubr.msk.f32.mxu1 %vm7667_vm4, %v7666_v58  ;;  %6728 = vmatpush3.msra.mxu1 %v6051_v35 }
0x1c97   : > { %6729 = vmatprep.subr.mxu1 %v7666_v58 }
0x1c98   : > { %6730 = vmatpush3.msra.mxu1 %v6050_v37 }
0x1c99   : > { %6731 = vmatprep.subr.mxu1 %v7666_v58 }
0x1c9a   : > { %6732 = vmatpush3.msra.mxu1 %v6049_v39 }
0x1c9b   : > { %6733 = vmatprep.subr.mxu1 %v7666_v58 }
0x1c9c   : > { %6734 = vmatpush3.msra.mxu1 %v6048_v40 }
0x1c9d   : > { %6749 = vmatprep.subr.mxu1 %v7666_v58 }
0x1d55   : > { %v4947_v23 = vpop.f32.mrf.mxu1 }
0x1d56   : > { %v4948_v24 = vadd.f32 %v6043_v32, %v4947_v23  ;;  %v4981_v32 = vld [vmem:[%s8703_s5] sm:$0x1]  ;;  %s7668_s5 = smov [#allocation28]  }
0x1d57   : > { %v6715_v0 = vpop.f32.mrf.mxu1  ;;  %s7517_s6 = sshll.u32 %s7668_s5, 4  ;;  %s7518_s6 = int_to_ptr.vmem [resolvable:$false] %s7517_s6 }
0x1d58   : > { %v4951_v25 = vadd.f32 %v4948_v24, %v4776_v6  ;;  %s7519_s0 = scalar_lea.vmem %s7518_s6, 32  ;;  %p7520_p3 = scmp.lt.s32.totalorder %s5628_s1, %s7518_s6 }
0x1d59   : > { %p7521_p2 = scmp.lt.s32.totalorder %s7519_s0, %s7513_s4 }
0x1d5a   : > { %v4954_v26 = vsel %vm1432_vm2, %v4951_v25, 0.0 }
0x1d5b   : > { %4955 = vadd.xlane.f32.xlu0 %v4954_v26  ;;  %p7522_p5 = por %p7521_p2, %p7520_p3 }
0x1d5d   : > { %p7523_p4 = pnand %p7522_p5, %p7516_p1 }
0x1de4   : > { %v4956_v27 = vpop.xlane.xlu0 %4955 }
0x1de5   : > { %v4957_v28 = vmul.f32 0.03125, %v4956_v27 }
0x1de7   : > { %v4958_v29 = vsub.f32 %v4951_v25, %v4957_v28 }
0x1de9   : > { %v4959_v30 = vmul.f32 %v4958_v29, %v4958_v29 }
0x1deb   : > { %v4960_v31 = vsel %vm1432_vm2, %v4959_v30, 0.0 }
0x1dec   : > { %4961 = vadd.xlane.f32.xlu1 %v4960_v31 }
0x1e75   : > { %v4962_v41 = vpop.xlane.xlu1 %4961 }
0x1e76   : > { %v4963_v42 = vmul.f32 0.03125, %v4962_v41 }
0x1e78   : > { %v4964_v43 = vadd.f32 1e-05, %v4963_v42 }
0x1e7a   : > { %7095 = vrsqrt.f32 %v4964_v43 }
0x1e87   : > { %v7096_v10 = vpop.eup %7095 }
0x1e88   : > { %v4966_v45 = vmul.f32 %v7096_v10, %v4958_v29 }
0x1e8a   : > { %v4973_v48 = vmul.f32 %v6045_v44, %v4966_v45 }
0x1e8c   : > { %v8472_v49 = vadd.f32 %v6046_v46, %v4973_v48 }
0x1e8e   : > { %6725 = vmatmul.mubr.msk.f32.vlgmr.msra.gmra.mxu0 %vm1432_vm2, %v8472_v49  ;;  %v5065_v50 = vrot.slane %v8472_v49, 1  ;;  %v5144_v16 = vrot.slane %v8472_v49, 2  ;;  %v5223_v59 = vrot.slane %v8472_v49, 3  ;;  %v5302_v3 = vrot.slane %v8472_v49, 4 }
0x1e8f   : > { %6739 = vmatpush3.msra.mxu0 %v6056_v11  ;;  %6746 = vmatprep.mubr.msk.f32.mxu0 %vm7667_vm4, %v7666_v58  ;;  %v5381_v6 = vrot.slane %v8472_v49, 5  ;;  %v5460_v15 = vrot.slane %v8472_v49, 6  ;;  %v5539_v19 = vrot.slane %v8472_v49, 7 }
0x1e90   : > { %6740 = vmatprep.subr.mxu0 %v7666_v58  ;;  %6736 = vmatmul.mubr.msk.f32.vlgmr.msra.gmra.mxu1 %vm1432_vm2, %v5065_v50 }
0x1e91   : > { %6741 = vmatpush3.msra.mxu0 %v6055_v51  ;;  %6750 = vmatpush3.msra.mxu1 %v6061_v52 }
0x1e92   : > { %6742 = vmatprep.subr.mxu0 %v7666_v58  ;;  %6751 = vmatprep.subr.mxu1 %v7666_v58 }
0x1e93   : > { %6743 = vmatpush3.msra.mxu0 %v6054_v53  ;;  %6752 = vmatpush3.msra.mxu1 %v6060_v54 }
0x1e94   : > { %6744 = vmatprep.subr.mxu0 %v7666_v58  ;;  %6753 = vmatprep.subr.mxu1 %v7666_v58 }
0x1e95   : > { %6745 = vmatpush3.msra.mxu0 %v6053_v17  ;;  %6754 = vmatpush3.msra.mxu1 %v6059_v55 }
0x1e96   : > { %6747 = vmatmul.mubr.msk.f32.vlgmr.msra.gmra.mxu0 %vm1432_vm2, %v5144_v16  ;;  %6755 = vmatprep.subr.mxu1 %v7666_v58 }
0x1e97   : > { %6760 = vmatprep.subr.mxu0 %v7666_v58  ;;  %6756 = vmatpush3.msra.mxu1 %v6058_v56 }
0x1e98   : > { %6757 = vmatprep.mubr.msk.f32.mxu1 %vm7667_vm4, %v7666_v58  ;;  %6761 = vmatpush3.msra.mxu0 %v6066_v57 }
0x1e99   : > { %6758 = vmatmul.mubr.msk.f32.vlgmr.msra.gmra.mxu1 %vm1432_vm2, %v5223_v59  ;;  %6762 = vmatprep.subr.mxu0 %v7666_v58 }
0x1e9a   : > { %6771 = vmatprep.subr.mxu1 %v7666_v58  ;;  %6763 = vmatpush3.msra.mxu0 %v6065_v47 }
0x1e9b   : > { %6772 = vmatpush3.msra.mxu1 %v6071_v60  ;;  %6764 = vmatprep.subr.mxu0 %v7666_v58 }
0x1e9c   : > { %6773 = vmatprep.subr.mxu1 %v7666_v58  ;;  %6765 = vmatpush3.msra.mxu0 %v6064_v61 }
0x1e9d   : > { %6774 = vmatpush3.msra.mxu1 %v6070_v62  ;;  %6766 = vmatprep.subr.mxu0 %v7666_v58 }
0x1e9e   : > { %6775 = vmatprep.subr.mxu1 %v7666_v58  ;;  %6767 = vmatpush3.msra.mxu0 %v6063_v63 }
0x1e9f   : > { %6768 = vmatprep.mubr.msk.f32.mxu0 %vm7667_vm4, %v7666_v58  ;;  %6776 = vmatpush3.msra.mxu1 %v6069_v1 }
0x1ea0   : > { %6769 = vmatmul.mubr.msk.f32.vlgmr.msra.gmra.mxu0 %vm1432_vm2, %v5302_v3  ;;  %6777 = vmatprep.subr.mxu1 %v7666_v58 }
0x1ea1   : > { %6782 = vmatprep.subr.mxu0 %v7666_v58  ;;  %6778 = vmatpush3.msra.mxu1 %v6068_v4 }
0x1ea2   : > { %6779 = vmatprep.mubr.msk.f32.mxu1 %vm7667_vm4, %v7666_v58  ;;  %6783 = vmatpush3.msra.mxu0 %v6076_v5 }
0x1ea3   : > { %6780 = vmatmul.mubr.msk.f32.vlgmr.msra.gmra.mxu1 %vm1432_vm2, %v5381_v6  ;;  %6784 = vmatprep.subr.mxu0 %v7666_v58 }
0x1ea4   : > { %6793 = vmatprep.subr.mxu1 %v7666_v58  ;;  %6785 = vmatpush3.msra.mxu0 %v6075_v7 }
0x1ea5   : > { %6794 = vmatpush3.msra.mxu1 %v6081_v8  ;;  %6786 = vmatprep.subr.mxu0 %v7666_v58 }
0x1ea6   : > { %6795 = vmatprep.subr.mxu1 %v7666_v58  ;;  %6787 = vmatpush3.msra.mxu0 %v6074_v9 }
0x1ea7   : > { %6796 = vmatpush3.msra.mxu1 %v6080_v12  ;;  %6788 = vmatprep.subr.mxu0 %v7666_v58 }
0x1ea8   : > { %6797 = vmatprep.subr.mxu1 %v7666_v58  ;;  %6789 = vmatpush3.msra.mxu0 %v6073_v13 }
0x1ea9   : > { %6790 = vmatprep.mubr.msk.f32.mxu0 %vm7667_vm4, %v7666_v58  ;;  %6798 = vmatpush3.msra.mxu1 %v6079_v14 }
0x1eaa   : > { %6791 = vmatmul.mubr.msk.f32.vlgmr.msra.gmra.mxu0 %vm1432_vm2, %v5460_v15  ;;  %6799 = vmatprep.subr.mxu1 %v7666_v58 }
0x1eab   : > { %6800 = vmatpush3.msra.mxu1 %v6078_v18  ;;  %6801 = vmatprep.mubr.msk.f32.mxu1 %vm7667_vm4, %v7666_v58 }
0x1eac   : > { %6802 = vmatmul.mubr.msk.f32.vlgmr.msra.gmra.mxu1 %vm1432_vm2, %v5539_v19 }
0x1f4e   : > { %v5055_v20 = vpop.f32.mrf.mxu0 }
0x1f4f   : > { %v5059_v0 = vadd.f32 %v5055_v20, %v4981_v32 }
0x1f50   : > { %v6726_v2 = vpop.f32.mrf.mxu0  ;;  %v5134_v21 = vpop.f32.mrf.mxu1 }
0x1f51   : > { %v5138_v27 = vadd.f32 %v5134_v21, %v5059_v0 }
0x1f52   : > { %v6737_v22 = vpop.f32.mrf.mxu1 }
0x1f56   : > { %v5213_v23 = vpop.f32.mrf.mxu0 }
0x1f57   : > { %v5217_v28 = vadd.f32 %v5213_v23, %v5138_v27 }
0x1f58   : > { %v6748_v24 = vpop.f32.mrf.mxu0 }
0x1f59   : > { %v5292_v25 = vpop.f32.mrf.mxu1 }
0x1f5a   : > { %v5296_v58 = vadd.f32 %v5292_v25, %v5217_v28 }
0x1f5b   : > { %v6759_v26 = vpop.f32.mrf.mxu1 }
0x1f60   : > { %v5371_v29 = vpop.f32.mrf.mxu0 }
0x1f61   : > { %v5375_v33 = vadd.f32 %v5371_v29, %v5296_v58 }
0x1f62   : > { %v6770_v30 = vpop.f32.mrf.mxu0 }
0x1f63   : > { %v5450_v31 = vpop.f32.mrf.mxu1 }
0x1f64   : > { %v5454_v35 = vadd.f32 %v5450_v31, %v5375_v33 }
0x1f65   : > { %v6781_v34 = vpop.f32.mrf.mxu1 }
0x1f6a   : > { %v5529_v36 = vpop.f32.mrf.mxu0 }
0x1f6b   : > { %v5533_v37 = vadd.f32 %v5529_v36, %v5454_v35 }
0x1f6c   : > { %v6792_v38 = vpop.f32.mrf.mxu0  ;;  %v5608_v39 = vpop.f32.mrf.mxu1 }
0x1f6d   : > { %v5612_v40 = vadd.f32 %v5608_v39, %v5533_v37 }
0x1f6e   : > { %v6803_v41 = vpop.f32.mrf.mxu1 }
0x1f6f   : > { %5613 = vst [vmem:[%s1331_s11] sm:$0x1] %v5612_v40 }
0x1f70   : > { %7526 = shalt.err (!%p7523_p4)
}
0x1f71   : > { %s7527_s15 = scalar_lea.hbm %s8552_s2, 16  ;;  %s7531_s7 = scalar_lea.hbm %s7862_s21, 32 }
0x1f72   : > { %p7528_p10 = scmp.ne.s32.totalorder %s8552_s2, %s7527_s15  ;;  %p7532_p13 = scmp.lt.s32.totalorder %s8552_s2, %s7862_s21 }
0x1f73   : > { %p7533_p11 = scmp.lt.s32.totalorder %s7531_s7, %s7527_s15 }
0x1f74   : > { %p7529_p7 = pnand %p7528_p10, %p8704_p6 }
0x1f75   : > { %p7534_p0 = por %p7533_p11, %p7532_p13 }
0x1f76   : > { %p7530_p8 = pneg %p7529_p7 }
0x1f78   : > { %p7535_p12 = pnand %p7534_p0, %p7530_p8 }
0x1f7a   : > { %7538 = shalt.err (!%p7535_p12)
}
0x1f7b   : > { %6868 = dma.vmem_to_hbm [thread:$0]  (%p8704_p6), %s5628_s1, 16, %s8552_s2, %s5615_s3  }
0x1f7c PF: > { %s8705_s5 = sld [smem:[#allocation68_spill]] }
0x1f7d   : > { %s8706_s6 = sld [smem:[#allocation66_spill]] }
0x1f7e   : > { %s8707_s4 = sld [smem:[#allocation71_spill]] }
0x1f82   : > { %p6955_p9 = scmp.ge.s32.totalorder %s8705_s5, 2 }
0x1f83   : > { %s5639_s11 = sand.u32 1, %s8706_s6  }
0x1f84   : > { %p8708_p1 = scmp.ne.s32.totalorder %s8707_s4, 0  ;;  %s5640_s0 = scalar_lea.sflag [#allocation4], %s5639_s11 }
0x1f86   : > { %p6920_p3 = pnand %p6955_p9, %p8708_p1 }
0x1f88   : > { %p6921_p2 = pneg %p6920_p3 }
0x1f8a   : > { %7592 = dma.done.wait (%p6921_p2), %s5640_s0, 16  }
0x1f8b   : > { %7594 = vsyncadd (%p6921_p2), %s5640_s0, 4294967280  ;;  %s8709_s15 = sld [smem:[#allocation69_spill]]  ;;  %s8712_s7 = smov %s7601_s10 }
0x1f8c   : > { %s8710_s8 = sld [smem:[#allocation67_spill]] }
0x1f8d   : > { %s8711_s11 = sld [smem:[#allocation70_spill]] }
0x1f91   : > { %p94_p5 = scmp.ge.s32.totalorder %s8709_s15, 4  }
0x1f92   : > { %s8713_s10 = smov %s8710_s8 }
0x1f93   :  { %96 = sbr.rel (!%p94_p5) target bundleno = 81 (0x51), region = 324 }
0x1f98   :  { %5644 = vsyncpa [#allocation3], 1 }
0x1f99   :  { %5646 = vsyncpa [#allocation3 + $0x1], 1 }
0x1f9a   :  { %5647 = vsyncpa [#allocation6], 1 }
0x1f9b   :  { %5648 = vsyncpa [#allocation9], 1 }
0x1f9c   :  { %5649 = vsyncpa [#allocation12], 1 }
0x1f9d   :  { %5650 = vsyncpa [#allocation15], 1 }
0x1f9e   :  { %5651 = vsyncpa [#allocation18], 1 }
0x1f9f   :  { %5652 = vsyncpa [#allocation21], 1 }
0x1fa0   :  { %5653 = vsyncpa [#allocation24], 1 }
0x1fa1   :  { %5654 = vsyncpa [#allocation27], 1 }
0x1fa2   :  { %5655 = vsyncpa [#allocation4], 1 }
0x1fa3   :  { %5657 = vsyncpa [#allocation4 + $0x1], 1 }

</bundles_post_ra>
